<compile_context>
chip_gen: v5e
topology: v5e:2x2
jax: 0.10.0
libtpu: 0.0.40
codegen_flags: <defaults>
</compile_context>

<pallas_src>
import functools

import jax
import jax.numpy as jnp
from jax.experimental import pallas as pl
from jax.experimental.pallas import tpu as pltpu


_VMEM_LIMIT = 32 * 1024 * 1024  # explicit scoped-VMEM budget, safe on v5e/v6e/v7x


def _round_up(x, m):
    return ((x + m - 1) // m) * m


# ----------------------------- Pallas kernels ------------------------------

def _matmul_bias_kernel(a_ref, b_ref, bias_ref, o_ref, acc_ref, *, activation):
    """Tiled matmul: bf16 operands on the MXU, f32 accumulator in VMEM scratch."""
    @pl.when(pl.program_id(2) == 0)
    def _():
        acc_ref[...] = jnp.zeros_like(acc_ref)

    acc_ref[...] += jnp.dot(a_ref[...], b_ref[...],
                            preferred_element_type=jnp.float32)

    @pl.when(pl.program_id(2) == pl.num_programs(2) - 1)
    def _():
        y = acc_ref[...] + bias_ref[...]
        if activation == "tanh":
            y = jnp.tanh(y)
        elif activation == "relu":
            y = jnp.maximum(y, 0.0)
        o_ref[...] = y.astype(o_ref.dtype)


def matmul_bias(a, b, bias, activation="none"):
    """out = act(a @ b + bias).  a:(M,K) b:(K,N) bias:(N,).  Returns f32 (M,N)."""
    M, K = a.shape
    N = b.shape[1]

    # --- tile selection: M tiles of <=256 rows, lane-dense (128-padded) N, K tiled
    #     only when large (otherwise a single full-K block; block == full dim is legal).
    tm = 256 if M >= 256 else _round_up(M, 8)
    M_pad = _round_up(M, tm)
    N_pad = _round_up(N, 128)
    tn = 256 if (N_pad % 256 == 0 and N_pad >= 256) else 128
    if K > 512:
        tk = 512
        K_pad = _round_up(K, tk)
    else:
        tk = K
        K_pad = K
    grid = (M_pad // tm, N_pad // tn, K_pad // tk)

    a_p = a.astype(jnp.bfloat16)
    if (M_pad, K_pad) != (M, K):
        a_p = jnp.pad(a_p, ((0, M_pad - M), (0, K_pad - K)))
    b_p = b.astype(jnp.bfloat16)
    if (K_pad, N_pad) != (K, N):
        b_p = jnp.pad(b_p, ((0, K_pad - K), (0, N_pad - N)))
    bias_p = bias.astype(jnp.float32).reshape(1, N)
    if N_pad != N:
        bias_p = jnp.pad(bias_p, ((0, 0), (0, N_pad - N)))

    out = pl.pallas_call(
        functools.partial(_matmul_bias_kernel, activation=activation),
        out_shape=jax.ShapeDtypeStruct((M_pad, N_pad), jnp.float32),
        grid=grid,
        in_specs=[
            pl.BlockSpec((tm, tk), lambda i, j, k: (i, k)),
            pl.BlockSpec((tk, tn), lambda i, j, k: (k, j)),
            pl.BlockSpec((1, tn), lambda i, j, k: (0, j)),
        ],
        out_specs=pl.BlockSpec((tm, tn), lambda i, j, k: (i, j)),
        scratch_shapes=[pltpu.VMEM((tm, tn), jnp.float32)],
        compiler_params=pltpu.CompilerParams(
            dimension_semantics=("parallel", "parallel", "arbitrary"),
            vmem_limit_bytes=_VMEM_LIMIT),
    )(a_p, b_p, bias_p)

    if (M_pad, N_pad) != (M, N):
        out = out[:M, :N]
    return out


def _bn_stats_kernel(x_ref, sum_ref, sq_ref):
    """Pass 1: per-channel sum and sum-of-squares, accumulated across the M grid."""
    @pl.when(pl.program_id(0) == 0)
    def _():
        sum_ref[...] = jnp.zeros_like(sum_ref)
        sq_ref[...] = jnp.zeros_like(sq_ref)
    x = x_ref[...]
    sum_ref[...] += jnp.sum(x, axis=0, keepdims=True)
    sq_ref[...] += jnp.sum(x * x, axis=0, keepdims=True)


def _bn_apply_kernel(*refs, relu, residual):
    """Pass 2: y = x*scale + shift [+ residual] [relu], tiled over M."""
    if residual:
        x_ref, scale_ref, shift_ref, res_ref, o_ref = refs
    else:
        x_ref, scale_ref, shift_ref, o_ref = refs
    y = x_ref[...] * scale_ref[...] + shift_ref[...]
    if residual:
        y = y + res_ref[...]
    if relu:
        y = jnp.maximum(y, 0.0)
    o_ref[...] = y.astype(o_ref.dtype)


def batchnorm(x, gamma, beta, relu=False, residual=None, eps=1e-5):
    """Training-mode BatchNorm2d (batch statistics, biased variance = PyTorch fwd),
    optionally fused ReLU and fused residual add.  x/residual: NHWC."""
    N, H, W, C = x.shape
    M = N * H * W
    xf = x.reshape(M, C).astype(jnp.float32)

    tm = 512 if M >= 512 else _round_up(M, 8)
    M_pad = _round_up(M, tm)
    if M_pad != M:
        xf = jnp.pad(xf, ((0, M_pad - M), (0, 0)))   # zero rows: no effect on sums

    s, sq = pl.pallas_call(
        _bn_stats_kernel,
        out_shape=(jax.ShapeDtypeStruct((1, C), jnp.float32),
                   jax.ShapeDtypeStruct((1, C), jnp.float32)),
        grid=(M_pad // tm,),
        in_specs=[pl.BlockSpec((tm, C), lambda i: (i, 0))],
        out_specs=(pl.BlockSpec((1, C), lambda i: (0, 0)),
                   pl.BlockSpec((1, C), lambda i: (0, 0))),
        compiler_params=pltpu.CompilerParams(
            dimension_semantics=("arbitrary",),
            vmem_limit_bytes=_VMEM_LIMIT),
    )(xf)

    mean = s[0] / M
    var = sq[0] / M - mean * mean                    # biased variance (PyTorch fwd)
    scale = gamma * jax.lax.rsqrt(var + eps)
    shift = beta - mean * scale

    ins = [xf, scale.reshape(1, C), shift.reshape(1, C)]
    in_specs = [pl.BlockSpec((tm, C), lambda i: (i, 0)),
                pl.BlockSpec((1, C), lambda i: (0, 0)),
                pl.BlockSpec((1, C), lambda i: (0, 0))]
    if residual is not None:
        rf = residual.reshape(M, C).astype(jnp.float32)
        if M_pad != M:
            rf = jnp.pad(rf, ((0, M_pad - M), (0, 0)))
        ins.append(rf)
        in_specs.append(pl.BlockSpec((tm, C), lambda i: (i, 0)))

    out = pl.pallas_call(
        functools.partial(_bn_apply_kernel, relu=relu,
                          residual=residual is not None),
        out_shape=jax.ShapeDtypeStruct((M_pad, C), jnp.float32),
        grid=(M_pad // tm,),
        in_specs=in_specs,
        out_specs=pl.BlockSpec((tm, C), lambda i: (i, 0)),
        compiler_params=pltpu.CompilerParams(
            dimension_semantics=("parallel",),
            vmem_limit_bytes=_VMEM_LIMIT),
    )(*ins)
    return out[:M].reshape(N, H, W, C)


def _attention_kernel(t_ref, p_ref, g_ref, o_ref):
    t = t_ref[0]                                      # (Lq, Ci)  bf16
    p = p_ref[0]                                      # (Ci, Lk)  bf16
    gm = g_ref[0]                                     # (Lk, Ci)  bf16
    f = jnp.dot(t, p, preferred_element_type=jnp.float32)
    f = f - jnp.max(f, axis=-1, keepdims=True)
    e = jnp.exp(f)
    denom = jnp.sum(e, axis=-1, keepdims=True)
    a = e * pl.reciprocal(denom, approx=True)         # EUP reciprocal
    o_ref[0] = jnp.dot(a.astype(gm.dtype), gm,
                       preferred_element_type=jnp.float32).astype(o_ref.dtype)


def attention(theta, phi, g):
    """softmax(theta @ phi) @ g, batched over the leading axis via the grid."""
    # TODO(synk): switch to a flash-style online-softmax streamed over Lk blocks for
    # large feature maps; at these Lq/Lk the full score matrix fits trivially in VMEM.
    B, Lq, Ci = theta.shape
    Lk = g.shape[1]
    return pl.pallas_call(
        _attention_kernel,
        out_shape=jax.ShapeDtypeStruct((B, Lq, Ci), jnp.float32),
        grid=(B,),
        in_specs=[
            pl.BlockSpec((1, Lq, Ci), lambda b: (b, 0, 0)),
            pl.BlockSpec((1, Ci, Lk), lambda b: (b, 0, 0)),
            pl.BlockSpec((1, Lk, Ci), lambda b: (b, 0, 0)),
        ],
        out_specs=pl.BlockSpec((1, Lq, Ci), lambda b: (b, 0, 0)),
        compiler_params=pltpu.CompilerParams(
            dimension_semantics=("parallel",),
            vmem_limit_bytes=_VMEM_LIMIT),
    )(theta.astype(jnp.bfloat16), phi.astype(jnp.bfloat16), g.astype(jnp.bfloat16))


# ------------------------------ JAX glue ops --------------------------------

def reflect_pad(x, p):
    return jnp.pad(x, ((0, 0), (p, p), (p, p), (0, 0)), mode="reflect")


def zero_pad(x, p):
    return jnp.pad(x, ((0, 0), (p, p), (p, p), (0, 0)))


def im2col(x, kh, kw, stride):
    # TODO(synk): for the 7x7 convs this materializes a 49x patch tensor; a tap-axis
    # grid reduction would avoid the HBM blowup at deployment resolutions.
    N, H, W, C = x.shape
    Ho = (H - kh) // stride + 1
    Wo = (W - kw) // stride + 1
    cols = []
    for i in range(kh):
        for j in range(kw):
            cols.append(x[:, i:i + Ho * stride:stride, j:j + Wo * stride:stride, :])
    patches = jnp.stack(cols, axis=3)                 # (N, Ho, Wo, kh*kw, C)
    return patches.reshape(N, Ho, Wo, kh * kw * C), Ho, Wo


def conv2d(x, w, b, stride=1, activation="none"):
    """x: NHWC (pre-padded).  w: PyTorch (Cout, Cin, kh, kw).  b: (Cout,)."""
    Cout, Cin, kh, kw = w.shape
    N = x.shape[0]
    patches, Ho, Wo = im2col(x, kh, kw, stride)
    wmat = jnp.transpose(w, (2, 3, 1, 0)).reshape(kh * kw * Cin, Cout)
    out = matmul_bias(patches.reshape(-1, kh * kw * Cin), wmat, b, activation)
    return out.reshape(N, Ho, Wo, Cout)


def conv1x1(x, w, b):
    """w: (Cout, Cin)."""
    N, H, W, Cin = x.shape
    out = matmul_bias(x.reshape(-1, Cin), w.T, b)
    return out.reshape(N, H, W, -1)


def conv_transpose2d(x, w_t, b):
    """PyTorch ConvTranspose2d(k=3, s=2, p=1, output_padding=1), sub-pixel decomposed
    into 4 stride-1 sub-kernels (no zero-dilated input).  w_t: (Cin, Cout, 3, 3)."""
    N, H, W, Cin = x.shape
    Cout = w_t.shape[1]
    xp = jnp.pad(x, ((0, 0), (0, 1), (0, 1), (0, 0)))          # next-pixel taps (zeros)
    patches, _, _ = im2col(xp, 2, 2, 1)                        # (N, H, W, 4*Cin)
    w = w_t
    z = jnp.zeros((Cin, Cout), w.dtype)

    def subk(t00, t01, t10, t11):                              # tap order (0,0)(0,1)(1,0)(1,1)
        return jnp.concatenate([t00, t01, t10, t11], axis=0)   # (4*Cin, Cout)

    k00 = subk(w[:, :, 1, 1], z, z, z)                         # out[2m,   2n  ]
    k01 = subk(w[:, :, 1, 2], w[:, :, 1, 0], z, z)             # out[2m,   2n+1]
    k10 = subk(w[:, :, 2, 1], z, w[:, :, 0, 1], z)             # out[2m+1, 2n  ]
    k11 = subk(w[:, :, 2, 2], w[:, :, 2, 0],
               w[:, :, 0, 2], w[:, :, 0, 0])                   # out[2m+1, 2n+1]
    wmat = jnp.concatenate([k00, k01, k10, k11], axis=1)       # (4*Cin, 4*Cout)
    bias4 = jnp.concatenate([b, b, b, b], axis=0)

    out4 = matmul_bias(patches.reshape(-1, 4 * Cin), wmat, bias4)
    out4 = out4.reshape(N, H, W, 2, 2, Cout)                   # (.., pr, pc, Cout)
    return jnp.transpose(out4, (0, 1, 3, 2, 4, 5)).reshape(N, 2 * H, 2 * W, Cout)


def maxpool2x2(x):
    N, H, W, C = x.shape
    return x.reshape(N, H // 2, 2, W // 2, 2, C).max(axis=(2, 4))


# ----------------------------- Model pieces ---------------------------------

def resnet_block(x, bp):
    C = x.shape[-1]
    zb = jnp.zeros((C,), jnp.float32)
    h = conv2d(reflect_pad(x, 1), bp["w1"], zb)
    h = batchnorm(h, *bp["bn1"], relu=True)
    h = conv2d(reflect_pad(h, 1), bp["w2"], zb)
    return batchnorm(h, *bp["bn2"], relu=False, residual=x)    # fused skip add


def encoder(p, x, ngf):
    h = conv2d(reflect_pad(x, 3), p["enc_w0"], jnp.zeros((ngf,), jnp.float32))
    h = batchnorm(h, *p["enc_bn0"], relu=True)
    h = conv2d(zero_pad(h, 1), p["enc_w1"], jnp.zeros((ngf * 2,), jnp.float32), stride=2)
    h = batchnorm(h, *p["enc_bn1"], relu=True)
    h = conv2d(zero_pad(h, 1), p["enc_w2"], jnp.zeros((ngf * 4,), jnp.float32), stride=2)
    h = batchnorm(h, *p["enc_bn2"], relu=True)
    for bp in p["blocks"]:
        h = resnet_block(h, bp)
    return h


def non_local(p, x, x2):
    B, H, W, C = x.shape
    Ci = C // 2
    theta = conv1x1(x, p["theta_w"], p["theta_b"]).reshape(B, H * W, Ci)
    # fused phi/g projection: one (C -> 2*Ci) matmul over encoder2 features
    pg_w = jnp.concatenate([p["phi_w"], p["g_w"]], axis=0)     # (2*Ci, C)
    pg_b = jnp.concatenate([p["phi_b"], p["g_b"]], axis=0)
    pg = maxpool2x2(conv1x1(x2, pg_w, pg_b))                   # sub_sample=True
    _, Hp, Wp, _ = pg.shape
    pg = pg.reshape(B, Hp * Wp, 2 * Ci)
    phi = jnp.transpose(pg[:, :, :Ci], (0, 2, 1))              # (B, Ci, Lk)
    g = pg[:, :, Ci:]                                          # (B, Lk, Ci)
    y = attention(theta, phi, g).reshape(B, H, W, Ci)
    wy = conv1x1(y, p["W_w"], p["W_b"])
    return batchnorm(wy, *p["W_bn"], relu=False, residual=x)   # fused skip add


def decoder(p, x, ngf, output_nc):
    h = conv_transpose2d(x, p["dec_tw0"], jnp.zeros((ngf * 2,), jnp.float32))
    h = batchnorm(h, *p["dec_bn0"], relu=True)
    h = conv_transpose2d(h, p["dec_tw1"], jnp.zeros((ngf,), jnp.float32))
    h = batchnorm(h, *p["dec_bn1"], relu=True)
    h = conv2d(reflect_pad(h, 3), p["out_w"], p["out_b"], activation="tanh")
    return h


def attention_generator_forward(p, input1, input2, ngf, output_nc, base="P"):
    # layout: inputs NCHW -> internal NHWC -> output NCHW
    x1 = jnp.transpose(input1, (0, 2, 3, 1))
    x2 = jnp.transpose(input2, (0, 2, 3, 1))
    down = conv2d(x2, p["down_w"], p["down_b"], stride=2)      # Conv2d(k=2, s=2)
    enc1 = encoder(p, x1, ngf)
    enc2 = encoder(p, down, ngf)
    if base == "T":
        enc1, enc2 = enc2, enc1
    att = non_local(p, enc1, enc2)
    out = decoder(p, att, ngf, output_nc)
    return jnp.transpose(out, (0, 3, 1, 2))


# ------------------------------ Parameters ----------------------------------

def init_params(key, input_nc, output_nc, ngf, n_blocks):
    keys = iter(jax.random.split(key, 256))

    def w(shape, scale=0.05):
        return scale * jax.random.normal(next(keys), shape, dtype=jnp.float32)

    def bn(c):
        return (jnp.ones((c,), jnp.float32), jnp.zeros((c,), jnp.float32))

    C = ngf * 4
    Ci = C // 2
    p = {
        "down_w": w((input_nc, input_nc, 2, 2)), "down_b": w((input_nc,)),
        "enc_w0": w((ngf, input_nc, 7, 7)), "enc_bn0": bn(ngf),
        "enc_w1": w((ngf * 2, ngf, 3, 3)), "enc_bn1": bn(ngf * 2),
        "enc_w2": w((ngf * 4, ngf * 2, 3, 3)), "enc_bn2": bn(ngf * 4),
        "blocks": [
            {"w1": w((C, C, 3, 3)), "bn1": bn(C),
             "w2": w((C, C, 3, 3)), "bn2": bn(C)}
            for _ in range(n_blocks)
        ],
        "theta_w": w((Ci, C)), "theta_b": w((Ci,)),
        "phi_w": w((Ci, C)), "phi_b": w((Ci,)),
        "g_w": w((Ci, C)), "g_b": w((Ci,)),
        "W_w": w((C, Ci)), "W_b": w((C,)), "W_bn": bn(C),
        "dec_tw0": w((ngf * 4, ngf * 2, 3, 3)), "dec_bn0": bn(ngf * 2),
        "dec_tw1": w((ngf * 2, ngf, 3, 3)), "dec_bn1": bn(ngf),
        "out_w": w((output_nc, ngf, 7, 7)), "out_b": w((output_nc,)),
    }
    return p


# --------------------------------- Main --------------------------------------

if __name__ == "__main__":
    input_nc, output_nc, ngf, n_blocks = 2, 2, 8, 2
    key = jax.random.PRNGKey(0)
    kp, k1, k2 = jax.random.split(key, 3)
    params = init_params(kp, input_nc, output_nc, ngf, n_blocks)

    # input: (B, C, 16, 16); input2: (B, C, 32, 32) so downsample_layer output
    # matches the spatial size expected by the shared encoder `model`.
    x = jax.random.normal(k1, (2, input_nc, 16, 16), jnp.float32)
    x2 = jax.random.normal(k2, (2, input_nc, 32, 32), jnp.float32)

    fwd = jax.jit(functools.partial(
        attention_generator_forward, ngf=ngf, output_nc=output_nc, base="P"))
    out = fwd(params, x, x2)
    jax.block_until_ready(out)
    assert out.shape == (2, output_nc, 16, 16), out.shape
    assert bool(jnp.all(jnp.isfinite(out)))
    print("KERNEL_OK")
</pallas_src>

<mosaic_0001>
module attributes {stable_mosaic.version = 11 : i64} {
  func.func @_matmul_bias_kernel(%arg0: i32, %arg1: i32, %arg2: i32, %arg3: memref<256x8xbf16, #tpu.memory_space<vmem>>, %arg4: memref<8x128xbf16, #tpu.memory_space<vmem>>, %arg5: memref<1x128xf32, #tpu.memory_space<vmem>>, %arg6: memref<256x128xf32, #tpu.memory_space<vmem>>, %arg7: memref<256x128xf32, #tpu.memory_space<vmem>>) attributes {dimension_semantics = [#tpu.dimension_semantics<parallel>, #tpu.dimension_semantics<parallel>, #tpu.dimension_semantics<arbitrary>], iteration_bounds = array<i64: 2, 1, 1>, scalar_prefetch = 0 : i64, scratch_operands = 1 : i64, tpu.core_type = #tpu.core_type<tc>, window_params = [{transform_indices = @transform_0, window_bounds = array<i64: 256, 8>}, {transform_indices = @transform_1, window_bounds = array<i64: 8, 128>}, {transform_indices = @transform_2, window_bounds = array<i64: 1, 128>}, {transform_indices = @transform_3, window_bounds = array<i64: 256, 128>}]} {
    %c0_i32 = arith.constant 0 : i32
    %0 = arith.cmpi eq, %arg2, %c0_i32 : i32
    %1 = arith.extui %0 : i1 to i32
    %c0_i32_0 = arith.constant 0 : i32
    %2 = arith.cmpi ne, %1, %c0_i32_0 : i32
    scf.if %2 {
      %cst_10 = arith.constant 0.000000e+00 : f32
      %12 = vector.broadcast %cst_10 : f32 to vector<256x128xf32>
      %c0_11 = arith.constant 0 : index
      %c0_12 = arith.constant 0 : index
      %13 = vector.load %arg7[%c0_11, %c0_12] : memref<256x128xf32, #tpu.memory_space<vmem>>, vector<256x128xf32>
      tpu.vector_store %arg7[%c0_11, %c0_12], %12 {strides = array<i32>} : memref<256x128xf32, #tpu.memory_space<vmem>>, vector<256x128xf32>,
    } else {
    }
    %c0 = arith.constant 0 : index
    %c0_1 = arith.constant 0 : index
    %3 = vector.load %arg7[%c0, %c0_1] : memref<256x128xf32, #tpu.memory_space<vmem>>, vector<256x128xf32>
    %c0_2 = arith.constant 0 : index
    %c0_3 = arith.constant 0 : index
    %4 = vector.load %arg3[%c0_2, %c0_3] : memref<256x8xbf16, #tpu.memory_space<vmem>>, vector<256x8xbf16>
    %c0_4 = arith.constant 0 : index
    %c0_5 = arith.constant 0 : index
    %5 = vector.load %arg4[%c0_4, %c0_5] : memref<8x128xbf16, #tpu.memory_space<vmem>>, vector<8x128xbf16>
    %cst = arith.constant dense<0.000000e+00> : vector<256x128xf32>
    %6 = tpu.matmul %4, %5, %cst {dimension_numbers = #tpu.dot_dimension_numbers<[1], [0], [0], [1], [0, 0, 1, 1], [], []>} : vector<256x8xbf16>, vector<8x128xbf16>, vector<256x128xf32> -> vector<256x128xf32>
    %7 = arith.addf %3, %6 : vector<256x128xf32>
    %c0_6 = arith.constant 0 : index
    %c0_7 = arith.constant 0 : index
    %8 = vector.load %arg7[%c0_6, %c0_7] : memref<256x128xf32, #tpu.memory_space<vmem>>, vector<256x128xf32>
    tpu.vector_store %arg7[%c0_6, %c0_7], %7 {strides = array<i32>} : memref<256x128xf32, #tpu.memory_space<vmem>>, vector<256x128xf32>,
    %c0_i32_8 = arith.constant 0 : i32
    %9 = arith.cmpi eq, %arg2, %c0_i32_8 : i32
    %10 = arith.extui %9 : i1 to i32
    %c0_i32_9 = arith.constant 0 : i32
    %11 = arith.cmpi ne, %10, %c0_i32_9 : i32
    scf.if %11 {
      %c0_10 = arith.constant 0 : index
      %c0_11 = arith.constant 0 : index
      %12 = vector.load %arg7[%c0_10, %c0_11] : memref<256x128xf32, #tpu.memory_space<vmem>>, vector<256x128xf32>
      %c0_12 = arith.constant 0 : index
      %c0_13 = arith.constant 0 : index
      %13 = vector.load %arg5[%c0_12, %c0_13] : memref<1x128xf32, #tpu.memory_space<vmem>>, vector<1x128xf32>
      %14 = vector.broadcast %13 : vector<1x128xf32> to vector<256x128xf32>
      %15 = arith.addf %12, %14 : vector<256x128xf32>
      %c0_14 = arith.constant 0 : index
      %c0_15 = arith.constant 0 : index
      %16 = vector.load %arg6[%c0_14, %c0_15] : memref<256x128xf32, #tpu.memory_space<vmem>>, vector<256x128xf32>
      tpu.vector_store %arg6[%c0_14, %c0_15], %15 {strides = array<i32>} : memref<256x128xf32, #tpu.memory_space<vmem>>, vector<256x128xf32>,
    } else {
    }
    return
  }
  func.func @transform_0(%arg0: i32, %arg1: i32, %arg2: i32) -> (i32, i32) {
    %c0_i32 = arith.constant 0 : i32
    return %arg0, %arg2 : i32, i32
  }
  func.func @transform_1(%arg0: i32, %arg1: i32, %arg2: i32) -> (i32, i32) {
    %c0_i32 = arith.constant 0 : i32
    return %arg2, %arg1 : i32, i32
  }
  func.func @transform_2(%arg0: i32, %arg1: i32, %arg2: i32) -> (i32, i32) {
    %c0_i32 = arith.constant 0 : i32
    %c0_i32_0 = arith.constant 0 : i32
    return %c0_i32, %arg1 : i32, i32
  }
  func.func @transform_3(%arg0: i32, %arg1: i32, %arg2: i32) -> (i32, i32) {
    %c0_i32 = arith.constant 0 : i32
    return %arg0, %arg1 : i32, i32
  }
}

module attributes {stable_mosaic.version = 11 : i64} {
  func.func @_bn_stats_kernel(%arg0: i32, %arg1: memref<512x8xf32, #tpu.memory_space<vmem>>, %arg2: memref<1x8xf32, #tpu.memory_space<vmem>>, %arg3: memref<1x8xf32, #tpu.memory_space<vmem>>) attributes {dimension_semantics = [#tpu.dimension_semantics<arbitrary>], iteration_bounds = array<i64: 1>, scalar_prefetch = 0 : i64, scratch_operands = 0 : i64, tpu.core_type = #tpu.core_type<tc>, window_params = [{transform_indices = @transform_0, window_bounds = array<i64: 512, 8>}, {pipeline_mode = #tpu.pipeline_mode<synchronous>, transform_indices = @transform_1, window_bounds = array<i64: 1, 8>}, {pipeline_mode = #tpu.pipeline_mode<synchronous>, transform_indices = @transform_2, window_bounds = array<i64: 1, 8>}]} {
    %c0_i32 = arith.constant 0 : i32
    %0 = arith.cmpi eq, %arg0, %c0_i32 : i32
    %1 = arith.extui %0 : i1 to i32
    %c0_i32_0 = arith.constant 0 : i32
    %2 = arith.cmpi ne, %1, %c0_i32_0 : i32
    scf.if %2 {
      %cst_11 = arith.constant 0.000000e+00 : f32
      %15 = vector.broadcast %cst_11 : f32 to vector<1x8xf32>
      %c0_12 = arith.constant 0 : index
      %c0_13 = arith.constant 0 : index
      %16 = vector.load %arg2[%c0_12, %c0_13] : memref<1x8xf32, #tpu.memory_space<vmem>>, vector<1x8xf32>
      tpu.vector_store %arg2[%c0_12, %c0_13], %15 {strides = array<i32>} : memref<1x8xf32, #tpu.memory_space<vmem>>, vector<1x8xf32>,
      %cst_14 = arith.constant 0.000000e+00 : f32
      %17 = vector.broadcast %cst_14 : f32 to vector<1x8xf32>
      %c0_15 = arith.constant 0 : index
      %c0_16 = arith.constant 0 : index
      %18 = vector.load %arg3[%c0_15, %c0_16] : memref<1x8xf32, #tpu.memory_space<vmem>>, vector<1x8xf32>
      tpu.vector_store %arg3[%c0_15, %c0_16], %17 {strides = array<i32>} : memref<1x8xf32, #tpu.memory_space<vmem>>, vector<1x8xf32>,
    } else {
    }
    %c0 = arith.constant 0 : index
    %c0_1 = arith.constant 0 : index
    %3 = vector.load %arg1[%c0, %c0_1] : memref<512x8xf32, #tpu.memory_space<vmem>>, vector<512x8xf32>
    %c0_2 = arith.constant 0 : index
    %c0_3 = arith.constant 0 : index
    %4 = vector.load %arg2[%c0_2, %c0_3] : memref<1x8xf32, #tpu.memory_space<vmem>>, vector<1x8xf32>
    %cst = arith.constant dense<0.000000e+00> : vector<8xf32>
    %5 = vector.multi_reduction <add>, %3, %cst [0] : vector<512x8xf32> to vector<8xf32>
    %6 = vector.shape_cast %5 : vector<8xf32> to vector<1x8xf32>
    %7 = arith.addf %4, %6 : vector<1x8xf32>
    %c0_4 = arith.constant 0 : index
    %c0_5 = arith.constant 0 : index
    %8 = vector.load %arg2[%c0_4, %c0_5] : memref<1x8xf32, #tpu.memory_space<vmem>>, vector<1x8xf32>
    tpu.vector_store %arg2[%c0_4, %c0_5], %7 {strides = array<i32>} : memref<1x8xf32, #tpu.memory_space<vmem>>, vector<1x8xf32>,
    %c0_6 = arith.constant 0 : index
    %c0_7 = arith.constant 0 : index
    %9 = vector.load %arg3[%c0_6, %c0_7] : memref<1x8xf32, #tpu.memory_space<vmem>>, vector<1x8xf32>
    %10 = arith.mulf %3, %3 : vector<512x8xf32>
    %cst_8 = arith.constant dense<0.000000e+00> : vector<8xf32>
    %11 = vector.multi_reduction <add>, %10, %cst_8 [0] : vector<512x8xf32> to vector<8xf32>
    %12 = vector.shape_cast %11 : vector<8xf32> to vector<1x8xf32>
    %13 = arith.addf %9, %12 : vector<1x8xf32>
    %c0_9 = arith.constant 0 : index
    %c0_10 = arith.constant 0 : index
    %14 = vector.load %arg3[%c0_9, %c0_10] : memref<1x8xf32, #tpu.memory_space<vmem>>, vector<1x8xf32>
    tpu.vector_store %arg3[%c0_9, %c0_10], %13 {strides = array<i32>} : memref<1x8xf32, #tpu.memory_space<vmem>>, vector<1x8xf32>,
    return
  }
  func.func @transform_0(%arg0: i32) -> (i32, i32) {
    %c0_i32 = arith.constant 0 : i32
    %c0_i32_0 = arith.constant 0 : i32
    return %arg0, %c0_i32 : i32, i32
  }
  func.func @transform_1(%arg0: i32) -> (i32, i32) {
    %c0_i32 = arith.constant 0 : i32
    %c0_i32_0 = arith.constant 0 : i32
    %c0_i32_1 = arith.constant 0 : i32
    return %c0_i32, %c0_i32_0 : i32, i32
  }
  func.func @transform_2(%arg0: i32) -> (i32, i32) {
    %c0_i32 = arith.constant 0 : i32
    %c0_i32_0 = arith.constant 0 : i32
    %c0_i32_1 = arith.constant 0 : i32
    return %c0_i32, %c0_i32_0 : i32, i32
  }
}

module attributes {stable_mosaic.version = 11 : i64} {
  func.func @_matmul_bias_kernel(%arg0: i32, %arg1: i32, %arg2: i32, %arg3: memref<256x98xbf16, #tpu.memory_space<vmem>>, %arg4: memref<98x128xbf16, #tpu.memory_space<vmem>>, %arg5: memref<1x128xf32, #tpu.memory_space<vmem>>, %arg6: memref<256x128xf32, #tpu.memory_space<vmem>>, %arg7: memref<256x128xf32, #tpu.memory_space<vmem>>) attributes {dimension_semantics = [#tpu.dimension_semantics<parallel>, #tpu.dimension_semantics<parallel>, #tpu.dimension_semantics<arbitrary>], iteration_bounds = array<i64: 2, 1, 1>, scalar_prefetch = 0 : i64, scratch_operands = 1 : i64, tpu.core_type = #tpu.core_type<tc>, window_params = [{transform_indices = @transform_0, window_bounds = array<i64: 256, 98>}, {transform_indices = @transform_1, window_bounds = array<i64: 98, 128>}, {transform_indices = @transform_2, window_bounds = array<i64: 1, 128>}, {transform_indices = @transform_3, window_bounds = array<i64: 256, 128>}]} {
    %c0_i32 = arith.constant 0 : i32
    %0 = arith.cmpi eq, %arg2, %c0_i32 : i32
    %1 = arith.extui %0 : i1 to i32
    %c0_i32_0 = arith.constant 0 : i32
    %2 = arith.cmpi ne, %1, %c0_i32_0 : i32
    scf.if %2 {
      %cst_10 = arith.constant 0.000000e+00 : f32
      %12 = vector.broadcast %cst_10 : f32 to vector<256x128xf32>
      %c0_11 = arith.constant 0 : index
      %c0_12 = arith.constant 0 : index
      %13 = vector.load %arg7[%c0_11, %c0_12] : memref<256x128xf32, #tpu.memory_space<vmem>>, vector<256x128xf32>
      tpu.vector_store %arg7[%c0_11, %c0_12], %12 {strides = array<i32>} : memref<256x128xf32, #tpu.memory_space<vmem>>, vector<256x128xf32>,
    } else {
    }
    %c0 = arith.constant 0 : index
    %c0_1 = arith.constant 0 : index
    %3 = vector.load %arg7[%c0, %c0_1] : memref<256x128xf32, #tpu.memory_space<vmem>>, vector<256x128xf32>
    %c0_2 = arith.constant 0 : index
    %c0_3 = arith.constant 0 : index
    %4 = vector.load %arg3[%c0_2, %c0_3] : memref<256x98xbf16, #tpu.memory_space<vmem>>, vector<256x98xbf16>
    %c0_4 = arith.constant 0 : index
    %c0_5 = arith.constant 0 : index
    %5 = vector.load %arg4[%c0_4, %c0_5] : memref<98x128xbf16, #tpu.memory_space<vmem>>, vector<98x128xbf16>
    %cst = arith.constant dense<0.000000e+00> : vector<256x128xf32>
    %6 = tpu.matmul %4, %5, %cst {dimension_numbers = #tpu.dot_dimension_numbers<[1], [0], [0], [1], [0, 0, 1, 1], [], []>} : vector<256x98xbf16>, vector<98x128xbf16>, vector<256x128xf32> -> vector<256x128xf32>
    %7 = arith.addf %3, %6 : vector<256x128xf32>
    %c0_6 = arith.constant 0 : index
    %c0_7 = arith.constant 0 : index
    %8 = vector.load %arg7[%c0_6, %c0_7] : memref<256x128xf32, #tpu.memory_space<vmem>>, vector<256x128xf32>
    tpu.vector_store %arg7[%c0_6, %c0_7], %7 {strides = array<i32>} : memref<256x128xf32, #tpu.memory_space<vmem>>, vector<256x128xf32>,
    %c0_i32_8 = arith.constant 0 : i32
    %9 = arith.cmpi eq, %arg2, %c0_i32_8 : i32
    %10 = arith.extui %9 : i1 to i32
    %c0_i32_9 = arith.constant 0 : i32
    %11 = arith.cmpi ne, %10, %c0_i32_9 : i32
    scf.if %11 {
      %c0_10 = arith.constant 0 : index
      %c0_11 = arith.constant 0 : index
      %12 = vector.load %arg7[%c0_10, %c0_11] : memref<256x128xf32, #tpu.memory_space<vmem>>, vector<256x128xf32>
      %c0_12 = arith.constant 0 : index
      %c0_13 = arith.constant 0 : index
      %13 = vector.load %arg5[%c0_12, %c0_13] : memref<1x128xf32, #tpu.memory_space<vmem>>, vector<1x128xf32>
      %14 = vector.broadcast %13 : vector<1x128xf32> to vector<256x128xf32>
      %15 = arith.addf %12, %14 : vector<256x128xf32>
      %c0_14 = arith.constant 0 : index
      %c0_15 = arith.constant 0 : index
      %16 = vector.load %arg6[%c0_14, %c0_15] : memref<256x128xf32, #tpu.memory_space<vmem>>, vector<256x128xf32>
      tpu.vector_store %arg6[%c0_14, %c0_15], %15 {strides = array<i32>} : memref<256x128xf32, #tpu.memory_space<vmem>>, vector<256x128xf32>,
    } else {
    }
    return
  }
  func.func @transform_0(%arg0: i32, %arg1: i32, %arg2: i32) -> (i32, i32) {
    %c0_i32 = arith.constant 0 : i32
    return %arg0, %arg2 : i32, i32
  }
  func.func @transform_1(%arg0: i32, %arg1: i32, %arg2: i32) -> (i32, i32) {
    %c0_i32 = arith.constant 0 : i32
    return %arg2, %arg1 : i32, i32
  }
  func.func @transform_2(%arg0: i32, %arg1: i32, %arg2: i32) -> (i32, i32) {
    %c0_i32 = arith.constant 0 : i32
    %c0_i32_0 = arith.constant 0 : i32
    return %c0_i32, %arg1 : i32, i32
  }
  func.func @transform_3(%arg0: i32, %arg1: i32, %arg2: i32) -> (i32, i32) {
    %c0_i32 = arith.constant 0 : i32
    return %arg0, %arg1 : i32, i32
  }
}

module attributes {stable_mosaic.version = 11 : i64} {
  func.func @_bn_apply_kernel(%arg0: i32, %arg1: memref<512x8xf32, #tpu.memory_space<vmem>>, %arg2: memref<1x8xf32, #tpu.memory_space<vmem>>, %arg3: memref<1x8xf32, #tpu.memory_space<vmem>>, %arg4: memref<512x8xf32, #tpu.memory_space<vmem>>) attributes {dimension_semantics = [#tpu.dimension_semantics<parallel>], iteration_bounds = array<i64: 1>, scalar_prefetch = 0 : i64, scratch_operands = 0 : i64, tpu.core_type = #tpu.core_type<tc>, window_params = [{transform_indices = @transform_0, window_bounds = array<i64: 512, 8>}, {pipeline_mode = #tpu.pipeline_mode<synchronous>, transform_indices = @transform_1, window_bounds = array<i64: 1, 8>}, {pipeline_mode = #tpu.pipeline_mode<synchronous>, transform_indices = @transform_2, window_bounds = array<i64: 1, 8>}, {transform_indices = @transform_3, window_bounds = array<i64: 512, 8>}]} {
    %c0 = arith.constant 0 : index
    %c0_0 = arith.constant 0 : index
    %0 = vector.load %arg1[%c0, %c0_0] : memref<512x8xf32, #tpu.memory_space<vmem>>, vector<512x8xf32>
    %c0_1 = arith.constant 0 : index
    %c0_2 = arith.constant 0 : index
    %1 = vector.load %arg2[%c0_1, %c0_2] : memref<1x8xf32, #tpu.memory_space<vmem>>, vector<1x8xf32>
    %2 = vector.broadcast %1 : vector<1x8xf32> to vector<512x8xf32>
    %3 = arith.mulf %0, %2 : vector<512x8xf32>
    %c0_3 = arith.constant 0 : index
    %c0_4 = arith.constant 0 : index
    %4 = vector.load %arg3[%c0_3, %c0_4] : memref<1x8xf32, #tpu.memory_space<vmem>>, vector<1x8xf32>
    %5 = vector.broadcast %4 : vector<1x8xf32> to vector<512x8xf32>
    %6 = arith.addf %3, %5 : vector<512x8xf32>
    %cst = arith.constant 0.000000e+00 : f32
    %7 = vector.broadcast %cst : f32 to vector<512x8xf32>
    %8 = arith.maximumf %6, %7 : vector<512x8xf32>
    %c0_5 = arith.constant 0 : index
    %c0_6 = arith.constant 0 : index
    %9 = vector.load %arg4[%c0_5, %c0_6] : memref<512x8xf32, #tpu.memory_space<vmem>>, vector<512x8xf32>
    tpu.vector_store %arg4[%c0_5, %c0_6], %8 {strides = array<i32>} : memref<512x8xf32, #tpu.memory_space<vmem>>, vector<512x8xf32>,
    return
  }
  func.func @transform_0(%arg0: i32) -> (i32, i32) {
    %c0_i32 = arith.constant 0 : i32
    %c0_i32_0 = arith.constant 0 : i32
    return %arg0, %c0_i32 : i32, i32
  }
  func.func @transform_1(%arg0: i32) -> (i32, i32) {
    %c0_i32 = arith.constant 0 : i32
    %c0_i32_0 = arith.constant 0 : i32
    %c0_i32_1 = arith.constant 0 : i32
    return %c0_i32, %c0_i32_0 : i32, i32
  }
  func.func @transform_2(%arg0: i32) -> (i32, i32) {
    %c0_i32 = arith.constant 0 : i32
    %c0_i32_0 = arith.constant 0 : i32
    %c0_i32_1 = arith.constant 0 : i32
    return %c0_i32, %c0_i32_0 : i32, i32
  }
  func.func @transform_3(%arg0: i32) -> (i32, i32) {
    %c0_i32 = arith.constant 0 : i32
    %c0_i32_0 = arith.constant 0 : i32
    return %arg0, %c0_i32 : i32, i32
  }
}

module attributes {stable_mosaic.version = 11 : i64} {
  func.func @_matmul_bias_kernel(%arg0: i32, %arg1: i32, %arg2: i32, %arg3: memref<128x72xbf16, #tpu.memory_space<vmem>>, %arg4: memref<72x128xbf16, #tpu.memory_space<vmem>>, %arg5: memref<1x128xf32, #tpu.memory_space<vmem>>, %arg6: memref<128x128xf32, #tpu.memory_space<vmem>>, %arg7: memref<128x128xf32, #tpu.memory_space<vmem>>) attributes {dimension_semantics = [#tpu.dimension_semantics<parallel>, #tpu.dimension_semantics<parallel>, #tpu.dimension_semantics<arbitrary>], iteration_bounds = array<i64: 1, 1, 1>, scalar_prefetch = 0 : i64, scratch_operands = 1 : i64, tpu.core_type = #tpu.core_type<tc>, window_params = [{transform_indices = @transform_0, window_bounds = array<i64: 128, 72>}, {transform_indices = @transform_1, window_bounds = array<i64: 72, 128>}, {transform_indices = @transform_2, window_bounds = array<i64: 1, 128>}, {transform_indices = @transform_3, window_bounds = array<i64: 128, 128>}]} {
    %c0_i32 = arith.constant 0 : i32
    %0 = arith.cmpi eq, %arg2, %c0_i32 : i32
    %1 = arith.extui %0 : i1 to i32
    %c0_i32_0 = arith.constant 0 : i32
    %2 = arith.cmpi ne, %1, %c0_i32_0 : i32
    scf.if %2 {
      %cst_10 = arith.constant 0.000000e+00 : f32
      %12 = vector.broadcast %cst_10 : f32 to vector<128x128xf32>
      %c0_11 = arith.constant 0 : index
      %c0_12 = arith.constant 0 : index
      %13 = vector.load %arg7[%c0_11, %c0_12] : memref<128x128xf32, #tpu.memory_space<vmem>>, vector<128x128xf32>
      tpu.vector_store %arg7[%c0_11, %c0_12], %12 {strides = array<i32>} : memref<128x128xf32, #tpu.memory_space<vmem>>, vector<128x128xf32>,
    } else {
    }
    %c0 = arith.constant 0 : index
    %c0_1 = arith.constant 0 : index
    %3 = vector.load %arg7[%c0, %c0_1] : memref<128x128xf32, #tpu.memory_space<vmem>>, vector<128x128xf32>
    %c0_2 = arith.constant 0 : index
    %c0_3 = arith.constant 0 : index
    %4 = vector.load %arg3[%c0_2, %c0_3] : memref<128x72xbf16, #tpu.memory_space<vmem>>, vector<128x72xbf16>
    %c0_4 = arith.constant 0 : index
    %c0_5 = arith.constant 0 : index
    %5 = vector.load %arg4[%c0_4, %c0_5] : memref<72x128xbf16, #tpu.memory_space<vmem>>, vector<72x128xbf16>
    %cst = arith.constant dense<0.000000e+00> : vector<128x128xf32>
    %6 = tpu.matmul %4, %5, %cst {dimension_numbers = #tpu.dot_dimension_numbers<[1], [0], [0], [1], [0, 0, 1, 1], [], []>} : vector<128x72xbf16>, vector<72x128xbf16>, vector<128x128xf32> -> vector<128x128xf32>
    %7 = arith.addf %3, %6 : vector<128x128xf32>
    %c0_6 = arith.constant 0 : index
    %c0_7 = arith.constant 0 : index
    %8 = vector.load %arg7[%c0_6, %c0_7] : memref<128x128xf32, #tpu.memory_space<vmem>>, vector<128x128xf32>
    tpu.vector_store %arg7[%c0_6, %c0_7], %7 {strides = array<i32>} : memref<128x128xf32, #tpu.memory_space<vmem>>, vector<128x128xf32>,
    %c0_i32_8 = arith.constant 0 : i32
    %9 = arith.cmpi eq, %arg2, %c0_i32_8 : i32
    %10 = arith.extui %9 : i1 to i32
    %c0_i32_9 = arith.constant 0 : i32
    %11 = arith.cmpi ne, %10, %c0_i32_9 : i32
    scf.if %11 {
      %c0_10 = arith.constant 0 : index
      %c0_11 = arith.constant 0 : index
      %12 = vector.load %arg7[%c0_10, %c0_11] : memref<128x128xf32, #tpu.memory_space<vmem>>, vector<128x128xf32>
      %c0_12 = arith.constant 0 : index
      %c0_13 = arith.constant 0 : index
      %13 = vector.load %arg5[%c0_12, %c0_13] : memref<1x128xf32, #tpu.memory_space<vmem>>, vector<1x128xf32>
      %14 = vector.broadcast %13 : vector<1x128xf32> to vector<128x128xf32>
      %15 = arith.addf %12, %14 : vector<128x128xf32>
      %c0_14 = arith.constant 0 : index
      %c0_15 = arith.constant 0 : index
      %16 = vector.load %arg6[%c0_14, %c0_15] : memref<128x128xf32, #tpu.memory_space<vmem>>, vector<128x128xf32>
      tpu.vector_store %arg6[%c0_14, %c0_15], %15 {strides = array<i32>} : memref<128x128xf32, #tpu.memory_space<vmem>>, vector<128x128xf32>,
    } else {
    }
    return
  }
  func.func @transform_0(%arg0: i32, %arg1: i32, %arg2: i32) -> (i32, i32) {
    %c0_i32 = arith.constant 0 : i32
    return %arg0, %arg2 : i32, i32
  }
  func.func @transform_1(%arg0: i32, %arg1: i32, %arg2: i32) -> (i32, i32) {
    %c0_i32 = arith.constant 0 : i32
    return %arg2, %arg1 : i32, i32
  }
  func.func @transform_2(%arg0: i32, %arg1: i32, %arg2: i32) -> (i32, i32) {
    %c0_i32 = arith.constant 0 : i32
    %c0_i32_0 = arith.constant 0 : i32
    return %c0_i32, %arg1 : i32, i32
  }
  func.func @transform_3(%arg0: i32, %arg1: i32, %arg2: i32) -> (i32, i32) {
    %c0_i32 = arith.constant 0 : i32
    return %arg0, %arg1 : i32, i32
  }
}

module attributes {stable_mosaic.version = 11 : i64} {
  func.func @_bn_stats_kernel(%arg0: i32, %arg1: memref<128x16xf32, #tpu.memory_space<vmem>>, %arg2: memref<1x16xf32, #tpu.memory_space<vmem>>, %arg3: memref<1x16xf32, #tpu.memory_space<vmem>>) attributes {dimension_semantics = [#tpu.dimension_semantics<arbitrary>], iteration_bounds = array<i64: 1>, scalar_prefetch = 0 : i64, scratch_operands = 0 : i64, tpu.core_type = #tpu.core_type<tc>, window_params = [{transform_indices = @transform_0, window_bounds = array<i64: 128, 16>}, {pipeline_mode = #tpu.pipeline_mode<synchronous>, transform_indices = @transform_1, window_bounds = array<i64: 1, 16>}, {pipeline_mode = #tpu.pipeline_mode<synchronous>, transform_indices = @transform_2, window_bounds = array<i64: 1, 16>}]} {
    %c0_i32 = arith.constant 0 : i32
    %0 = arith.cmpi eq, %arg0, %c0_i32 : i32
    %1 = arith.extui %0 : i1 to i32
    %c0_i32_0 = arith.constant 0 : i32
    %2 = arith.cmpi ne, %1, %c0_i32_0 : i32
    scf.if %2 {
      %cst_11 = arith.constant 0.000000e+00 : f32
      %15 = vector.broadcast %cst_11 : f32 to vector<1x16xf32>
      %c0_12 = arith.constant 0 : index
      %c0_13 = arith.constant 0 : index
      %16 = vector.load %arg2[%c0_12, %c0_13] : memref<1x16xf32, #tpu.memory_space<vmem>>, vector<1x16xf32>
      tpu.vector_store %arg2[%c0_12, %c0_13], %15 {strides = array<i32>} : memref<1x16xf32, #tpu.memory_space<vmem>>, vector<1x16xf32>,
      %cst_14 = arith.constant 0.000000e+00 : f32
      %17 = vector.broadcast %cst_14 : f32 to vector<1x16xf32>
      %c0_15 = arith.constant 0 : index
      %c0_16 = arith.constant 0 : index
      %18 = vector.load %arg3[%c0_15, %c0_16] : memref<1x16xf32, #tpu.memory_space<vmem>>, vector<1x16xf32>
      tpu.vector_store %arg3[%c0_15, %c0_16], %17 {strides = array<i32>} : memref<1x16xf32, #tpu.memory_space<vmem>>, vector<1x16xf32>,
    } else {
    }
    %c0 = arith.constant 0 : index
    %c0_1 = arith.constant 0 : index
    %3 = vector.load %arg1[%c0, %c0_1] : memref<128x16xf32, #tpu.memory_space<vmem>>, vector<128x16xf32>
    %c0_2 = arith.constant 0 : index
    %c0_3 = arith.constant 0 : index
    %4 = vector.load %arg2[%c0_2, %c0_3] : memref<1x16xf32, #tpu.memory_space<vmem>>, vector<1x16xf32>
    %cst = arith.constant dense<0.000000e+00> : vector<16xf32>
    %5 = vector.multi_reduction <add>, %3, %cst [0] : vector<128x16xf32> to vector<16xf32>
    %6 = vector.shape_cast %5 : vector<16xf32> to vector<1x16xf32>
    %7 = arith.addf %4, %6 : vector<1x16xf32>
    %c0_4 = arith.constant 0 : index
    %c0_5 = arith.constant 0 : index
    %8 = vector.load %arg2[%c0_4, %c0_5] : memref<1x16xf32, #tpu.memory_space<vmem>>, vector<1x16xf32>
    tpu.vector_store %arg2[%c0_4, %c0_5], %7 {strides = array<i32>} : memref<1x16xf32, #tpu.memory_space<vmem>>, vector<1x16xf32>,
    %c0_6 = arith.constant 0 : index
    %c0_7 = arith.constant 0 : index
    %9 = vector.load %arg3[%c0_6, %c0_7] : memref<1x16xf32, #tpu.memory_space<vmem>>, vector<1x16xf32>
    %10 = arith.mulf %3, %3 : vector<128x16xf32>
    %cst_8 = arith.constant dense<0.000000e+00> : vector<16xf32>
    %11 = vector.multi_reduction <add>, %10, %cst_8 [0] : vector<128x16xf32> to vector<16xf32>
    %12 = vector.shape_cast %11 : vector<16xf32> to vector<1x16xf32>
    %13 = arith.addf %9, %12 : vector<1x16xf32>
    %c0_9 = arith.constant 0 : index
    %c0_10 = arith.constant 0 : index
    %14 = vector.load %arg3[%c0_9, %c0_10] : memref<1x16xf32, #tpu.memory_space<vmem>>, vector<1x16xf32>
    tpu.vector_store %arg3[%c0_9, %c0_10], %13 {strides = array<i32>} : memref<1x16xf32, #tpu.memory_space<vmem>>, vector<1x16xf32>,
    return
  }
  func.func @transform_0(%arg0: i32) -> (i32, i32) {
    %c0_i32 = arith.constant 0 : i32
    %c0_i32_0 = arith.constant 0 : i32
    return %arg0, %c0_i32 : i32, i32
  }
  func.func @transform_1(%arg0: i32) -> (i32, i32) {
    %c0_i32 = arith.constant 0 : i32
    %c0_i32_0 = arith.constant 0 : i32
    %c0_i32_1 = arith.constant 0 : i32
    return %c0_i32, %c0_i32_0 : i32, i32
  }
  func.func @transform_2(%arg0: i32) -> (i32, i32) {
    %c0_i32 = arith.constant 0 : i32
    %c0_i32_0 = arith.constant 0 : i32
    %c0_i32_1 = arith.constant 0 : i32
    return %c0_i32, %c0_i32_0 : i32, i32
  }
}

module attributes {stable_mosaic.version = 11 : i64} {
  func.func @_bn_apply_kernel(%arg0: i32, %arg1: memref<128x16xf32, #tpu.memory_space<vmem>>, %arg2: memref<1x16xf32, #tpu.memory_space<vmem>>, %arg3: memref<1x16xf32, #tpu.memory_space<vmem>>, %arg4: memref<128x16xf32, #tpu.memory_space<vmem>>) attributes {dimension_semantics = [#tpu.dimension_semantics<parallel>], iteration_bounds = array<i64: 1>, scalar_prefetch = 0 : i64, scratch_operands = 0 : i64, tpu.core_type = #tpu.core_type<tc>, window_params = [{transform_indices = @transform_0, window_bounds = array<i64: 128, 16>}, {pipeline_mode = #tpu.pipeline_mode<synchronous>, transform_indices = @transform_1, window_bounds = array<i64: 1, 16>}, {pipeline_mode = #tpu.pipeline_mode<synchronous>, transform_indices = @transform_2, window_bounds = array<i64: 1, 16>}, {transform_indices = @transform_3, window_bounds = array<i64: 128, 16>}]} {
    %c0 = arith.constant 0 : index
    %c0_0 = arith.constant 0 : index
    %0 = vector.load %arg1[%c0, %c0_0] : memref<128x16xf32, #tpu.memory_space<vmem>>, vector<128x16xf32>
    %c0_1 = arith.constant 0 : index
    %c0_2 = arith.constant 0 : index
    %1 = vector.load %arg2[%c0_1, %c0_2] : memref<1x16xf32, #tpu.memory_space<vmem>>, vector<1x16xf32>
    %2 = vector.broadcast %1 : vector<1x16xf32> to vector<128x16xf32>
    %3 = arith.mulf %0, %2 : vector<128x16xf32>
    %c0_3 = arith.constant 0 : index
    %c0_4 = arith.constant 0 : index
    %4 = vector.load %arg3[%c0_3, %c0_4] : memref<1x16xf32, #tpu.memory_space<vmem>>, vector<1x16xf32>
    %5 = vector.broadcast %4 : vector<1x16xf32> to vector<128x16xf32>
    %6 = arith.addf %3, %5 : vector<128x16xf32>
    %cst = arith.constant 0.000000e+00 : f32
    %7 = vector.broadcast %cst : f32 to vector<128x16xf32>
    %8 = arith.maximumf %6, %7 : vector<128x16xf32>
    %c0_5 = arith.constant 0 : index
    %c0_6 = arith.constant 0 : index
    %9 = vector.load %arg4[%c0_5, %c0_6] : memref<128x16xf32, #tpu.memory_space<vmem>>, vector<128x16xf32>
    tpu.vector_store %arg4[%c0_5, %c0_6], %8 {strides = array<i32>} : memref<128x16xf32, #tpu.memory_space<vmem>>, vector<128x16xf32>,
    return
  }
  func.func @transform_0(%arg0: i32) -> (i32, i32) {
    %c0_i32 = arith.constant 0 : i32
    %c0_i32_0 = arith.constant 0 : i32
    return %arg0, %c0_i32 : i32, i32
  }
  func.func @transform_1(%arg0: i32) -> (i32, i32) {
    %c0_i32 = arith.constant 0 : i32
    %c0_i32_0 = arith.constant 0 : i32
    %c0_i32_1 = arith.constant 0 : i32
    return %c0_i32, %c0_i32_0 : i32, i32
  }
  func.func @transform_2(%arg0: i32) -> (i32, i32) {
    %c0_i32 = arith.constant 0 : i32
    %c0_i32_0 = arith.constant 0 : i32
    %c0_i32_1 = arith.constant 0 : i32
    return %c0_i32, %c0_i32_0 : i32, i32
  }
  func.func @transform_3(%arg0: i32) -> (i32, i32) {
    %c0_i32 = arith.constant 0 : i32
    %c0_i32_0 = arith.constant 0 : i32
    return %arg0, %c0_i32 : i32, i32
  }
}

module attributes {stable_mosaic.version = 11 : i64} {
  func.func @_matmul_bias_kernel(%arg0: i32, %arg1: i32, %arg2: i32, %arg3: memref<32x144xbf16, #tpu.memory_space<vmem>>, %arg4: memref<144x128xbf16, #tpu.memory_space<vmem>>, %arg5: memref<1x128xf32, #tpu.memory_space<vmem>>, %arg6: memref<32x128xf32, #tpu.memory_space<vmem>>, %arg7: memref<32x128xf32, #tpu.memory_space<vmem>>) attributes {dimension_semantics = [#tpu.dimension_semantics<parallel>, #tpu.dimension_semantics<parallel>, #tpu.dimension_semantics<arbitrary>], iteration_bounds = array<i64: 1, 1, 1>, scalar_prefetch = 0 : i64, scratch_operands = 1 : i64, tpu.core_type = #tpu.core_type<tc>, window_params = [{transform_indices = @transform_0, window_bounds = array<i64: 32, 144>}, {transform_indices = @transform_1, window_bounds = array<i64: 144, 128>}, {transform_indices = @transform_2, window_bounds = array<i64: 1, 128>}, {transform_indices = @transform_3, window_bounds = array<i64: 32, 128>}]} {
    %c0_i32 = arith.constant 0 : i32
    %0 = arith.cmpi eq, %arg2, %c0_i32 : i32
    %1 = arith.extui %0 : i1 to i32
    %c0_i32_0 = arith.constant 0 : i32
    %2 = arith.cmpi ne, %1, %c0_i32_0 : i32
    scf.if %2 {
      %cst_10 = arith.constant 0.000000e+00 : f32
      %12 = vector.broadcast %cst_10 : f32 to vector<32x128xf32>
      %c0_11 = arith.constant 0 : index
      %c0_12 = arith.constant 0 : index
      %13 = vector.load %arg7[%c0_11, %c0_12] : memref<32x128xf32, #tpu.memory_space<vmem>>, vector<32x128xf32>
      tpu.vector_store %arg7[%c0_11, %c0_12], %12 {strides = array<i32>} : memref<32x128xf32, #tpu.memory_space<vmem>>, vector<32x128xf32>,
    } else {
    }
    %c0 = arith.constant 0 : index
    %c0_1 = arith.constant 0 : index
    %3 = vector.load %arg7[%c0, %c0_1] : memref<32x128xf32, #tpu.memory_space<vmem>>, vector<32x128xf32>
    %c0_2 = arith.constant 0 : index
    %c0_3 = arith.constant 0 : index
    %4 = vector.load %arg3[%c0_2, %c0_3] : memref<32x144xbf16, #tpu.memory_space<vmem>>, vector<32x144xbf16>
    %c0_4 = arith.constant 0 : index
    %c0_5 = arith.constant 0 : index
    %5 = vector.load %arg4[%c0_4, %c0_5] : memref<144x128xbf16, #tpu.memory_space<vmem>>, vector<144x128xbf16>
    %cst = arith.constant dense<0.000000e+00> : vector<32x128xf32>
    %6 = tpu.matmul %4, %5, %cst {dimension_numbers = #tpu.dot_dimension_numbers<[1], [0], [0], [1], [0, 0, 1, 1], [], []>} : vector<32x144xbf16>, vector<144x128xbf16>, vector<32x128xf32> -> vector<32x128xf32>
    %7 = arith.addf %3, %6 : vector<32x128xf32>
    %c0_6 = arith.constant 0 : index
    %c0_7 = arith.constant 0 : index
    %8 = vector.load %arg7[%c0_6, %c0_7] : memref<32x128xf32, #tpu.memory_space<vmem>>, vector<32x128xf32>
    tpu.vector_store %arg7[%c0_6, %c0_7], %7 {strides = array<i32>} : memref<32x128xf32, #tpu.memory_space<vmem>>, vector<32x128xf32>,
    %c0_i32_8 = arith.constant 0 : i32
    %9 = arith.cmpi eq, %arg2, %c0_i32_8 : i32
    %10 = arith.extui %9 : i1 to i32
    %c0_i32_9 = arith.constant 0 : i32
    %11 = arith.cmpi ne, %10, %c0_i32_9 : i32
    scf.if %11 {
      %c0_10 = arith.constant 0 : index
      %c0_11 = arith.constant 0 : index
      %12 = vector.load %arg7[%c0_10, %c0_11] : memref<32x128xf32, #tpu.memory_space<vmem>>, vector<32x128xf32>
      %c0_12 = arith.constant 0 : index
      %c0_13 = arith.constant 0 : index
      %13 = vector.load %arg5[%c0_12, %c0_13] : memref<1x128xf32, #tpu.memory_space<vmem>>, vector<1x128xf32>
      %14 = vector.broadcast %13 : vector<1x128xf32> to vector<32x128xf32>
      %15 = arith.addf %12, %14 : vector<32x128xf32>
      %c0_14 = arith.constant 0 : index
      %c0_15 = arith.constant 0 : index
      %16 = vector.load %arg6[%c0_14, %c0_15] : memref<32x128xf32, #tpu.memory_space<vmem>>, vector<32x128xf32>
      tpu.vector_store %arg6[%c0_14, %c0_15], %15 {strides = array<i32>} : memref<32x128xf32, #tpu.memory_space<vmem>>, vector<32x128xf32>,
    } else {
    }
    return
  }
  func.func @transform_0(%arg0: i32, %arg1: i32, %arg2: i32) -> (i32, i32) {
    %c0_i32 = arith.constant 0 : i32
    return %arg0, %arg2 : i32, i32
  }
  func.func @transform_1(%arg0: i32, %arg1: i32, %arg2: i32) -> (i32, i32) {
    %c0_i32 = arith.constant 0 : i32
    return %arg2, %arg1 : i32, i32
  }
  func.func @transform_2(%arg0: i32, %arg1: i32, %arg2: i32) -> (i32, i32) {
    %c0_i32 = arith.constant 0 : i32
    %c0_i32_0 = arith.constant 0 : i32
    return %c0_i32, %arg1 : i32, i32
  }
  func.func @transform_3(%arg0: i32, %arg1: i32, %arg2: i32) -> (i32, i32) {
    %c0_i32 = arith.constant 0 : i32
    return %arg0, %arg1 : i32, i32
  }
}

module attributes {stable_mosaic.version = 11 : i64} {
  func.func @_bn_stats_kernel(%arg0: i32, %arg1: memref<32x32xf32, #tpu.memory_space<vmem>>, %arg2: memref<1x32xf32, #tpu.memory_space<vmem>>, %arg3: memref<1x32xf32, #tpu.memory_space<vmem>>) attributes {dimension_semantics = [#tpu.dimension_semantics<arbitrary>], iteration_bounds = array<i64: 1>, scalar_prefetch = 0 : i64, scratch_operands = 0 : i64, tpu.core_type = #tpu.core_type<tc>, window_params = [{transform_indices = @transform_0, window_bounds = array<i64: 32, 32>}, {pipeline_mode = #tpu.pipeline_mode<synchronous>, transform_indices = @transform_1, window_bounds = array<i64: 1, 32>}, {pipeline_mode = #tpu.pipeline_mode<synchronous>, transform_indices = @transform_2, window_bounds = array<i64: 1, 32>}]} {
    %c0_i32 = arith.constant 0 : i32
    %0 = arith.cmpi eq, %arg0, %c0_i32 : i32
    %1 = arith.extui %0 : i1 to i32
    %c0_i32_0 = arith.constant 0 : i32
    %2 = arith.cmpi ne, %1, %c0_i32_0 : i32
    scf.if %2 {
      %cst_11 = arith.constant 0.000000e+00 : f32
      %15 = vector.broadcast %cst_11 : f32 to vector<1x32xf32>
      %c0_12 = arith.constant 0 : index
      %c0_13 = arith.constant 0 : index
      %16 = vector.load %arg2[%c0_12, %c0_13] : memref<1x32xf32, #tpu.memory_space<vmem>>, vector<1x32xf32>
      tpu.vector_store %arg2[%c0_12, %c0_13], %15 {strides = array<i32>} : memref<1x32xf32, #tpu.memory_space<vmem>>, vector<1x32xf32>,
      %cst_14 = arith.constant 0.000000e+00 : f32
      %17 = vector.broadcast %cst_14 : f32 to vector<1x32xf32>
      %c0_15 = arith.constant 0 : index
      %c0_16 = arith.constant 0 : index
      %18 = vector.load %arg3[%c0_15, %c0_16] : memref<1x32xf32, #tpu.memory_space<vmem>>, vector<1x32xf32>
      tpu.vector_store %arg3[%c0_15, %c0_16], %17 {strides = array<i32>} : memref<1x32xf32, #tpu.memory_space<vmem>>, vector<1x32xf32>,
    } else {
    }
    %c0 = arith.constant 0 : index
    %c0_1 = arith.constant 0 : index
    %3 = vector.load %arg1[%c0, %c0_1] : memref<32x32xf32, #tpu.memory_space<vmem>>, vector<32x32xf32>
    %c0_2 = arith.constant 0 : index
    %c0_3 = arith.constant 0 : index
    %4 = vector.load %arg2[%c0_2, %c0_3] : memref<1x32xf32, #tpu.memory_space<vmem>>, vector<1x32xf32>
    %cst = arith.constant dense<0.000000e+00> : vector<32xf32>
    %5 = vector.multi_reduction <add>, %3, %cst [0] : vector<32x32xf32> to vector<32xf32>
    %6 = vector.shape_cast %5 : vector<32xf32> to vector<1x32xf32>
    %7 = arith.addf %4, %6 : vector<1x32xf32>
    %c0_4 = arith.constant 0 : index
    %c0_5 = arith.constant 0 : index
    %8 = vector.load %arg2[%c0_4, %c0_5] : memref<1x32xf32, #tpu.memory_space<vmem>>, vector<1x32xf32>
    tpu.vector_store %arg2[%c0_4, %c0_5], %7 {strides = array<i32>} : memref<1x32xf32, #tpu.memory_space<vmem>>, vector<1x32xf32>,
    %c0_6 = arith.constant 0 : index
    %c0_7 = arith.constant 0 : index
    %9 = vector.load %arg3[%c0_6, %c0_7] : memref<1x32xf32, #tpu.memory_space<vmem>>, vector<1x32xf32>
    %10 = arith.mulf %3, %3 : vector<32x32xf32>
    %cst_8 = arith.constant dense<0.000000e+00> : vector<32xf32>
    %11 = vector.multi_reduction <add>, %10, %cst_8 [0] : vector<32x32xf32> to vector<32xf32>
    %12 = vector.shape_cast %11 : vector<32xf32> to vector<1x32xf32>
    %13 = arith.addf %9, %12 : vector<1x32xf32>
    %c0_9 = arith.constant 0 : index
    %c0_10 = arith.constant 0 : index
    %14 = vector.load %arg3[%c0_9, %c0_10] : memref<1x32xf32, #tpu.memory_space<vmem>>, vector<1x32xf32>
    tpu.vector_store %arg3[%c0_9, %c0_10], %13 {strides = array<i32>} : memref<1x32xf32, #tpu.memory_space<vmem>>, vector<1x32xf32>,
    return
  }
  func.func @transform_0(%arg0: i32) -> (i32, i32) {
    %c0_i32 = arith.constant 0 : i32
    %c0_i32_0 = arith.constant 0 : i32
    return %arg0, %c0_i32 : i32, i32
  }
  func.func @transform_1(%arg0: i32) -> (i32, i32) {
    %c0_i32 = arith.constant 0 : i32
    %c0_i32_0 = arith.constant 0 : i32
    %c0_i32_1 = arith.constant 0 : i32
    return %c0_i32, %c0_i32_0 : i32, i32
  }
  func.func @transform_2(%arg0: i32) -> (i32, i32) {
    %c0_i32 = arith.constant 0 : i32
    %c0_i32_0 = arith.constant 0 : i32
    %c0_i32_1 = arith.constant 0 : i32
    return %c0_i32, %c0_i32_0 : i32, i32
  }
}

module attributes {stable_mosaic.version = 11 : i64} {
  func.func @_bn_apply_kernel(%arg0: i32, %arg1: memref<32x32xf32, #tpu.memory_space<vmem>>, %arg2: memref<1x32xf32, #tpu.memory_space<vmem>>, %arg3: memref<1x32xf32, #tpu.memory_space<vmem>>, %arg4: memref<32x32xf32, #tpu.memory_space<vmem>>) attributes {dimension_semantics = [#tpu.dimension_semantics<parallel>], iteration_bounds = array<i64: 1>, scalar_prefetch = 0 : i64, scratch_operands = 0 : i64, tpu.core_type = #tpu.core_type<tc>, window_params = [{transform_indices = @transform_0, window_bounds = array<i64: 32, 32>}, {pipeline_mode = #tpu.pipeline_mode<synchronous>, transform_indices = @transform_1, window_bounds = array<i64: 1, 32>}, {pipeline_mode = #tpu.pipeline_mode<synchronous>, transform_indices = @transform_2, window_bounds = array<i64: 1, 32>}, {transform_indices = @transform_3, window_bounds = array<i64: 32, 32>}]} {
    %c0 = arith.constant 0 : index
    %c0_0 = arith.constant 0 : index
    %0 = vector.load %arg1[%c0, %c0_0] : memref<32x32xf32, #tpu.memory_space<vmem>>, vector<32x32xf32>
    %c0_1 = arith.constant 0 : index
    %c0_2 = arith.constant 0 : index
    %1 = vector.load %arg2[%c0_1, %c0_2] : memref<1x32xf32, #tpu.memory_space<vmem>>, vector<1x32xf32>
    %2 = vector.broadcast %1 : vector<1x32xf32> to vector<32x32xf32>
    %3 = arith.mulf %0, %2 : vector<32x32xf32>
    %c0_3 = arith.constant 0 : index
    %c0_4 = arith.constant 0 : index
    %4 = vector.load %arg3[%c0_3, %c0_4] : memref<1x32xf32, #tpu.memory_space<vmem>>, vector<1x32xf32>
    %5 = vector.broadcast %4 : vector<1x32xf32> to vector<32x32xf32>
    %6 = arith.addf %3, %5 : vector<32x32xf32>
    %cst = arith.constant 0.000000e+00 : f32
    %7 = vector.broadcast %cst : f32 to vector<32x32xf32>
    %8 = arith.maximumf %6, %7 : vector<32x32xf32>
    %c0_5 = arith.constant 0 : index
    %c0_6 = arith.constant 0 : index
    %9 = vector.load %arg4[%c0_5, %c0_6] : memref<32x32xf32, #tpu.memory_space<vmem>>, vector<32x32xf32>
    tpu.vector_store %arg4[%c0_5, %c0_6], %8 {strides = array<i32>} : memref<32x32xf32, #tpu.memory_space<vmem>>, vector<32x32xf32>,
    return
  }
  func.func @transform_0(%arg0: i32) -> (i32, i32) {
    %c0_i32 = arith.constant 0 : i32
    %c0_i32_0 = arith.constant 0 : i32
    return %arg0, %c0_i32 : i32, i32
  }
  func.func @transform_1(%arg0: i32) -> (i32, i32) {
    %c0_i32 = arith.constant 0 : i32
    %c0_i32_0 = arith.constant 0 : i32
    %c0_i32_1 = arith.constant 0 : i32
    return %c0_i32, %c0_i32_0 : i32, i32
  }
  func.func @transform_2(%arg0: i32) -> (i32, i32) {
    %c0_i32 = arith.constant 0 : i32
    %c0_i32_0 = arith.constant 0 : i32
    %c0_i32_1 = arith.constant 0 : i32
    return %c0_i32, %c0_i32_0 : i32, i32
  }
  func.func @transform_3(%arg0: i32) -> (i32, i32) {
    %c0_i32 = arith.constant 0 : i32
    %c0_i32_0 = arith.constant 0 : i32
    return %arg0, %c0_i32 : i32, i32
  }
}

module attributes {stable_mosaic.version = 11 : i64} {
  func.func @_matmul_bias_kernel(%arg0: i32, %arg1: i32, %arg2: i32, %arg3: memref<32x288xbf16, #tpu.memory_space<vmem>>, %arg4: memref<288x128xbf16, #tpu.memory_space<vmem>>, %arg5: memref<1x128xf32, #tpu.memory_space<vmem>>, %arg6: memref<32x128xf32, #tpu.memory_space<vmem>>, %arg7: memref<32x128xf32, #tpu.memory_space<vmem>>) attributes {dimension_semantics = [#tpu.dimension_semantics<parallel>, #tpu.dimension_semantics<parallel>, #tpu.dimension_semantics<arbitrary>], iteration_bounds = array<i64: 1, 1, 1>, scalar_prefetch = 0 : i64, scratch_operands = 1 : i64, tpu.core_type = #tpu.core_type<tc>, window_params = [{transform_indices = @transform_0, window_bounds = array<i64: 32, 288>}, {transform_indices = @transform_1, window_bounds = array<i64: 288, 128>}, {transform_indices = @transform_2, window_bounds = array<i64: 1, 128>}, {transform_indices = @transform_3, window_bounds = array<i64: 32, 128>}]} {
    %c0_i32 = arith.constant 0 : i32
    %0 = arith.cmpi eq, %arg2, %c0_i32 : i32
    %1 = arith.extui %0 : i1 to i32
    %c0_i32_0 = arith.constant 0 : i32
    %2 = arith.cmpi ne, %1, %c0_i32_0 : i32
    scf.if %2 {
      %cst_10 = arith.constant 0.000000e+00 : f32
      %12 = vector.broadcast %cst_10 : f32 to vector<32x128xf32>
      %c0_11 = arith.constant 0 : index
      %c0_12 = arith.constant 0 : index
      %13 = vector.load %arg7[%c0_11, %c0_12] : memref<32x128xf32, #tpu.memory_space<vmem>>, vector<32x128xf32>
      tpu.vector_store %arg7[%c0_11, %c0_12], %12 {strides = array<i32>} : memref<32x128xf32, #tpu.memory_space<vmem>>, vector<32x128xf32>,
    } else {
    }
    %c0 = arith.constant 0 : index
    %c0_1 = arith.constant 0 : index
    %3 = vector.load %arg7[%c0, %c0_1] : memref<32x128xf32, #tpu.memory_space<vmem>>, vector<32x128xf32>
    %c0_2 = arith.constant 0 : index
    %c0_3 = arith.constant 0 : index
    %4 = vector.load %arg3[%c0_2, %c0_3] : memref<32x288xbf16, #tpu.memory_space<vmem>>, vector<32x288xbf16>
    %c0_4 = arith.constant 0 : index
    %c0_5 = arith.constant 0 : index
    %5 = vector.load %arg4[%c0_4, %c0_5] : memref<288x128xbf16, #tpu.memory_space<vmem>>, vector<288x128xbf16>
    %cst = arith.constant dense<0.000000e+00> : vector<32x128xf32>
    %6 = tpu.matmul %4, %5, %cst {dimension_numbers = #tpu.dot_dimension_numbers<[1], [0], [0], [1], [0, 0, 1, 1], [], []>} : vector<32x288xbf16>, vector<288x128xbf16>, vector<32x128xf32> -> vector<32x128xf32>
    %7 = arith.addf %3, %6 : vector<32x128xf32>
    %c0_6 = arith.constant 0 : index
    %c0_7 = arith.constant 0 : index
    %8 = vector.load %arg7[%c0_6, %c0_7] : memref<32x128xf32, #tpu.memory_space<vmem>>, vector<32x128xf32>
    tpu.vector_store %arg7[%c0_6, %c0_7], %7 {strides = array<i32>} : memref<32x128xf32, #tpu.memory_space<vmem>>, vector<32x128xf32>,
    %c0_i32_8 = arith.constant 0 : i32
    %9 = arith.cmpi eq, %arg2, %c0_i32_8 : i32
    %10 = arith.extui %9 : i1 to i32
    %c0_i32_9 = arith.constant 0 : i32
    %11 = arith.cmpi ne, %10, %c0_i32_9 : i32
    scf.if %11 {
      %c0_10 = arith.constant 0 : index
      %c0_11 = arith.constant 0 : index
      %12 = vector.load %arg7[%c0_10, %c0_11] : memref<32x128xf32, #tpu.memory_space<vmem>>, vector<32x128xf32>
      %c0_12 = arith.constant 0 : index
      %c0_13 = arith.constant 0 : index
      %13 = vector.load %arg5[%c0_12, %c0_13] : memref<1x128xf32, #tpu.memory_space<vmem>>, vector<1x128xf32>
      %14 = vector.broadcast %13 : vector<1x128xf32> to vector<32x128xf32>
      %15 = arith.addf %12, %14 : vector<32x128xf32>
      %c0_14 = arith.constant 0 : index
      %c0_15 = arith.constant 0 : index
      %16 = vector.load %arg6[%c0_14, %c0_15] : memref<32x128xf32, #tpu.memory_space<vmem>>, vector<32x128xf32>
      tpu.vector_store %arg6[%c0_14, %c0_15], %15 {strides = array<i32>} : memref<32x128xf32, #tpu.memory_space<vmem>>, vector<32x128xf32>,
    } else {
    }
    return
  }
  func.func @transform_0(%arg0: i32, %arg1: i32, %arg2: i32) -> (i32, i32) {
    %c0_i32 = arith.constant 0 : i32
    return %arg0, %arg2 : i32, i32
  }
  func.func @transform_1(%arg0: i32, %arg1: i32, %arg2: i32) -> (i32, i32) {
    %c0_i32 = arith.constant 0 : i32
    return %arg2, %arg1 : i32, i32
  }
  func.func @transform_2(%arg0: i32, %arg1: i32, %arg2: i32) -> (i32, i32) {
    %c0_i32 = arith.constant 0 : i32
    %c0_i32_0 = arith.constant 0 : i32
    return %c0_i32, %arg1 : i32, i32
  }
  func.func @transform_3(%arg0: i32, %arg1: i32, %arg2: i32) -> (i32, i32) {
    %c0_i32 = arith.constant 0 : i32
    return %arg0, %arg1 : i32, i32
  }
}

module attributes {stable_mosaic.version = 11 : i64} {
  func.func @_bn_apply_kernel(%arg0: i32, %arg1: memref<32x32xf32, #tpu.memory_space<vmem>>, %arg2: memref<1x32xf32, #tpu.memory_space<vmem>>, %arg3: memref<1x32xf32, #tpu.memory_space<vmem>>, %arg4: memref<32x32xf32, #tpu.memory_space<vmem>>, %arg5: memref<32x32xf32, #tpu.memory_space<vmem>>) attributes {dimension_semantics = [#tpu.dimension_semantics<parallel>], iteration_bounds = array<i64: 1>, scalar_prefetch = 0 : i64, scratch_operands = 0 : i64, tpu.core_type = #tpu.core_type<tc>, window_params = [{transform_indices = @transform_0, window_bounds = array<i64: 32, 32>}, {pipeline_mode = #tpu.pipeline_mode<synchronous>, transform_indices = @transform_1, window_bounds = array<i64: 1, 32>}, {pipeline_mode = #tpu.pipeline_mode<synchronous>, transform_indices = @transform_2, window_bounds = array<i64: 1, 32>}, {transform_indices = @transform_3, window_bounds = array<i64: 32, 32>}, {transform_indices = @transform_4, window_bounds = array<i64: 32, 32>}]} {
    %c0 = arith.constant 0 : index
    %c0_0 = arith.constant 0 : index
    %0 = vector.load %arg1[%c0, %c0_0] : memref<32x32xf32, #tpu.memory_space<vmem>>, vector<32x32xf32>
    %c0_1 = arith.constant 0 : index
    %c0_2 = arith.constant 0 : index
    %1 = vector.load %arg2[%c0_1, %c0_2] : memref<1x32xf32, #tpu.memory_space<vmem>>, vector<1x32xf32>
    %2 = vector.broadcast %1 : vector<1x32xf32> to vector<32x32xf32>
    %3 = arith.mulf %0, %2 : vector<32x32xf32>
    %c0_3 = arith.constant 0 : index
    %c0_4 = arith.constant 0 : index
    %4 = vector.load %arg3[%c0_3, %c0_4] : memref<1x32xf32, #tpu.memory_space<vmem>>, vector<1x32xf32>
    %5 = vector.broadcast %4 : vector<1x32xf32> to vector<32x32xf32>
    %6 = arith.addf %3, %5 : vector<32x32xf32>
    %c0_5 = arith.constant 0 : index
    %c0_6 = arith.constant 0 : index
    %7 = vector.load %arg4[%c0_5, %c0_6] : memref<32x32xf32, #tpu.memory_space<vmem>>, vector<32x32xf32>
    %8 = arith.addf %6, %7 : vector<32x32xf32>
    %c0_7 = arith.constant 0 : index
    %c0_8 = arith.constant 0 : index
    %9 = vector.load %arg5[%c0_7, %c0_8] : memref<32x32xf32, #tpu.memory_space<vmem>>, vector<32x32xf32>
    tpu.vector_store %arg5[%c0_7, %c0_8], %8 {strides = array<i32>} : memref<32x32xf32, #tpu.memory_space<vmem>>, vector<32x32xf32>,
    return
  }
  func.func @transform_0(%arg0: i32) -> (i32, i32) {
    %c0_i32 = arith.constant 0 : i32
    %c0_i32_0 = arith.constant 0 : i32
    return %arg0, %c0_i32 : i32, i32
  }
  func.func @transform_1(%arg0: i32) -> (i32, i32) {
    %c0_i32 = arith.constant 0 : i32
    %c0_i32_0 = arith.constant 0 : i32
    %c0_i32_1 = arith.constant 0 : i32
    return %c0_i32, %c0_i32_0 : i32, i32
  }
  func.func @transform_2(%arg0: i32) -> (i32, i32) {
    %c0_i32 = arith.constant 0 : i32
    %c0_i32_0 = arith.constant 0 : i32
    %c0_i32_1 = arith.constant 0 : i32
    return %c0_i32, %c0_i32_0 : i32, i32
  }
  func.func @transform_3(%arg0: i32) -> (i32, i32) {
    %c0_i32 = arith.constant 0 : i32
    %c0_i32_0 = arith.constant 0 : i32
    return %arg0, %c0_i32 : i32, i32
  }
  func.func @transform_4(%arg0: i32) -> (i32, i32) {
    %c0_i32 = arith.constant 0 : i32
    %c0_i32_0 = arith.constant 0 : i32
    return %arg0, %c0_i32 : i32, i32
  }
}

module attributes {stable_mosaic.version = 11 : i64} {
  func.func @_matmul_bias_kernel(%arg0: i32, %arg1: i32, %arg2: i32, %arg3: memref<32x32xbf16, #tpu.memory_space<vmem>>, %arg4: memref<32x128xbf16, #tpu.memory_space<vmem>>, %arg5: memref<1x128xf32, #tpu.memory_space<vmem>>, %arg6: memref<32x128xf32, #tpu.memory_space<vmem>>, %arg7: memref<32x128xf32, #tpu.memory_space<vmem>>) attributes {dimension_semantics = [#tpu.dimension_semantics<parallel>, #tpu.dimension_semantics<parallel>, #tpu.dimension_semantics<arbitrary>], iteration_bounds = array<i64: 1, 1, 1>, scalar_prefetch = 0 : i64, scratch_operands = 1 : i64, tpu.core_type = #tpu.core_type<tc>, window_params = [{transform_indices = @transform_0, window_bounds = array<i64: 32, 32>}, {transform_indices = @transform_1, window_bounds = array<i64: 32, 128>}, {transform_indices = @transform_2, window_bounds = array<i64: 1, 128>}, {transform_indices = @transform_3, window_bounds = array<i64: 32, 128>}]} {
    %c0_i32 = arith.constant 0 : i32
    %0 = arith.cmpi eq, %arg2, %c0_i32 : i32
    %1 = arith.extui %0 : i1 to i32
    %c0_i32_0 = arith.constant 0 : i32
    %2 = arith.cmpi ne, %1, %c0_i32_0 : i32
    scf.if %2 {
      %cst_10 = arith.constant 0.000000e+00 : f32
      %12 = vector.broadcast %cst_10 : f32 to vector<32x128xf32>
      %c0_11 = arith.constant 0 : index
      %c0_12 = arith.constant 0 : index
      %13 = vector.load %arg7[%c0_11, %c0_12] : memref<32x128xf32, #tpu.memory_space<vmem>>, vector<32x128xf32>
      tpu.vector_store %arg7[%c0_11, %c0_12], %12 {strides = array<i32>} : memref<32x128xf32, #tpu.memory_space<vmem>>, vector<32x128xf32>,
    } else {
    }
    %c0 = arith.constant 0 : index
    %c0_1 = arith.constant 0 : index
    %3 = vector.load %arg7[%c0, %c0_1] : memref<32x128xf32, #tpu.memory_space<vmem>>, vector<32x128xf32>
    %c0_2 = arith.constant 0 : index
    %c0_3 = arith.constant 0 : index
    %4 = vector.load %arg3[%c0_2, %c0_3] : memref<32x32xbf16, #tpu.memory_space<vmem>>, vector<32x32xbf16>
    %c0_4 = arith.constant 0 : index
    %c0_5 = arith.constant 0 : index
    %5 = vector.load %arg4[%c0_4, %c0_5] : memref<32x128xbf16, #tpu.memory_space<vmem>>, vector<32x128xbf16>
    %cst = arith.constant dense<0.000000e+00> : vector<32x128xf32>
    %6 = tpu.matmul %4, %5, %cst {dimension_numbers = #tpu.dot_dimension_numbers<[1], [0], [0], [1], [0, 0, 1, 1], [], []>} : vector<32x32xbf16>, vector<32x128xbf16>, vector<32x128xf32> -> vector<32x128xf32>
    %7 = arith.addf %3, %6 : vector<32x128xf32>
    %c0_6 = arith.constant 0 : index
    %c0_7 = arith.constant 0 : index
    %8 = vector.load %arg7[%c0_6, %c0_7] : memref<32x128xf32, #tpu.memory_space<vmem>>, vector<32x128xf32>
    tpu.vector_store %arg7[%c0_6, %c0_7], %7 {strides = array<i32>} : memref<32x128xf32, #tpu.memory_space<vmem>>, vector<32x128xf32>,
    %c0_i32_8 = arith.constant 0 : i32
    %9 = arith.cmpi eq, %arg2, %c0_i32_8 : i32
    %10 = arith.extui %9 : i1 to i32
    %c0_i32_9 = arith.constant 0 : i32
    %11 = arith.cmpi ne, %10, %c0_i32_9 : i32
    scf.if %11 {
      %c0_10 = arith.constant 0 : index
      %c0_11 = arith.constant 0 : index
      %12 = vector.load %arg7[%c0_10, %c0_11] : memref<32x128xf32, #tpu.memory_space<vmem>>, vector<32x128xf32>
      %c0_12 = arith.constant 0 : index
      %c0_13 = arith.constant 0 : index
      %13 = vector.load %arg5[%c0_12, %c0_13] : memref<1x128xf32, #tpu.memory_space<vmem>>, vector<1x128xf32>
      %14 = vector.broadcast %13 : vector<1x128xf32> to vector<32x128xf32>
      %15 = arith.addf %12, %14 : vector<32x128xf32>
      %c0_14 = arith.constant 0 : index
      %c0_15 = arith.constant 0 : index
      %16 = vector.load %arg6[%c0_14, %c0_15] : memref<32x128xf32, #tpu.memory_space<vmem>>, vector<32x128xf32>
      tpu.vector_store %arg6[%c0_14, %c0_15], %15 {strides = array<i32>} : memref<32x128xf32, #tpu.memory_space<vmem>>, vector<32x128xf32>,
    } else {
    }
    return
  }
  func.func @transform_0(%arg0: i32, %arg1: i32, %arg2: i32) -> (i32, i32) {
    %c0_i32 = arith.constant 0 : i32
    return %arg0, %arg2 : i32, i32
  }
  func.func @transform_1(%arg0: i32, %arg1: i32, %arg2: i32) -> (i32, i32) {
    %c0_i32 = arith.constant 0 : i32
    return %arg2, %arg1 : i32, i32
  }
  func.func @transform_2(%arg0: i32, %arg1: i32, %arg2: i32) -> (i32, i32) {
    %c0_i32 = arith.constant 0 : i32
    %c0_i32_0 = arith.constant 0 : i32
    return %c0_i32, %arg1 : i32, i32
  }
  func.func @transform_3(%arg0: i32, %arg1: i32, %arg2: i32) -> (i32, i32) {
    %c0_i32 = arith.constant 0 : i32
    return %arg0, %arg1 : i32, i32
  }
}

module attributes {stable_mosaic.version = 11 : i64} {
  func.func @_matmul_bias_kernel(%arg0: i32, %arg1: i32, %arg2: i32, %arg3: memref<32x16xbf16, #tpu.memory_space<vmem>>, %arg4: memref<16x128xbf16, #tpu.memory_space<vmem>>, %arg5: memref<1x128xf32, #tpu.memory_space<vmem>>, %arg6: memref<32x128xf32, #tpu.memory_space<vmem>>, %arg7: memref<32x128xf32, #tpu.memory_space<vmem>>) attributes {dimension_semantics = [#tpu.dimension_semantics<parallel>, #tpu.dimension_semantics<parallel>, #tpu.dimension_semantics<arbitrary>], iteration_bounds = array<i64: 1, 1, 1>, scalar_prefetch = 0 : i64, scratch_operands = 1 : i64, tpu.core_type = #tpu.core_type<tc>, window_params = [{transform_indices = @transform_0, window_bounds = array<i64: 32, 16>}, {transform_indices = @transform_1, window_bounds = array<i64: 16, 128>}, {transform_indices = @transform_2, window_bounds = array<i64: 1, 128>}, {transform_indices = @transform_3, window_bounds = array<i64: 32, 128>}]} {
    %c0_i32 = arith.constant 0 : i32
    %0 = arith.cmpi eq, %arg2, %c0_i32 : i32
    %1 = arith.extui %0 : i1 to i32
    %c0_i32_0 = arith.constant 0 : i32
    %2 = arith.cmpi ne, %1, %c0_i32_0 : i32
    scf.if %2 {
      %cst_10 = arith.constant 0.000000e+00 : f32
      %12 = vector.broadcast %cst_10 : f32 to vector<32x128xf32>
      %c0_11 = arith.constant 0 : index
      %c0_12 = arith.constant 0 : index
      %13 = vector.load %arg7[%c0_11, %c0_12] : memref<32x128xf32, #tpu.memory_space<vmem>>, vector<32x128xf32>
      tpu.vector_store %arg7[%c0_11, %c0_12], %12 {strides = array<i32>} : memref<32x128xf32, #tpu.memory_space<vmem>>, vector<32x128xf32>,
    } else {
    }
    %c0 = arith.constant 0 : index
    %c0_1 = arith.constant 0 : index
    %3 = vector.load %arg7[%c0, %c0_1] : memref<32x128xf32, #tpu.memory_space<vmem>>, vector<32x128xf32>
    %c0_2 = arith.constant 0 : index
    %c0_3 = arith.constant 0 : index
    %4 = vector.load %arg3[%c0_2, %c0_3] : memref<32x16xbf16, #tpu.memory_space<vmem>>, vector<32x16xbf16>
    %c0_4 = arith.constant 0 : index
    %c0_5 = arith.constant 0 : index
    %5 = vector.load %arg4[%c0_4, %c0_5] : memref<16x128xbf16, #tpu.memory_space<vmem>>, vector<16x128xbf16>
    %cst = arith.constant dense<0.000000e+00> : vector<32x128xf32>
    %6 = tpu.matmul %4, %5, %cst {dimension_numbers = #tpu.dot_dimension_numbers<[1], [0], [0], [1], [0, 0, 1, 1], [], []>} : vector<32x16xbf16>, vector<16x128xbf16>, vector<32x128xf32> -> vector<32x128xf32>
    %7 = arith.addf %3, %6 : vector<32x128xf32>
    %c0_6 = arith.constant 0 : index
    %c0_7 = arith.constant 0 : index
    %8 = vector.load %arg7[%c0_6, %c0_7] : memref<32x128xf32, #tpu.memory_space<vmem>>, vector<32x128xf32>
    tpu.vector_store %arg7[%c0_6, %c0_7], %7 {strides = array<i32>} : memref<32x128xf32, #tpu.memory_space<vmem>>, vector<32x128xf32>,
    %c0_i32_8 = arith.constant 0 : i32
    %9 = arith.cmpi eq, %arg2, %c0_i32_8 : i32
    %10 = arith.extui %9 : i1 to i32
    %c0_i32_9 = arith.constant 0 : i32
    %11 = arith.cmpi ne, %10, %c0_i32_9 : i32
    scf.if %11 {
      %c0_10 = arith.constant 0 : index
      %c0_11 = arith.constant 0 : index
      %12 = vector.load %arg7[%c0_10, %c0_11] : memref<32x128xf32, #tpu.memory_space<vmem>>, vector<32x128xf32>
      %c0_12 = arith.constant 0 : index
      %c0_13 = arith.constant 0 : index
      %13 = vector.load %arg5[%c0_12, %c0_13] : memref<1x128xf32, #tpu.memory_space<vmem>>, vector<1x128xf32>
      %14 = vector.broadcast %13 : vector<1x128xf32> to vector<32x128xf32>
      %15 = arith.addf %12, %14 : vector<32x128xf32>
      %c0_14 = arith.constant 0 : index
      %c0_15 = arith.constant 0 : index
      %16 = vector.load %arg6[%c0_14, %c0_15] : memref<32x128xf32, #tpu.memory_space<vmem>>, vector<32x128xf32>
      tpu.vector_store %arg6[%c0_14, %c0_15], %15 {strides = array<i32>} : memref<32x128xf32, #tpu.memory_space<vmem>>, vector<32x128xf32>,
    } else {
    }
    return
  }
  func.func @transform_0(%arg0: i32, %arg1: i32, %arg2: i32) -> (i32, i32) {
    %c0_i32 = arith.constant 0 : i32
    return %arg0, %arg2 : i32, i32
  }
  func.func @transform_1(%arg0: i32, %arg1: i32, %arg2: i32) -> (i32, i32) {
    %c0_i32 = arith.constant 0 : i32
    return %arg2, %arg1 : i32, i32
  }
  func.func @transform_2(%arg0: i32, %arg1: i32, %arg2: i32) -> (i32, i32) {
    %c0_i32 = arith.constant 0 : i32
    %c0_i32_0 = arith.constant 0 : i32
    return %c0_i32, %arg1 : i32, i32
  }
  func.func @transform_3(%arg0: i32, %arg1: i32, %arg2: i32) -> (i32, i32) {
    %c0_i32 = arith.constant 0 : i32
    return %arg0, %arg1 : i32, i32
  }
}

module attributes {stable_mosaic.version = 11 : i64} {
  func.func @_attention_kernel(%arg0: i32, %arg1: memref<1x16x16xbf16, #tpu.memory_space<vmem>>, %arg2: memref<1x16x4xbf16, #tpu.memory_space<vmem>>, %arg3: memref<1x4x16xbf16, #tpu.memory_space<vmem>>, %arg4: memref<1x16x16xf32, #tpu.memory_space<vmem>>) attributes {dimension_semantics = [#tpu.dimension_semantics<parallel>], iteration_bounds = array<i64: 2>, scalar_prefetch = 0 : i64, scratch_operands = 0 : i64, tpu.core_type = #tpu.core_type<tc>, window_params = [{transform_indices = @transform_0, window_bounds = array<i64: 1, 16, 16>}, {transform_indices = @transform_1, window_bounds = array<i64: 1, 16, 4>}, {transform_indices = @transform_2, window_bounds = array<i64: 1, 4, 16>}, {transform_indices = @transform_3, window_bounds = array<i64: 1, 16, 16>}]} {
    %c0 = arith.constant 0 : index
    %c0_0 = arith.constant 0 : index
    %c0_1 = arith.constant 0 : index
    %0 = vector.load %arg1[%c0, %c0_0, %c0_1] : memref<1x16x16xbf16, #tpu.memory_space<vmem>>, vector<1x16x16xbf16>
    %1 = vector.shape_cast %0 : vector<1x16x16xbf16> to vector<16x16xbf16>
    %c0_2 = arith.constant 0 : index
    %c0_3 = arith.constant 0 : index
    %c0_4 = arith.constant 0 : index
    %2 = vector.load %arg2[%c0_2, %c0_3, %c0_4] : memref<1x16x4xbf16, #tpu.memory_space<vmem>>, vector<1x16x4xbf16>
    %3 = vector.shape_cast %2 : vector<1x16x4xbf16> to vector<16x4xbf16>
    %c0_5 = arith.constant 0 : index
    %c0_6 = arith.constant 0 : index
    %c0_7 = arith.constant 0 : index
    %4 = vector.load %arg3[%c0_5, %c0_6, %c0_7] : memref<1x4x16xbf16, #tpu.memory_space<vmem>>, vector<1x4x16xbf16>
    %5 = vector.shape_cast %4 : vector<1x4x16xbf16> to vector<4x16xbf16>
    %cst = arith.constant dense<0.000000e+00> : vector<16x4xf32>
    %6 = tpu.matmul %1, %3, %cst {dimension_numbers = #tpu.dot_dimension_numbers<[1], [0], [0], [1], [0, 0, 1, 1], [], []>} : vector<16x16xbf16>, vector<16x4xbf16>, vector<16x4xf32> -> vector<16x4xf32>
    %cst_8 = arith.constant dense<0xFF800000> : vector<16xf32>
    %7 = vector.multi_reduction <maximumf>, %6, %cst_8 [1] : vector<16x4xf32> to vector<16xf32>
    %8 = vector.shape_cast %7 : vector<16xf32> to vector<16x1xf32>
    %9 = vector.broadcast %8 : vector<16x1xf32> to vector<16x4xf32>
    %10 = arith.subf %6, %9 : vector<16x4xf32>
    %11 = math.exp %10 : vector<16x4xf32>
    %cst_9 = arith.constant dense<0.000000e+00> : vector<16xf32>
    %12 = vector.multi_reduction <add>, %11, %cst_9 [1] : vector<16x4xf32> to vector<16xf32>
    %13 = vector.shape_cast %12 : vector<16xf32> to vector<16x1xf32>
    %14 = tpu.reciprocal %13 {approx = true} : vector<16x1xf32> -> vector<16x1xf32>
    %15 = vector.broadcast %14 : vector<16x1xf32> to vector<16x4xf32>
    %16 = arith.mulf %11, %15 : vector<16x4xf32>
    %17 = arith.truncf %16 : vector<16x4xf32> to vector<16x4xbf16>
    %cst_10 = arith.constant dense<0.000000e+00> : vector<16x16xf32>
    %18 = tpu.matmul %17, %5, %cst_10 {dimension_numbers = #tpu.dot_dimension_numbers<[1], [0], [0], [1], [0, 0, 1, 1], [], []>} : vector<16x4xbf16>, vector<4x16xbf16>, vector<16x16xf32> -> vector<16x16xf32>
    %c0_11 = arith.constant 0 : index
    %c0_12 = arith.constant 0 : index
    %c0_13 = arith.constant 0 : index
    %19 = vector.load %arg4[%c0_11, %c0_12, %c0_13] : memref<1x16x16xf32, #tpu.memory_space<vmem>>, vector<1x16x16xf32>
    %20 = vector.shape_cast %19 : vector<1x16x16xf32> to vector<16x16xf32>
    %21 = vector.shape_cast %18 : vector<16x16xf32> to vector<1x16x16xf32>
    tpu.vector_store %arg4[%c0_11, %c0_12, %c0_13], %21 {strides = array<i32>} : memref<1x16x16xf32, #tpu.memory_space<vmem>>, vector<1x16x16xf32>,
    return
  }
  func.func @transform_0(%arg0: i32) -> (i32, i32, i32) {
    %c0_i32 = arith.constant 0 : i32
    %c0_i32_0 = arith.constant 0 : i32
    %c0_i32_1 = arith.constant 0 : i32
    return %arg0, %c0_i32, %c0_i32_0 : i32, i32, i32
  }
  func.func @transform_1(%arg0: i32) -> (i32, i32, i32) {
    %c0_i32 = arith.constant 0 : i32
    %c0_i32_0 = arith.constant 0 : i32
    %c0_i32_1 = arith.constant 0 : i32
    return %arg0, %c0_i32, %c0_i32_0 : i32, i32, i32
  }
  func.func @transform_2(%arg0: i32) -> (i32, i32, i32) {
    %c0_i32 = arith.constant 0 : i32
    %c0_i32_0 = arith.constant 0 : i32
    %c0_i32_1 = arith.constant 0 : i32
    return %arg0, %c0_i32, %c0_i32_0 : i32, i32, i32
  }
  func.func @transform_3(%arg0: i32) -> (i32, i32, i32) {
    %c0_i32 = arith.constant 0 : i32
    %c0_i32_0 = arith.constant 0 : i32
    %c0_i32_1 = arith.constant 0 : i32
    return %arg0, %c0_i32, %c0_i32_0 : i32, i32, i32
  }
}

module attributes {stable_mosaic.version = 11 : i64} {
  func.func @_matmul_bias_kernel(%arg0: i32, %arg1: i32, %arg2: i32, %arg3: memref<32x128xbf16, #tpu.memory_space<vmem>>, %arg4: memref<128x128xbf16, #tpu.memory_space<vmem>>, %arg5: memref<1x128xf32, #tpu.memory_space<vmem>>, %arg6: memref<32x128xf32, #tpu.memory_space<vmem>>, %arg7: memref<32x128xf32, #tpu.memory_space<vmem>>) attributes {dimension_semantics = [#tpu.dimension_semantics<parallel>, #tpu.dimension_semantics<parallel>, #tpu.dimension_semantics<arbitrary>], iteration_bounds = array<i64: 1, 1, 1>, scalar_prefetch = 0 : i64, scratch_operands = 1 : i64, tpu.core_type = #tpu.core_type<tc>, window_params = [{transform_indices = @transform_0, window_bounds = array<i64: 32, 128>}, {transform_indices = @transform_1, window_bounds = array<i64: 128, 128>}, {transform_indices = @transform_2, window_bounds = array<i64: 1, 128>}, {transform_indices = @transform_3, window_bounds = array<i64: 32, 128>}]} {
    %c0_i32 = arith.constant 0 : i32
    %0 = arith.cmpi eq, %arg2, %c0_i32 : i32
    %1 = arith.extui %0 : i1 to i32
    %c0_i32_0 = arith.constant 0 : i32
    %2 = arith.cmpi ne, %1, %c0_i32_0 : i32
    scf.if %2 {
      %cst_10 = arith.constant 0.000000e+00 : f32
      %12 = vector.broadcast %cst_10 : f32 to vector<32x128xf32>
      %c0_11 = arith.constant 0 : index
      %c0_12 = arith.constant 0 : index
      %13 = vector.load %arg7[%c0_11, %c0_12] : memref<32x128xf32, #tpu.memory_space<vmem>>, vector<32x128xf32>
      tpu.vector_store %arg7[%c0_11, %c0_12], %12 {strides = array<i32>} : memref<32x128xf32, #tpu.memory_space<vmem>>, vector<32x128xf32>,
    } else {
    }
    %c0 = arith.constant 0 : index
    %c0_1 = arith.constant 0 : index
    %3 = vector.load %arg7[%c0, %c0_1] : memref<32x128xf32, #tpu.memory_space<vmem>>, vector<32x128xf32>
    %c0_2 = arith.constant 0 : index
    %c0_3 = arith.constant 0 : index
    %4 = vector.load %arg3[%c0_2, %c0_3] : memref<32x128xbf16, #tpu.memory_space<vmem>>, vector<32x128xbf16>
    %c0_4 = arith.constant 0 : index
    %c0_5 = arith.constant 0 : index
    %5 = vector.load %arg4[%c0_4, %c0_5] : memref<128x128xbf16, #tpu.memory_space<vmem>>, vector<128x128xbf16>
    %cst = arith.constant dense<0.000000e+00> : vector<32x128xf32>
    %6 = tpu.matmul %4, %5, %cst {dimension_numbers = #tpu.dot_dimension_numbers<[1], [0], [0], [1], [0, 0, 1, 1], [], []>} : vector<32x128xbf16>, vector<128x128xbf16>, vector<32x128xf32> -> vector<32x128xf32>
    %7 = arith.addf %3, %6 : vector<32x128xf32>
    %c0_6 = arith.constant 0 : index
    %c0_7 = arith.constant 0 : index
    %8 = vector.load %arg7[%c0_6, %c0_7] : memref<32x128xf32, #tpu.memory_space<vmem>>, vector<32x128xf32>
    tpu.vector_store %arg7[%c0_6, %c0_7], %7 {strides = array<i32>} : memref<32x128xf32, #tpu.memory_space<vmem>>, vector<32x128xf32>,
    %c0_i32_8 = arith.constant 0 : i32
    %9 = arith.cmpi eq, %arg2, %c0_i32_8 : i32
    %10 = arith.extui %9 : i1 to i32
    %c0_i32_9 = arith.constant 0 : i32
    %11 = arith.cmpi ne, %10, %c0_i32_9 : i32
    scf.if %11 {
      %c0_10 = arith.constant 0 : index
      %c0_11 = arith.constant 0 : index
      %12 = vector.load %arg7[%c0_10, %c0_11] : memref<32x128xf32, #tpu.memory_space<vmem>>, vector<32x128xf32>
      %c0_12 = arith.constant 0 : index
      %c0_13 = arith.constant 0 : index
      %13 = vector.load %arg5[%c0_12, %c0_13] : memref<1x128xf32, #tpu.memory_space<vmem>>, vector<1x128xf32>
      %14 = vector.broadcast %13 : vector<1x128xf32> to vector<32x128xf32>
      %15 = arith.addf %12, %14 : vector<32x128xf32>
      %c0_14 = arith.constant 0 : index
      %c0_15 = arith.constant 0 : index
      %16 = vector.load %arg6[%c0_14, %c0_15] : memref<32x128xf32, #tpu.memory_space<vmem>>, vector<32x128xf32>
      tpu.vector_store %arg6[%c0_14, %c0_15], %15 {strides = array<i32>} : memref<32x128xf32, #tpu.memory_space<vmem>>, vector<32x128xf32>,
    } else {
    }
    return
  }
  func.func @transform_0(%arg0: i32, %arg1: i32, %arg2: i32) -> (i32, i32) {
    %c0_i32 = arith.constant 0 : i32
    return %arg0, %arg2 : i32, i32
  }
  func.func @transform_1(%arg0: i32, %arg1: i32, %arg2: i32) -> (i32, i32) {
    %c0_i32 = arith.constant 0 : i32
    return %arg2, %arg1 : i32, i32
  }
  func.func @transform_2(%arg0: i32, %arg1: i32, %arg2: i32) -> (i32, i32) {
    %c0_i32 = arith.constant 0 : i32
    %c0_i32_0 = arith.constant 0 : i32
    return %c0_i32, %arg1 : i32, i32
  }
  func.func @transform_3(%arg0: i32, %arg1: i32, %arg2: i32) -> (i32, i32) {
    %c0_i32 = arith.constant 0 : i32
    return %arg0, %arg1 : i32, i32
  }
}

module attributes {stable_mosaic.version = 11 : i64} {
  func.func @_matmul_bias_kernel(%arg0: i32, %arg1: i32, %arg2: i32, %arg3: memref<128x64xbf16, #tpu.memory_space<vmem>>, %arg4: memref<64x128xbf16, #tpu.memory_space<vmem>>, %arg5: memref<1x128xf32, #tpu.memory_space<vmem>>, %arg6: memref<128x128xf32, #tpu.memory_space<vmem>>, %arg7: memref<128x128xf32, #tpu.memory_space<vmem>>) attributes {dimension_semantics = [#tpu.dimension_semantics<parallel>, #tpu.dimension_semantics<parallel>, #tpu.dimension_semantics<arbitrary>], iteration_bounds = array<i64: 1, 1, 1>, scalar_prefetch = 0 : i64, scratch_operands = 1 : i64, tpu.core_type = #tpu.core_type<tc>, window_params = [{transform_indices = @transform_0, window_bounds = array<i64: 128, 64>}, {transform_indices = @transform_1, window_bounds = array<i64: 64, 128>}, {transform_indices = @transform_2, window_bounds = array<i64: 1, 128>}, {transform_indices = @transform_3, window_bounds = array<i64: 128, 128>}]} {
    %c0_i32 = arith.constant 0 : i32
    %0 = arith.cmpi eq, %arg2, %c0_i32 : i32
    %1 = arith.extui %0 : i1 to i32
    %c0_i32_0 = arith.constant 0 : i32
    %2 = arith.cmpi ne, %1, %c0_i32_0 : i32
    scf.if %2 {
      %cst_10 = arith.constant 0.000000e+00 : f32
      %12 = vector.broadcast %cst_10 : f32 to vector<128x128xf32>
      %c0_11 = arith.constant 0 : index
      %c0_12 = arith.constant 0 : index
      %13 = vector.load %arg7[%c0_11, %c0_12] : memref<128x128xf32, #tpu.memory_space<vmem>>, vector<128x128xf32>
      tpu.vector_store %arg7[%c0_11, %c0_12], %12 {strides = array<i32>} : memref<128x128xf32, #tpu.memory_space<vmem>>, vector<128x128xf32>,
    } else {
    }
    %c0 = arith.constant 0 : index
    %c0_1 = arith.constant 0 : index
    %3 = vector.load %arg7[%c0, %c0_1] : memref<128x128xf32, #tpu.memory_space<vmem>>, vector<128x128xf32>
    %c0_2 = arith.constant 0 : index
    %c0_3 = arith.constant 0 : index
    %4 = vector.load %arg3[%c0_2, %c0_3] : memref<128x64xbf16, #tpu.memory_space<vmem>>, vector<128x64xbf16>
    %c0_4 = arith.constant 0 : index
    %c0_5 = arith.constant 0 : index
    %5 = vector.load %arg4[%c0_4, %c0_5] : memref<64x128xbf16, #tpu.memory_space<vmem>>, vector<64x128xbf16>
    %cst = arith.constant dense<0.000000e+00> : vector<128x128xf32>
    %6 = tpu.matmul %4, %5, %cst {dimension_numbers = #tpu.dot_dimension_numbers<[1], [0], [0], [1], [0, 0, 1, 1], [], []>} : vector<128x64xbf16>, vector<64x128xbf16>, vector<128x128xf32> -> vector<128x128xf32>
    %7 = arith.addf %3, %6 : vector<128x128xf32>
    %c0_6 = arith.constant 0 : index
    %c0_7 = arith.constant 0 : index
    %8 = vector.load %arg7[%c0_6, %c0_7] : memref<128x128xf32, #tpu.memory_space<vmem>>, vector<128x128xf32>
    tpu.vector_store %arg7[%c0_6, %c0_7], %7 {strides = array<i32>} : memref<128x128xf32, #tpu.memory_space<vmem>>, vector<128x128xf32>,
    %c0_i32_8 = arith.constant 0 : i32
    %9 = arith.cmpi eq, %arg2, %c0_i32_8 : i32
    %10 = arith.extui %9 : i1 to i32
    %c0_i32_9 = arith.constant 0 : i32
    %11 = arith.cmpi ne, %10, %c0_i32_9 : i32
    scf.if %11 {
      %c0_10 = arith.constant 0 : index
      %c0_11 = arith.constant 0 : index
      %12 = vector.load %arg7[%c0_10, %c0_11] : memref<128x128xf32, #tpu.memory_space<vmem>>, vector<128x128xf32>
      %c0_12 = arith.constant 0 : index
      %c0_13 = arith.constant 0 : index
      %13 = vector.load %arg5[%c0_12, %c0_13] : memref<1x128xf32, #tpu.memory_space<vmem>>, vector<1x128xf32>
      %14 = vector.broadcast %13 : vector<1x128xf32> to vector<128x128xf32>
      %15 = arith.addf %12, %14 : vector<128x128xf32>
      %c0_14 = arith.constant 0 : index
      %c0_15 = arith.constant 0 : index
      %16 = vector.load %arg6[%c0_14, %c0_15] : memref<128x128xf32, #tpu.memory_space<vmem>>, vector<128x128xf32>
      tpu.vector_store %arg6[%c0_14, %c0_15], %15 {strides = array<i32>} : memref<128x128xf32, #tpu.memory_space<vmem>>, vector<128x128xf32>,
    } else {
    }
    return
  }
  func.func @transform_0(%arg0: i32, %arg1: i32, %arg2: i32) -> (i32, i32) {
    %c0_i32 = arith.constant 0 : i32
    return %arg0, %arg2 : i32, i32
  }
  func.func @transform_1(%arg0: i32, %arg1: i32, %arg2: i32) -> (i32, i32) {
    %c0_i32 = arith.constant 0 : i32
    return %arg2, %arg1 : i32, i32
  }
  func.func @transform_2(%arg0: i32, %arg1: i32, %arg2: i32) -> (i32, i32) {
    %c0_i32 = arith.constant 0 : i32
    %c0_i32_0 = arith.constant 0 : i32
    return %c0_i32, %arg1 : i32, i32
  }
  func.func @transform_3(%arg0: i32, %arg1: i32, %arg2: i32) -> (i32, i32) {
    %c0_i32 = arith.constant 0 : i32
    return %arg0, %arg1 : i32, i32
  }
}

module attributes {stable_mosaic.version = 11 : i64} {
  func.func @_matmul_bias_kernel(%arg0: i32, %arg1: i32, %arg2: i32, %arg3: memref<256x392xbf16, #tpu.memory_space<vmem>>, %arg4: memref<392x128xbf16, #tpu.memory_space<vmem>>, %arg5: memref<1x128xf32, #tpu.memory_space<vmem>>, %arg6: memref<256x128xf32, #tpu.memory_space<vmem>>, %arg7: memref<256x128xf32, #tpu.memory_space<vmem>>) attributes {dimension_semantics = [#tpu.dimension_semantics<parallel>, #tpu.dimension_semantics<parallel>, #tpu.dimension_semantics<arbitrary>], iteration_bounds = array<i64: 2, 1, 1>, scalar_prefetch = 0 : i64, scratch_operands = 1 : i64, tpu.core_type = #tpu.core_type<tc>, window_params = [{transform_indices = @transform_0, window_bounds = array<i64: 256, 392>}, {transform_indices = @transform_1, window_bounds = array<i64: 392, 128>}, {transform_indices = @transform_2, window_bounds = array<i64: 1, 128>}, {transform_indices = @transform_3, window_bounds = array<i64: 256, 128>}]} {
    %c0_i32 = arith.constant 0 : i32
    %0 = arith.cmpi eq, %arg2, %c0_i32 : i32
    %1 = arith.extui %0 : i1 to i32
    %c0_i32_0 = arith.constant 0 : i32
    %2 = arith.cmpi ne, %1, %c0_i32_0 : i32
    scf.if %2 {
      %cst_10 = arith.constant 0.000000e+00 : f32
      %12 = vector.broadcast %cst_10 : f32 to vector<256x128xf32>
      %c0_11 = arith.constant 0 : index
      %c0_12 = arith.constant 0 : index
      %13 = vector.load %arg7[%c0_11, %c0_12] : memref<256x128xf32, #tpu.memory_space<vmem>>, vector<256x128xf32>
      tpu.vector_store %arg7[%c0_11, %c0_12], %12 {strides = array<i32>} : memref<256x128xf32, #tpu.memory_space<vmem>>, vector<256x128xf32>,
    } else {
    }
    %c0 = arith.constant 0 : index
    %c0_1 = arith.constant 0 : index
    %3 = vector.load %arg7[%c0, %c0_1] : memref<256x128xf32, #tpu.memory_space<vmem>>, vector<256x128xf32>
    %c0_2 = arith.constant 0 : index
    %c0_3 = arith.constant 0 : index
    %4 = vector.load %arg3[%c0_2, %c0_3] : memref<256x392xbf16, #tpu.memory_space<vmem>>, vector<256x392xbf16>
    %c0_4 = arith.constant 0 : index
    %c0_5 = arith.constant 0 : index
    %5 = vector.load %arg4[%c0_4, %c0_5] : memref<392x128xbf16, #tpu.memory_space<vmem>>, vector<392x128xbf16>
    %cst = arith.constant dense<0.000000e+00> : vector<256x128xf32>
    %6 = tpu.matmul %4, %5, %cst {dimension_numbers = #tpu.dot_dimension_numbers<[1], [0], [0], [1], [0, 0, 1, 1], [], []>} : vector<256x392xbf16>, vector<392x128xbf16>, vector<256x128xf32> -> vector<256x128xf32>
    %7 = arith.addf %3, %6 : vector<256x128xf32>
    %c0_6 = arith.constant 0 : index
    %c0_7 = arith.constant 0 : index
    %8 = vector.load %arg7[%c0_6, %c0_7] : memref<256x128xf32, #tpu.memory_space<vmem>>, vector<256x128xf32>
    tpu.vector_store %arg7[%c0_6, %c0_7], %7 {strides = array<i32>} : memref<256x128xf32, #tpu.memory_space<vmem>>, vector<256x128xf32>,
    %c0_i32_8 = arith.constant 0 : i32
    %9 = arith.cmpi eq, %arg2, %c0_i32_8 : i32
    %10 = arith.extui %9 : i1 to i32
    %c0_i32_9 = arith.constant 0 : i32
    %11 = arith.cmpi ne, %10, %c0_i32_9 : i32
    scf.if %11 {
      %c0_10 = arith.constant 0 : index
      %c0_11 = arith.constant 0 : index
      %12 = vector.load %arg7[%c0_10, %c0_11] : memref<256x128xf32, #tpu.memory_space<vmem>>, vector<256x128xf32>
      %c0_12 = arith.constant 0 : index
      %c0_13 = arith.constant 0 : index
      %13 = vector.load %arg5[%c0_12, %c0_13] : memref<1x128xf32, #tpu.memory_space<vmem>>, vector<1x128xf32>
      %14 = vector.broadcast %13 : vector<1x128xf32> to vector<256x128xf32>
      %15 = arith.addf %12, %14 : vector<256x128xf32>
      %16 = math.tanh %15 : vector<256x128xf32>
      %c0_14 = arith.constant 0 : index
      %c0_15 = arith.constant 0 : index
      %17 = vector.load %arg6[%c0_14, %c0_15] : memref<256x128xf32, #tpu.memory_space<vmem>>, vector<256x128xf32>
      tpu.vector_store %arg6[%c0_14, %c0_15], %16 {strides = array<i32>} : memref<256x128xf32, #tpu.memory_space<vmem>>, vector<256x128xf32>,
    } else {
    }
    return
  }
  func.func @transform_0(%arg0: i32, %arg1: i32, %arg2: i32) -> (i32, i32) {
    %c0_i32 = arith.constant 0 : i32
    return %arg0, %arg2 : i32, i32
  }
  func.func @transform_1(%arg0: i32, %arg1: i32, %arg2: i32) -> (i32, i32) {
    %c0_i32 = arith.constant 0 : i32
    return %arg2, %arg1 : i32, i32
  }
  func.func @transform_2(%arg0: i32, %arg1: i32, %arg2: i32) -> (i32, i32) {
    %c0_i32 = arith.constant 0 : i32
    %c0_i32_0 = arith.constant 0 : i32
    return %c0_i32, %arg1 : i32, i32
  }
  func.func @transform_3(%arg0: i32, %arg1: i32, %arg2: i32) -> (i32, i32) {
    %c0_i32 = arith.constant 0 : i32
    return %arg0, %arg1 : i32, i32
  }
}

</mosaic_0001>

<bundles_post_ra>
// kernel: attention_generator_forward.56
= control target key start
LH: loop header
LB: loop body
LE: loop exit
PB: predicated region body
PF: predicated region fallthrough
CT: control target
= control target key end

     0   :  { %s1037_s12 = smov 0   ;;  %s1039_s13 = smov 0   ;;  %s1164_s0 = inlined_call_operand.vmem [shape: bf16[512,8], index: 0, kind: input, shape index: {}]   ;;  %s1165_s1 = inlined_call_operand.vmem [shape: bf16[8,128], index: 1, kind: input, shape index: {}]   ;;  %s1166_s2 = inlined_call_operand.vmem [shape: f32[1,128], index: 2, kind: input, shape index: {}]   ;;  %s1167_s3 = inlined_call_operand.vmem [shape: f32[512,128], index: 3, kind: output, shape index: {}]  }
   0x1   :  { %s1041_s14 = smov 0  }
   0x2 LB: > { %s32_s15 = sadd.s32 1, %s1011_s13  ;;  %p862_p0 = scmp.ge.s32.totalorder %s1015_s14, 1  ;;  %s1015_s14 = sphi %s1041_s14, %s13_s14   ;;  %s1011_s13 = sphi %s1039_s13, %s1169_s13   ;;  %s1007_s12 = sphi %s1037_s12, %s1168_s12  }
   0x3   : > { %p34_p1 = scmp.ge.s32.totalorder %s32_s15, 2  ;;  %p186_p2 = scmp.lt.s32.totalorder %s1015_s14, 3 }
   0x5   : > { %s1171_s15 = smov (%p34_p1, %s32_s15), 0  ;;  %p187_p3 = pnand %p862_p0, %p186_p2 }
   0x6   : > { %s863_s18 = sshll.u32 (!%p187_p3), %s1007_s12, 5 }
   0x7   : > { %190 = sbr.rel (%p187_p3) target bundleno = 210 (0xd2), region = 32  ;;  %p227_p4 = scmp.lt.s32.totalorder (!%p187_p3), %s863_s18, 63 }
   0xc   : > { %v355_v0 = vld [vmem:[%s1165_s1] sm:$0xf]  ;;  %vm485_vm0 = vcmask 1043456   ;;  %s1173_s18 = smov (!%p227_p4, %s863_s18), 63  ;;  %vm436_vm1 = vcmask 64512  }
   0xd   : > { %v487_v1 = vsel %vm485_vm0, %v355_v0, 0  ;;  %s864_s19 = sshll.u32 %s1173_s18, 2  ;;  %s866_s23 = sshll.u32 %s1173_s18, 3  ;;  %v1084_v18 = vld [vmem:[%s1166_s2] ss:$0 sm:$0xff] }
   0xe   : > { %496 = vmatpush.bf16.msra.mxu0 %v487_v1  ;;  %965 = vmatpush.bf16.msra.mxu1 %v487_v1  ;;  %s233_s22 = scalar_lea.vmem %s1164_s0, %s864_s19  ;;  %s1089_s28 = scalar_lea.vmem %s1167_s3, %s866_s23 }
   0xf   : > { %966 = vmatpush.bf16.msra.mxu2 %v487_v1  ;;  %967 = vmatpush.bf16.msra.mxu3 %v487_v1  ;;  %v949_v2 = vld [vmem:[%s233_s22] sm:$0xff]  ;;  %v950_v6 = vld [vmem:[%s233_s22 + $0x8] sm:$0xff]  ;;  %v951_v10 = vld [vmem:[%s233_s22 + $0x10] sm:$0xff] }
  0x10   : > { %v953_v3 = vld [vmem:[%s233_s22 + $0x20] sm:$0xff]  ;;  %v954_v7 = vld [vmem:[%s233_s22 + $0x28] sm:$0xff]  ;;  %v955_v11 = vld [vmem:[%s233_s22 + $0x30] sm:$0xff] }
  0x11   : > { %v957_v4 = vld [vmem:[%s233_s22 + $0x40] sm:$0xff]  ;;  %931 = vmatmul.msk.bf16.vlgmr.msra.gmra.mxu0 %vm436_vm1, %v949_v2  ;;  %935 = vmatmul.msk.bf16.vlgmr.msra.gmra.mxu1 %vm436_vm1, %v953_v3  ;;  %v958_v8 = vld [vmem:[%s233_s22 + $0x48] sm:$0xff]  ;;  %v959_v12 = vld [vmem:[%s233_s22 + $0x50] sm:$0xff] }
  0x12   : > { %v961_v5 = vld [vmem:[%s233_s22 + $0x60] sm:$0xff]  ;;  %939 = vmatmul.msk.bf16.vlgmr.msra.gmra.mxu2 %vm436_vm1, %v957_v4  ;;  %v962_v9 = vld [vmem:[%s233_s22 + $0x68] sm:$0xff]  ;;  %v963_v13 = vld [vmem:[%s233_s22 + $0x70] sm:$0xff] }
  0x13   : > { %943 = vmatmul.msk.bf16.vlgmr.msra.gmra.mxu3 %vm436_vm1, %v961_v5  ;;  %v952_v14 = vld [vmem:[%s233_s22 + $0x18] sm:$0xff] }
  0x14   : > { %v956_v15 = vld [vmem:[%s233_s22 + $0x38] sm:$0xff] }
  0x15   : > { %v960_v16 = vld [vmem:[%s233_s22 + $0x58] sm:$0xff] }
  0x16   : > { %v964_v17 = vld [vmem:[%s233_s22 + $0x78] sm:$0xff] }
  0x21   : > { %932 = vmatmul.msk.bf16.gmra.mxu0 %vm436_vm1, %v950_v6  ;;  %936 = vmatmul.msk.bf16.gmra.mxu1 %vm436_vm1, %v954_v7 }
  0x22   : > { %940 = vmatmul.msk.bf16.gmra.mxu2 %vm436_vm1, %v958_v8 }
  0x23   : > { %944 = vmatmul.msk.bf16.gmra.mxu3 %vm436_vm1, %v962_v9 }
  0x31   : > { %933 = vmatmul.msk.bf16.gmra.mxu0 %vm436_vm1, %v951_v10  ;;  %937 = vmatmul.msk.bf16.gmra.mxu1 %vm436_vm1, %v955_v11 }
  0x32   : > { %941 = vmatmul.msk.bf16.gmra.mxu2 %vm436_vm1, %v959_v12 }
  0x33   : > { %945 = vmatmul.msk.bf16.gmra.mxu3 %vm436_vm1, %v963_v13 }
  0x41   : > { %934 = vmatmul.msk.bf16.gmra.mxu0 %vm436_vm1, %v952_v14  ;;  %938 = vmatmul.msk.bf16.gmra.mxu1 %vm436_vm1, %v956_v15 }
  0x42   : > { %942 = vmatmul.msk.bf16.gmra.mxu2 %vm436_vm1, %v960_v16 }
  0x43   : > { %946 = vmatmul.msk.bf16.gmra.mxu3 %vm436_vm1, %v964_v17 }
  0x8e   : > { %v498_v19 = vpop.f32.mrf.mxu0  ;;  %v518_v20 = vpop.f32.mrf.mxu1 }
  0x8f   : > { %v681_v21 = vadd.f32 %v1084_v18, %v498_v19  ;;  %v689_v22 = vadd.f32 %v1084_v18, %v518_v20 }
  0x91   : > { %713 = vst [vmem:[%s1089_s28] sm:$0xff] %v681_v21 }
  0x92   : > { %721 = vst [vmem:[%s1089_s28 + $0x40] sm:$0xff] %v689_v22 }
  0x95   : > { %v538_v23 = vpop.f32.mrf.mxu2 }
  0x96   : > { %v558_v24 = vpop.f32.mrf.mxu3  ;;  %v697_v25 = vadd.f32 %v1084_v18, %v538_v23  ;;  %v500_v27 = vpop.f32.mrf.mxu0 }
  0x97   : > { %v705_v26 = vadd.f32 %v1084_v18, %v558_v24  ;;  %v520_v28 = vpop.f32.mrf.mxu1  ;;  %v682_v29 = vadd.f32 %v1084_v18, %v500_v27 }
  0x98   : > { %v690_v30 = vadd.f32 %v1084_v18, %v520_v28  ;;  %729 = vst [vmem:[%s1089_s28 + $0x80] sm:$0xff] %v697_v25 }
  0x99   : > { %737 = vst [vmem:[%s1089_s28 + $0xc0] sm:$0xff] %v705_v26 }
  0x9a   : > { %714 = vst [vmem:[%s1089_s28 + $0x8] sm:$0xff] %v682_v29 }
  0x9b   : > { %722 = vst [vmem:[%s1089_s28 + $0x48] sm:$0xff] %v690_v30 }
  0x9d   : > { %v540_v31 = vpop.f32.mrf.mxu2 }
  0x9e   : > { %v560_v32 = vpop.f32.mrf.mxu3  ;;  %v698_v33 = vadd.f32 %v1084_v18, %v540_v31  ;;  %v503_v35 = vpop.f32.mrf.mxu0 }
  0x9f   : > { %v706_v34 = vadd.f32 %v1084_v18, %v560_v32  ;;  %v523_v36 = vpop.f32.mrf.mxu1  ;;  %v683_v37 = vadd.f32 %v1084_v18, %v503_v35 }
  0xa0   : > { %v691_v38 = vadd.f32 %v1084_v18, %v523_v36  ;;  %730 = vst [vmem:[%s1089_s28 + $0x88] sm:$0xff] %v698_v33 }
  0xa1   : > { %738 = vst [vmem:[%s1089_s28 + $0xc8] sm:$0xff] %v706_v34 }
  0xa2   : > { %715 = vst [vmem:[%s1089_s28 + $0x10] sm:$0xff] %v683_v37 }
  0xa3   : > { %723 = vst [vmem:[%s1089_s28 + $0x50] sm:$0xff] %v691_v38 }
  0xa5   : > { %v543_v39 = vpop.f32.mrf.mxu2 }
  0xa6   : > { %v563_v40 = vpop.f32.mrf.mxu3  ;;  %v699_v41 = vadd.f32 %v1084_v18, %v543_v39  ;;  %v505_v43 = vpop.f32.mrf.mxu0 }
  0xa7   : > { %v707_v42 = vadd.f32 %v1084_v18, %v563_v40  ;;  %v525_v44 = vpop.f32.mrf.mxu1  ;;  %v684_v45 = vadd.f32 %v1084_v18, %v505_v43 }
  0xa8   : > { %v692_v46 = vadd.f32 %v1084_v18, %v525_v44  ;;  %731 = vst [vmem:[%s1089_s28 + $0x90] sm:$0xff] %v699_v41 }
  0xa9   : > { %739 = vst [vmem:[%s1089_s28 + $0xd0] sm:$0xff] %v707_v42 }
  0xaa   : > { %716 = vst [vmem:[%s1089_s28 + $0x18] sm:$0xff] %v684_v45 }
  0xab   : > { %724 = vst [vmem:[%s1089_s28 + $0x58] sm:$0xff] %v692_v46 }
  0xad   : > { %v545_v47 = vpop.f32.mrf.mxu2 }
  0xae   : > { %v565_v48 = vpop.f32.mrf.mxu3  ;;  %v700_v49 = vadd.f32 %v1084_v18, %v545_v47  ;;  %v508_v51 = vpop.f32.mrf.mxu0 }
  0xaf   : > { %v708_v50 = vadd.f32 %v1084_v18, %v565_v48  ;;  %v528_v52 = vpop.f32.mrf.mxu1  ;;  %v685_v53 = vadd.f32 %v1084_v18, %v508_v51 }
  0xb0   : > { %v693_v54 = vadd.f32 %v1084_v18, %v528_v52  ;;  %732 = vst [vmem:[%s1089_s28 + $0x98] sm:$0xff] %v700_v49 }
  0xb1   : > { %740 = vst [vmem:[%s1089_s28 + $0xd8] sm:$0xff] %v708_v50 }
  0xb2   : > { %717 = vst [vmem:[%s1089_s28 + $0x20] sm:$0xff] %v685_v53 }
  0xb3   : > { %725 = vst [vmem:[%s1089_s28 + $0x60] sm:$0xff] %v693_v54 }
  0xb5   : > { %v548_v55 = vpop.f32.mrf.mxu2 }
  0xb6   : > { %v568_v56 = vpop.f32.mrf.mxu3  ;;  %v701_v57 = vadd.f32 %v1084_v18, %v548_v55  ;;  %v510_v59 = vpop.f32.mrf.mxu0 }
  0xb7   : > { %v709_v58 = vadd.f32 %v1084_v18, %v568_v56  ;;  %v530_v60 = vpop.f32.mrf.mxu1  ;;  %v686_v61 = vadd.f32 %v1084_v18, %v510_v59 }
  0xb8   : > { %v694_v62 = vadd.f32 %v1084_v18, %v530_v60  ;;  %733 = vst [vmem:[%s1089_s28 + $0xa0] sm:$0xff] %v701_v57 }
  0xb9   : > { %741 = vst [vmem:[%s1089_s28 + $0xe0] sm:$0xff] %v709_v58 }
  0xba   : > { %718 = vst [vmem:[%s1089_s28 + $0x28] sm:$0xff] %v686_v61 }
  0xbb   : > { %726 = vst [vmem:[%s1089_s28 + $0x68] sm:$0xff] %v694_v62 }
  0xbd   : > { %v550_v63 = vpop.f32.mrf.mxu2 }
  0xbe   : > { %v570_v0 = vpop.f32.mrf.mxu3  ;;  %v702_v1 = vadd.f32 %v1084_v18, %v550_v63  ;;  %v513_v3 = vpop.f32.mrf.mxu0 }
  0xbf   : > { %v710_v2 = vadd.f32 %v1084_v18, %v570_v0  ;;  %v533_v4 = vpop.f32.mrf.mxu1  ;;  %v687_v5 = vadd.f32 %v1084_v18, %v513_v3 }
  0xc0   : > { %v695_v6 = vadd.f32 %v1084_v18, %v533_v4  ;;  %734 = vst [vmem:[%s1089_s28 + $0xa8] sm:$0xff] %v702_v1 }
  0xc1   : > { %742 = vst [vmem:[%s1089_s28 + $0xe8] sm:$0xff] %v710_v2 }
  0xc2   : > { %719 = vst [vmem:[%s1089_s28 + $0x30] sm:$0xff] %v687_v5 }
  0xc3   : > { %727 = vst [vmem:[%s1089_s28 + $0x70] sm:$0xff] %v695_v6 }
  0xc5   : > { %v553_v7 = vpop.f32.mrf.mxu2 }
  0xc6   : > { %v573_v8 = vpop.f32.mrf.mxu3  ;;  %v703_v9 = vadd.f32 %v1084_v18, %v553_v7  ;;  %v515_v11 = vpop.f32.mrf.mxu0 }
  0xc7   : > { %v711_v10 = vadd.f32 %v1084_v18, %v573_v8  ;;  %v535_v12 = vpop.f32.mrf.mxu1  ;;  %v688_v13 = vadd.f32 %v1084_v18, %v515_v11 }
  0xc8   : > { %v696_v14 = vadd.f32 %v1084_v18, %v535_v12  ;;  %735 = vst [vmem:[%s1089_s28 + $0xb0] sm:$0xff] %v703_v9 }
  0xc9   : > { %743 = vst [vmem:[%s1089_s28 + $0xf0] sm:$0xff] %v711_v10 }
  0xca   : > { %720 = vst [vmem:[%s1089_s28 + $0x38] sm:$0xff] %v688_v13 }
  0xcb   : > { %728 = vst [vmem:[%s1089_s28 + $0x78] sm:$0xff] %v696_v14 }
  0xcd   : > { %v555_v15 = vpop.f32.mrf.mxu2 }
  0xce   : > { %v575_v16 = vpop.f32.mrf.mxu3  ;;  %v704_v17 = vadd.f32 %v1084_v18, %v555_v15 }
  0xcf   : > { %v712_v19 = vadd.f32 %v1084_v18, %v575_v16 }
  0xd0   : > { %736 = vst [vmem:[%s1089_s28 + $0xb8] sm:$0xff] %v704_v17 }
  0xd1   : > { %744 = vst [vmem:[%s1089_s28 + $0xf8] sm:$0xff] %v712_v19 }
  0xd2 PF: > { %s13_s14 = sadd.s32 1, %s1015_s14   ;;  %s1168_s12 = smov %s1011_s13 }
  0xd3   : > { %p10_p5 = scmp.ge.s32.totalorder %s13_s14, 4   ;;  %s1169_s13 = smov %s1171_s15 }
  0xd5   :  { %12 = sbr.rel (!%p10_p5) target bundleno = 2 (0x2), region = 76 }

// kernel: attention_generator_forward.79
= control target key start
LH: loop header
LB: loop body
LE: loop exit
PB: predicated region body
PF: predicated region fallthrough
CT: control target
= control target key end

     0   :  { %vm14_vm0 = vcmask 57344   ;;  %vm82_vm1 = vcmask 64512   ;;  %v428_v0 = vmov 0.0   ;;  %s786_s0 = inlined_call_operand.vmem [shape: f32[512,8], index: 0, kind: input, shape index: {}]   ;;  %s787_s1 = inlined_call_operand.vmem [shape: f32[1,8], index: 1, kind: output, shape index: {0}]   ;;  %s788_s2 = inlined_call_operand.vmem [shape: f32[1,8], index: 2, kind: output, shape index: {1}]  }
   0x1   :  { %15 = vst.msk [vmem:[%s787_s1] sm:$0x1] %vm14_vm0, %v428_v0  ;;  %v17_v1 = vld [vmem:[%s786_s0] sm:$0xff]  ;;  %v18_v2 = vld [vmem:[%s786_s0 + $0x8] sm:$0xff]  ;;  %v19_v3 = vld [vmem:[%s786_s0 + $0x10] sm:$0xff] }
   0x2   :  { %16 = vst.msk [vmem:[%s788_s2] sm:$0x1] %vm14_vm0, %v428_v0  ;;  %v83_v4 = vsel %vm82_vm1, %v17_v1, 0.0  ;;  %v84_v5 = vsel %vm82_vm1, %v18_v2, 0.0  ;;  %v86_v6 = vsel %vm82_vm1, %v19_v3, 0.0  ;;  %v20_v7 = vld [vmem:[%s786_s0 + $0x18] sm:$0xff]  ;;  %v220_v19 = vmul.f32 %v17_v1, %v17_v1 }
   0x3   :  { %v85_v8 = vadd.f32 %v84_v5, %v83_v4  ;;  %v88_v9 = vsel %vm82_vm1, %v20_v7, 0.0  ;;  %v21_v10 = vld [vmem:[%s786_s0 + $0x20] sm:$0xff]  ;;  %v22_v13 = vld [vmem:[%s786_s0 + $0x28] sm:$0xff]  ;;  %v23_v16 = vld [vmem:[%s786_s0 + $0x30] sm:$0xff]  ;;  %v221_v20 = vmul.f32 %v18_v2, %v18_v2  ;;  %v222_v24 = vmul.f32 %v19_v3, %v19_v3 }
   0x4   :  { %v90_v12 = vsel %vm82_vm1, %v21_v10, 0.0  ;;  %v92_v15 = vsel %vm82_vm1, %v22_v13, 0.0  ;;  %v94_v18 = vsel %vm82_vm1, %v23_v16, 0.0  ;;  %v24_v21 = vld [vmem:[%s786_s0 + $0x38] sm:$0xff]  ;;  %v223_v25 = vmul.f32 %v20_v7, %v20_v7  ;;  %v25_v26 = vld [vmem:[%s786_s0 + $0x40] sm:$0xff]  ;;  %v26_v32 = vld [vmem:[%s786_s0 + $0x48] sm:$0xff] }
   0x5   :  { %v87_v11 = vadd.f32 %v86_v6, %v85_v8  ;;  %v96_v23 = vsel %vm82_vm1, %v24_v21, 0.0  ;;  %v98_v28 = vsel %vm82_vm1, %v25_v26, 0.0  ;;  %v224_v29 = vmul.f32 %v21_v10, %v21_v10  ;;  %v27_v39 = vld [vmem:[%s786_s0 + $0x50] sm:$0xff]  ;;  %v28_v45 = vld [vmem:[%s786_s0 + $0x58] sm:$0xff]  ;;  %v29_v51 = vld [vmem:[%s786_s0 + $0x60] sm:$0xff] }
   0x6   :  { %v284_v30 = vsel %vm82_vm1, %v220_v19, 0.0  ;;  %v285_v31 = vsel %vm82_vm1, %v221_v20, 0.0  ;;  %v100_v35 = vsel %vm82_vm1, %v26_v32, 0.0  ;;  %v225_v36 = vmul.f32 %v22_v13, %v22_v13  ;;  %v30_v57 = vld [vmem:[%s786_s0 + $0x68] sm:$0xff]  ;;  %v31_v63 = vld [vmem:[%s786_s0 + $0x70] sm:$0xff]  ;;  %v32_v5 = vld [vmem:[%s786_s0 + $0x78] sm:$0xff] }
   0x7   :  { %v89_v14 = vadd.f32 %v88_v9, %v87_v11  ;;  %v286_v34 = vadd.f32 %v285_v31, %v284_v30  ;;  %v287_v37 = vsel %vm82_vm1, %v222_v24, 0.0  ;;  %v289_v38 = vsel %vm82_vm1, %v223_v25, 0.0  ;;  %v33_v11 = vld [vmem:[%s786_s0 + $0x80] sm:$0xff] }
   0x8   :  { %v102_v42 = vsel %vm82_vm1, %v27_v39, 0.0  ;;  %v226_v43 = vmul.f32 %v23_v16, %v23_v16  ;;  %v291_v44 = vsel %vm82_vm1, %v224_v29, 0.0  ;;  %v104_v48 = vsel %vm82_vm1, %v28_v45, 0.0  ;;  %v36_v29 = vld [vmem:[%s786_s0 + $0x98] sm:$0xff] }
   0x9   :  { %v91_v17 = vadd.f32 %v90_v12, %v89_v14  ;;  %v288_v41 = vadd.f32 %v287_v37, %v286_v34  ;;  %v227_v49 = vmul.f32 %v24_v21, %v24_v21  ;;  %v293_v50 = vsel %vm82_vm1, %v225_v36, 0.0 }
   0xa   :  { %v106_v54 = vsel %vm82_vm1, %v29_v51, 0.0  ;;  %v228_v55 = vmul.f32 %v25_v26, %v25_v26  ;;  %v295_v56 = vsel %vm82_vm1, %v226_v43, 0.0  ;;  %v108_v60 = vsel %vm82_vm1, %v30_v57, 0.0 }
   0xb   :  { %v93_v22 = vadd.f32 %v92_v15, %v91_v17  ;;  %v290_v47 = vadd.f32 %v289_v38, %v288_v41  ;;  %v229_v61 = vmul.f32 %v26_v32, %v26_v32  ;;  %v297_v62 = vsel %vm82_vm1, %v227_v49, 0.0  ;;  %v34_v17 = vld [vmem:[%s786_s0 + $0x88] sm:$0xff] }
   0xc   :  { %v110_v2 = vsel %vm82_vm1, %v31_v63, 0.0  ;;  %v230_v3 = vmul.f32 %v27_v39, %v27_v39  ;;  %v299_v4 = vsel %vm82_vm1, %v228_v55, 0.0  ;;  %v112_v8 = vsel %vm82_vm1, %v32_v5, 0.0  ;;  %v38_v41 = vld [vmem:[%s786_s0 + $0xa8] sm:$0xff] }
   0xd   :  { %v95_v27 = vadd.f32 %v94_v18, %v93_v22  ;;  %v292_v53 = vadd.f32 %v291_v44, %v290_v47  ;;  %v231_v9 = vmul.f32 %v28_v45, %v28_v45  ;;  %v301_v10 = vsel %vm82_vm1, %v229_v61, 0.0  ;;  %v39_v47 = vld [vmem:[%s786_s0 + $0xb0] sm:$0xff] }
   0xe   :  { %v114_v14 = vsel %vm82_vm1, %v33_v11, 0.0  ;;  %v232_v15 = vmul.f32 %v29_v51, %v29_v51  ;;  %v303_v16 = vsel %vm82_vm1, %v230_v3, 0.0  ;;  %v116_v20 = vsel %vm82_vm1, %v34_v17, 0.0 }
   0xf   :  { %v97_v33 = vadd.f32 %v96_v23, %v95_v27  ;;  %v294_v59 = vadd.f32 %v293_v50, %v292_v53  ;;  %v233_v21 = vmul.f32 %v30_v57, %v30_v57  ;;  %v305_v22 = vsel %vm82_vm1, %v231_v9, 0.0  ;;  %v35_v23 = vld [vmem:[%s786_s0 + $0x90] sm:$0xff]  ;;  %v40_v53 = vld [vmem:[%s786_s0 + $0xb8] sm:$0xff] }
  0x10   :  { %v118_v26 = vsel %vm82_vm1, %v35_v23, 0.0  ;;  %v234_v27 = vmul.f32 %v31_v63, %v31_v63  ;;  %v120_v32 = vsel %vm82_vm1, %v36_v29, 0.0  ;;  %v236_v39 = vmul.f32 %v33_v11, %v33_v11 }
  0x11   :  { %v99_v40 = vadd.f32 %v98_v28, %v97_v33  ;;  %v296_v1 = vadd.f32 %v295_v56, %v294_v59  ;;  %v307_v28 = vsel %vm82_vm1, %v232_v15, 0.0  ;;  %v235_v33 = vmul.f32 %v32_v5, %v32_v5  ;;  %v41_v59 = vld [vmem:[%s786_s0 + $0xc0] sm:$0xff] }
  0x12   :  { %v309_v34 = vsel %vm82_vm1, %v233_v21, 0.0  ;;  %v124_v44 = vsel %vm82_vm1, %v38_v41, 0.0  ;;  %v237_v45 = vmul.f32 %v34_v17, %v34_v17  ;;  %v126_v50 = vsel %vm82_vm1, %v39_v47, 0.0 }
  0x13   :  { %v101_v46 = vadd.f32 %v100_v35, %v99_v40  ;;  %v298_v7 = vadd.f32 %v297_v62, %v296_v1  ;;  %v37_v35 = vld [vmem:[%s786_s0 + $0xa0] sm:$0xff]  ;;  %v311_v40 = vsel %vm82_vm1, %v234_v27, 0.0  ;;  %v238_v51 = vmul.f32 %v35_v23, %v35_v23  ;;  %v42_v1 = vld [vmem:[%s786_s0 + $0xc8] sm:$0xff] }
  0x14   :  { %v122_v38 = vsel %vm82_vm1, %v37_v35, 0.0  ;;  %v128_v56 = vsel %vm82_vm1, %v40_v53, 0.0  ;;  %v239_v57 = vmul.f32 %v36_v29, %v36_v29  ;;  %v130_v62 = vsel %vm82_vm1, %v41_v59, 0.0 }
  0x15   :  { %v103_v52 = vadd.f32 %v102_v42, %v101_v46  ;;  %v300_v13 = vadd.f32 %v299_v4, %v298_v7  ;;  %v313_v46 = vsel %vm82_vm1, %v235_v33, 0.0  ;;  %v240_v63 = vmul.f32 %v37_v35, %v37_v35  ;;  %v43_v7 = vld [vmem:[%s786_s0 + $0xd0] sm:$0xff] }
  0x16   :  { %v132_v4 = vsel %vm82_vm1, %v42_v1, 0.0  ;;  %v241_v5 = vmul.f32 %v38_v41, %v38_v41  ;;  %v242_v11 = vmul.f32 %v39_v47, %v39_v47  ;;  %v243_v17 = vmul.f32 %v40_v53, %v40_v53 }
  0x17   :  { %v105_v58 = vadd.f32 %v104_v48, %v103_v52  ;;  %v302_v19 = vadd.f32 %v301_v10, %v300_v13  ;;  %v315_v52 = vsel %vm82_vm1, %v236_v39, 0.0  ;;  %v134_v10 = vsel %vm82_vm1, %v43_v7, 0.0  ;;  %v44_v13 = vld [vmem:[%s786_s0 + $0xd8] sm:$0xff] }
  0x18   :  { %v244_v23 = vmul.f32 %v41_v59, %v41_v59  ;;  %v245_v29 = vmul.f32 %v42_v1, %v42_v1  ;;  %v246_v35 = vmul.f32 %v43_v7, %v43_v7  ;;  %v247_v41 = vmul.f32 %v44_v13, %v44_v13 }
  0x19   :  { %v107_v0 = vadd.f32 %v106_v54, %v105_v58  ;;  %v304_v25 = vadd.f32 %v303_v16, %v302_v19  ;;  %v317_v58 = vsel %vm82_vm1, %v237_v45, 0.0  ;;  %v136_v16 = vsel %vm82_vm1, %v44_v13, 0.0  ;;  %v45_v19 = vld [vmem:[%s786_s0 + $0xe0] sm:$0xff] }
  0x1a   :  { %v248_v47 = vmul.f32 %v45_v19, %v45_v19 }
  0x1b   :  { %v109_v6 = vadd.f32 %v108_v60, %v107_v0  ;;  %v306_v31 = vadd.f32 %v305_v22, %v304_v25  ;;  %v319_v0 = vsel %vm82_vm1, %v238_v51, 0.0  ;;  %v138_v22 = vsel %vm82_vm1, %v45_v19, 0.0  ;;  %v46_v25 = vld [vmem:[%s786_s0 + $0xe8] sm:$0xff] }
  0x1c   :  { %v249_v53 = vmul.f32 %v46_v25, %v46_v25 }
  0x1d   :  { %v111_v12 = vadd.f32 %v110_v2, %v109_v6  ;;  %v308_v37 = vadd.f32 %v307_v28, %v306_v31  ;;  %v321_v6 = vsel %vm82_vm1, %v239_v57, 0.0  ;;  %v140_v28 = vsel %vm82_vm1, %v46_v25, 0.0  ;;  %v47_v31 = vld [vmem:[%s786_s0 + $0xf0] sm:$0xff] }
  0x1e   :  { %v250_v59 = vmul.f32 %v47_v31, %v47_v31 }
  0x1f   :  { %v113_v18 = vadd.f32 %v112_v8, %v111_v12  ;;  %v310_v43 = vadd.f32 %v309_v34, %v308_v37  ;;  %v323_v12 = vsel %vm82_vm1, %v240_v63, 0.0  ;;  %v142_v34 = vsel %vm82_vm1, %v47_v31, 0.0  ;;  %v48_v37 = vld [vmem:[%s786_s0 + $0xf8] sm:$0xff] }
  0x20   :  { %v251_v1 = vmul.f32 %v48_v37, %v48_v37 }
  0x21   :  { %v115_v24 = vadd.f32 %v114_v14, %v113_v18  ;;  %v312_v49 = vadd.f32 %v311_v40, %v310_v43  ;;  %v325_v18 = vsel %vm82_vm1, %v241_v5, 0.0  ;;  %v144_v40 = vsel %vm82_vm1, %v48_v37, 0.0  ;;  %v49_v43 = vld [vmem:[%s786_s0 + $0x100] sm:$0xff] }
  0x22   :  { %v252_v7 = vmul.f32 %v49_v43, %v49_v43 }
  0x23   :  { %v117_v30 = vadd.f32 %v116_v20, %v115_v24  ;;  %v314_v55 = vadd.f32 %v313_v46, %v312_v49  ;;  %v327_v24 = vsel %vm82_vm1, %v242_v11, 0.0  ;;  %v146_v46 = vsel %vm82_vm1, %v49_v43, 0.0  ;;  %v50_v49 = vld [vmem:[%s786_s0 + $0x108] sm:$0xff] }
  0x24   :  { %v253_v13 = vmul.f32 %v50_v49, %v50_v49 }
  0x25   :  { %v119_v36 = vadd.f32 %v118_v26, %v117_v30  ;;  %v316_v61 = vadd.f32 %v315_v52, %v314_v55  ;;  %v329_v30 = vsel %vm82_vm1, %v243_v17, 0.0  ;;  %v148_v52 = vsel %vm82_vm1, %v50_v49, 0.0  ;;  %v51_v55 = vld [vmem:[%s786_s0 + $0x110] sm:$0xff] }
  0x26   :  { %v254_v19 = vmul.f32 %v51_v55, %v51_v55 }
  0x27   :  { %v121_v42 = vadd.f32 %v120_v32, %v119_v36  ;;  %v318_v3 = vadd.f32 %v317_v58, %v316_v61  ;;  %v331_v36 = vsel %vm82_vm1, %v244_v23, 0.0  ;;  %v150_v58 = vsel %vm82_vm1, %v51_v55, 0.0  ;;  %v52_v61 = vld [vmem:[%s786_s0 + $0x118] sm:$0xff] }
  0x28   :  { %v255_v25 = vmul.f32 %v52_v61, %v52_v61 }
  0x29   :  { %v123_v48 = vadd.f32 %v122_v38, %v121_v42  ;;  %v320_v9 = vadd.f32 %v319_v0, %v318_v3  ;;  %v333_v42 = vsel %vm82_vm1, %v245_v29, 0.0  ;;  %v152_v0 = vsel %vm82_vm1, %v52_v61, 0.0  ;;  %v53_v3 = vld [vmem:[%s786_s0 + $0x120] sm:$0xff] }
  0x2a   :  { %v256_v31 = vmul.f32 %v53_v3, %v53_v3 }
  0x2b   :  { %v125_v54 = vadd.f32 %v124_v44, %v123_v48  ;;  %v322_v15 = vadd.f32 %v321_v6, %v320_v9  ;;  %v335_v48 = vsel %vm82_vm1, %v246_v35, 0.0  ;;  %v154_v6 = vsel %vm82_vm1, %v53_v3, 0.0  ;;  %v54_v9 = vld [vmem:[%s786_s0 + $0x128] sm:$0xff] }
  0x2c   :  { %v257_v37 = vmul.f32 %v54_v9, %v54_v9 }
  0x2d   :  { %v127_v60 = vadd.f32 %v126_v50, %v125_v54  ;;  %v324_v21 = vadd.f32 %v323_v12, %v322_v15  ;;  %v337_v54 = vsel %vm82_vm1, %v247_v41, 0.0  ;;  %v156_v12 = vsel %vm82_vm1, %v54_v9, 0.0  ;;  %v55_v15 = vld [vmem:[%s786_s0 + $0x130] sm:$0xff] }
  0x2e   :  { %v258_v43 = vmul.f32 %v55_v15, %v55_v15 }
  0x2f   :  { %v129_v2 = vadd.f32 %v128_v56, %v127_v60  ;;  %v326_v27 = vadd.f32 %v325_v18, %v324_v21  ;;  %v339_v60 = vsel %vm82_vm1, %v248_v47, 0.0  ;;  %v158_v18 = vsel %vm82_vm1, %v55_v15, 0.0  ;;  %v56_v21 = vld [vmem:[%s786_s0 + $0x138] sm:$0xff] }
  0x30   :  { %v259_v49 = vmul.f32 %v56_v21, %v56_v21 }
  0x31   :  { %v131_v8 = vadd.f32 %v130_v62, %v129_v2  ;;  %v328_v33 = vadd.f32 %v327_v24, %v326_v27  ;;  %v341_v2 = vsel %vm82_vm1, %v249_v53, 0.0  ;;  %v160_v24 = vsel %vm82_vm1, %v56_v21, 0.0  ;;  %v57_v27 = vld [vmem:[%s786_s0 + $0x140] sm:$0xff] }
  0x32   :  { %v260_v55 = vmul.f32 %v57_v27, %v57_v27 }
  0x33   :  { %v133_v14 = vadd.f32 %v132_v4, %v131_v8  ;;  %v330_v39 = vadd.f32 %v329_v30, %v328_v33  ;;  %v343_v8 = vsel %vm82_vm1, %v250_v59, 0.0  ;;  %v162_v30 = vsel %vm82_vm1, %v57_v27, 0.0  ;;  %v58_v33 = vld [vmem:[%s786_s0 + $0x148] sm:$0xff] }
  0x34   :  { %v261_v61 = vmul.f32 %v58_v33, %v58_v33 }
  0x35   :  { %v135_v20 = vadd.f32 %v134_v10, %v133_v14  ;;  %v332_v45 = vadd.f32 %v331_v36, %v330_v39  ;;  %v345_v14 = vsel %vm82_vm1, %v251_v1, 0.0  ;;  %v164_v36 = vsel %vm82_vm1, %v58_v33, 0.0  ;;  %v59_v39 = vld [vmem:[%s786_s0 + $0x150] sm:$0xff] }
  0x36   :  { %v262_v3 = vmul.f32 %v59_v39, %v59_v39 }
  0x37   :  { %v137_v26 = vadd.f32 %v136_v16, %v135_v20  ;;  %v334_v51 = vadd.f32 %v333_v42, %v332_v45  ;;  %v347_v20 = vsel %vm82_vm1, %v252_v7, 0.0  ;;  %v166_v42 = vsel %vm82_vm1, %v59_v39, 0.0  ;;  %v60_v45 = vld [vmem:[%s786_s0 + $0x158] sm:$0xff] }
  0x38   :  { %v263_v9 = vmul.f32 %v60_v45, %v60_v45 }
  0x39   :  { %v139_v32 = vadd.f32 %v138_v22, %v137_v26  ;;  %v336_v57 = vadd.f32 %v335_v48, %v334_v51  ;;  %v349_v26 = vsel %vm82_vm1, %v253_v13, 0.0  ;;  %v168_v48 = vsel %vm82_vm1, %v60_v45, 0.0  ;;  %v61_v51 = vld [vmem:[%s786_s0 + $0x160] sm:$0xff] }
  0x3a   :  { %v264_v15 = vmul.f32 %v61_v51, %v61_v51 }
  0x3b   :  { %v141_v38 = vadd.f32 %v140_v28, %v139_v32  ;;  %v338_v63 = vadd.f32 %v337_v54, %v336_v57  ;;  %v351_v32 = vsel %vm82_vm1, %v254_v19, 0.0  ;;  %v170_v54 = vsel %vm82_vm1, %v61_v51, 0.0  ;;  %v62_v57 = vld [vmem:[%s786_s0 + $0x168] sm:$0xff] }
  0x3c   :  { %v265_v21 = vmul.f32 %v62_v57, %v62_v57 }
  0x3d   :  { %v143_v44 = vadd.f32 %v142_v34, %v141_v38  ;;  %v340_v5 = vadd.f32 %v339_v60, %v338_v63  ;;  %v353_v38 = vsel %vm82_vm1, %v255_v25, 0.0  ;;  %v172_v60 = vsel %vm82_vm1, %v62_v57, 0.0  ;;  %v63_v63 = vld [vmem:[%s786_s0 + $0x170] sm:$0xff] }
  0x3e   :  { %v266_v27 = vmul.f32 %v63_v63, %v63_v63 }
  0x3f   :  { %v145_v50 = vadd.f32 %v144_v40, %v143_v44  ;;  %v342_v11 = vadd.f32 %v341_v2, %v340_v5  ;;  %v355_v44 = vsel %vm82_vm1, %v256_v31, 0.0  ;;  %v174_v2 = vsel %vm82_vm1, %v63_v63, 0.0  ;;  %v64_v5 = vld [vmem:[%s786_s0 + $0x178] sm:$0xff] }
  0x40   :  { %v267_v33 = vmul.f32 %v64_v5, %v64_v5 }
  0x41   :  { %v147_v56 = vadd.f32 %v146_v46, %v145_v50  ;;  %v344_v17 = vadd.f32 %v343_v8, %v342_v11  ;;  %v357_v50 = vsel %vm82_vm1, %v257_v37, 0.0  ;;  %v176_v8 = vsel %vm82_vm1, %v64_v5, 0.0  ;;  %v65_v11 = vld [vmem:[%s786_s0 + $0x180] sm:$0xff] }
  0x42   :  { %v268_v39 = vmul.f32 %v65_v11, %v65_v11 }
  0x43   :  { %v149_v62 = vadd.f32 %v148_v52, %v147_v56  ;;  %v346_v23 = vadd.f32 %v345_v14, %v344_v17  ;;  %v359_v56 = vsel %vm82_vm1, %v258_v43, 0.0  ;;  %v178_v14 = vsel %vm82_vm1, %v65_v11, 0.0  ;;  %v66_v17 = vld [vmem:[%s786_s0 + $0x188] sm:$0xff] }
  0x44   :  { %v269_v45 = vmul.f32 %v66_v17, %v66_v17 }
  0x45   :  { %v151_v4 = vadd.f32 %v150_v58, %v149_v62  ;;  %v348_v29 = vadd.f32 %v347_v20, %v346_v23  ;;  %v361_v62 = vsel %vm82_vm1, %v259_v49, 0.0  ;;  %v180_v20 = vsel %vm82_vm1, %v66_v17, 0.0  ;;  %v67_v23 = vld [vmem:[%s786_s0 + $0x190] sm:$0xff] }
  0x46   :  { %v270_v51 = vmul.f32 %v67_v23, %v67_v23 }
  0x47   :  { %v153_v10 = vadd.f32 %v152_v0, %v151_v4  ;;  %v350_v35 = vadd.f32 %v349_v26, %v348_v29  ;;  %v363_v4 = vsel %vm82_vm1, %v260_v55, 0.0  ;;  %v182_v26 = vsel %vm82_vm1, %v67_v23, 0.0  ;;  %v68_v29 = vld [vmem:[%s786_s0 + $0x198] sm:$0xff] }
  0x48   :  { %v271_v57 = vmul.f32 %v68_v29, %v68_v29 }
  0x49   :  { %v155_v16 = vadd.f32 %v154_v6, %v153_v10  ;;  %v352_v41 = vadd.f32 %v351_v32, %v350_v35  ;;  %v365_v10 = vsel %vm82_vm1, %v261_v61, 0.0  ;;  %v184_v32 = vsel %vm82_vm1, %v68_v29, 0.0  ;;  %v69_v35 = vld [vmem:[%s786_s0 + $0x1a0] sm:$0xff] }
  0x4a   :  { %v272_v63 = vmul.f32 %v69_v35, %v69_v35 }
  0x4b   :  { %v157_v22 = vadd.f32 %v156_v12, %v155_v16  ;;  %v354_v47 = vadd.f32 %v353_v38, %v352_v41  ;;  %v367_v16 = vsel %vm82_vm1, %v262_v3, 0.0  ;;  %v186_v38 = vsel %vm82_vm1, %v69_v35, 0.0  ;;  %v70_v41 = vld [vmem:[%s786_s0 + $0x1a8] sm:$0xff] }
  0x4c   :  { %v273_v5 = vmul.f32 %v70_v41, %v70_v41 }
  0x4d   :  { %v159_v28 = vadd.f32 %v158_v18, %v157_v22  ;;  %v356_v53 = vadd.f32 %v355_v44, %v354_v47  ;;  %v369_v22 = vsel %vm82_vm1, %v263_v9, 0.0  ;;  %v188_v44 = vsel %vm82_vm1, %v70_v41, 0.0  ;;  %v71_v47 = vld [vmem:[%s786_s0 + $0x1b0] sm:$0xff] }
  0x4e   :  { %v274_v11 = vmul.f32 %v71_v47, %v71_v47 }
  0x4f   :  { %v161_v34 = vadd.f32 %v160_v24, %v159_v28  ;;  %v358_v59 = vadd.f32 %v357_v50, %v356_v53  ;;  %v371_v28 = vsel %vm82_vm1, %v264_v15, 0.0  ;;  %v190_v50 = vsel %vm82_vm1, %v71_v47, 0.0  ;;  %v72_v53 = vld [vmem:[%s786_s0 + $0x1b8] sm:$0xff] }
  0x50   :  { %v275_v17 = vmul.f32 %v72_v53, %v72_v53 }
  0x51   :  { %v163_v40 = vadd.f32 %v162_v30, %v161_v34  ;;  %v360_v1 = vadd.f32 %v359_v56, %v358_v59  ;;  %v373_v34 = vsel %vm82_vm1, %v265_v21, 0.0  ;;  %v192_v56 = vsel %vm82_vm1, %v72_v53, 0.0  ;;  %v73_v59 = vld [vmem:[%s786_s0 + $0x1c0] sm:$0xff] }
  0x52   :  { %v276_v23 = vmul.f32 %v73_v59, %v73_v59 }
  0x53   :  { %v165_v46 = vadd.f32 %v164_v36, %v163_v40  ;;  %v362_v7 = vadd.f32 %v361_v62, %v360_v1  ;;  %v375_v40 = vsel %vm82_vm1, %v266_v27, 0.0  ;;  %v194_v62 = vsel %vm82_vm1, %v73_v59, 0.0  ;;  %v74_v1 = vld [vmem:[%s786_s0 + $0x1c8] sm:$0xff] }
  0x54   :  { %v277_v29 = vmul.f32 %v74_v1, %v74_v1 }
  0x55   :  { %v167_v52 = vadd.f32 %v166_v42, %v165_v46  ;;  %v364_v13 = vadd.f32 %v363_v4, %v362_v7  ;;  %v377_v46 = vsel %vm82_vm1, %v267_v33, 0.0  ;;  %v196_v4 = vsel %vm82_vm1, %v74_v1, 0.0  ;;  %v75_v7 = vld [vmem:[%s786_s0 + $0x1d0] sm:$0xff] }
  0x56   :  { %v278_v35 = vmul.f32 %v75_v7, %v75_v7 }
  0x57   :  { %v169_v58 = vadd.f32 %v168_v48, %v167_v52  ;;  %v366_v19 = vadd.f32 %v365_v10, %v364_v13  ;;  %v379_v52 = vsel %vm82_vm1, %v268_v39, 0.0  ;;  %v198_v10 = vsel %vm82_vm1, %v75_v7, 0.0  ;;  %v76_v13 = vld [vmem:[%s786_s0 + $0x1d8] sm:$0xff] }
  0x58   :  { %v279_v41 = vmul.f32 %v76_v13, %v76_v13 }
  0x59   :  { %v171_v0 = vadd.f32 %v170_v54, %v169_v58  ;;  %v368_v25 = vadd.f32 %v367_v16, %v366_v19  ;;  %v381_v58 = vsel %vm82_vm1, %v269_v45, 0.0  ;;  %v200_v16 = vsel %vm82_vm1, %v76_v13, 0.0  ;;  %v77_v19 = vld [vmem:[%s786_s0 + $0x1e0] sm:$0xff] }
  0x5a   :  { %v280_v45 = vmul.f32 %v77_v19, %v77_v19 }
  0x5b   :  { %v173_v6 = vadd.f32 %v172_v60, %v171_v0  ;;  %v370_v31 = vadd.f32 %v369_v22, %v368_v25  ;;  %v383_v0 = vsel %vm82_vm1, %v270_v51, 0.0  ;;  %v202_v22 = vsel %vm82_vm1, %v77_v19, 0.0  ;;  %v78_v25 = vld [vmem:[%s786_s0 + $0x1e8] sm:$0xff] }
  0x5d   :  { %v175_v12 = vadd.f32 %v174_v2, %v173_v6  ;;  %v372_v37 = vadd.f32 %v371_v28, %v370_v31  ;;  %v385_v6 = vsel %vm82_vm1, %v271_v57, 0.0  ;;  %v204_v28 = vsel %vm82_vm1, %v78_v25, 0.0  ;;  %v79_v31 = vld [vmem:[%s786_s0 + $0x1f0] sm:$0xff] }
  0x5e   :  { %v282_v53 = vmul.f32 %v79_v31, %v79_v31 }
  0x5f   :  { %v177_v18 = vadd.f32 %v176_v8, %v175_v12  ;;  %v374_v43 = vadd.f32 %v373_v34, %v372_v37  ;;  %v387_v12 = vsel %vm82_vm1, %v272_v63, 0.0  ;;  %v206_v34 = vsel %vm82_vm1, %v79_v31, 0.0  ;;  %v80_v37 = vld [vmem:[%s786_s0 + $0x1f8] sm:$0xff] }
  0x60   :  { %v283_v57 = vmul.f32 %v80_v37, %v80_v37 }
  0x61   :  { %v179_v24 = vadd.f32 %v178_v14, %v177_v18  ;;  %v376_v49 = vadd.f32 %v375_v40, %v374_v43  ;;  %v389_v18 = vsel %vm82_vm1, %v273_v5, 0.0  ;;  %v208_v40 = vsel %vm82_vm1, %v80_v37, 0.0 }
  0x63   :  { %v181_v30 = vadd.f32 %v180_v20, %v179_v24  ;;  %v378_v55 = vadd.f32 %v377_v46, %v376_v49  ;;  %v391_v24 = vsel %vm82_vm1, %v274_v11, 0.0  ;;  %v399_v46 = vsel %vm82_vm1, %v278_v35, 0.0 }
  0x64   :  { %v281_v49 = vmul.f32 %v78_v25, %v78_v25 }
  0x65   :  { %v183_v36 = vadd.f32 %v182_v26, %v181_v30  ;;  %v380_v61 = vadd.f32 %v379_v52, %v378_v55  ;;  %v393_v30 = vsel %vm82_vm1, %v275_v17, 0.0 }
  0x67   :  { %v185_v42 = vadd.f32 %v184_v32, %v183_v36  ;;  %v382_v3 = vadd.f32 %v381_v58, %v380_v61  ;;  %v395_v36 = vsel %vm82_vm1, %v276_v23, 0.0  ;;  %v405_v58 = vsel %vm82_vm1, %v281_v49, 0.0 }
  0x68   :  { %v407_v61 = vsel %vm82_vm1, %v282_v53, 0.0 }
  0x69   :  { %v187_v48 = vadd.f32 %v186_v38, %v185_v42  ;;  %v384_v9 = vadd.f32 %v383_v0, %v382_v3  ;;  %v397_v42 = vsel %vm82_vm1, %v277_v29, 0.0  ;;  %v409_v0 = vsel %vm82_vm1, %v283_v57, 0.0  ;;  %v81_v3 = vld [vmem:[%s787_s1] sm:$0x1] }
  0x6b   :  { %v189_v54 = vadd.f32 %v188_v44, %v187_v48  ;;  %v386_v15 = vadd.f32 %v385_v6, %v384_v9 }
  0x6d   :  { %v191_v60 = vadd.f32 %v190_v50, %v189_v54  ;;  %v388_v21 = vadd.f32 %v387_v12, %v386_v15  ;;  %v401_v50 = vsel %vm82_vm1, %v279_v41, 0.0  ;;  %v403_v54 = vsel %vm82_vm1, %v280_v45, 0.0  ;;  %v219_v12 = vld [vmem:[%s788_s2] sm:$0x1] }
  0x6f   :  { %v193_v2 = vadd.f32 %v192_v56, %v191_v60  ;;  %v390_v27 = vadd.f32 %v389_v18, %v388_v21 }
  0x71   :  { %v195_v8 = vadd.f32 %v194_v62, %v193_v2  ;;  %v392_v33 = vadd.f32 %v391_v24, %v390_v27 }
  0x73   :  { %v197_v14 = vadd.f32 %v196_v4, %v195_v8  ;;  %v394_v39 = vadd.f32 %v393_v30, %v392_v33 }
  0x75   :  { %v199_v20 = vadd.f32 %v198_v10, %v197_v14  ;;  %v396_v44 = vadd.f32 %v395_v36, %v394_v39 }
  0x77   :  { %v201_v26 = vadd.f32 %v200_v16, %v199_v20  ;;  %v398_v48 = vadd.f32 %v397_v42, %v396_v44 }
  0x79   :  { %v203_v32 = vadd.f32 %v202_v22, %v201_v26  ;;  %v400_v52 = vadd.f32 %v399_v46, %v398_v48 }
  0x7b   :  { %v205_v38 = vadd.f32 %v204_v28, %v203_v32  ;;  %v402_v56 = vadd.f32 %v401_v50, %v400_v52 }
  0x7d   :  { %v207_v43 = vadd.f32 %v206_v34, %v205_v38  ;;  %v404_v60 = vadd.f32 %v403_v54, %v402_v56 }
  0x7f   :  { %v209_v47 = vadd.f32 %v208_v40, %v207_v43  ;;  %v406_v63 = vadd.f32 %v405_v58, %v404_v60 }
  0x81   :  { %v210_v51 = vrot.slane %v209_v47, 4  ;;  %v408_v2 = vadd.f32 %v407_v61, %v406_v63 }
  0x83   :  { %v211_v55 = vadd.f32 %v210_v51, %v209_v47  ;;  %v410_v5 = vadd.f32 %v409_v0, %v408_v2 }
  0x85   :  { %v212_v59 = vrot.slane %v211_v55, 2  ;;  %v411_v7 = vrot.slane %v410_v5, 4 }
  0x87   :  { %v213_v62 = vadd.f32 %v212_v59, %v211_v55  ;;  %v412_v8 = vadd.f32 %v411_v7, %v410_v5 }
  0x89   :  { %v214_v1 = vrot.slane %v213_v62, 1  ;;  %v413_v9 = vrot.slane %v412_v8, 2 }
  0x8b   :  { %v215_v4 = vadd.f32 %v214_v1, %v213_v62  ;;  %v414_v10 = vadd.f32 %v413_v9, %v412_v8 }
  0x8d   :  { %v216_v6 = vadd.f32 %v215_v4, %v81_v3  ;;  %v415_v11 = vrot.slane %v414_v10, 1 }
  0x8f   :  { %218 = vst.msk [vmem:[%s787_s1] sm:$0x1] %vm14_vm0, %v216_v6  ;;  %v416_v13 = vadd.f32 %v415_v11, %v414_v10 }
  0x91   :  { %v417_v14 = vadd.f32 %v416_v13, %v219_v12 }
  0x93   :  { %418 = vst.msk [vmem:[%s788_s2] sm:$0x1] %vm14_vm0, %v417_v14 }

// kernel: attention_generator_forward.59
= control target key start
LH: loop header
LB: loop body
LE: loop exit
PB: predicated region body
PF: predicated region fallthrough
CT: control target
= control target key end

     0   :  { %vm278_vm0 = vcmask 64512   ;;  %s958_s0 = inlined_call_operand.vmem [shape: f32[512,8], index: 0, kind: input, shape index: {}]   ;;  %s959_s1 = inlined_call_operand.vmem [shape: f32[1,8], index: 1, kind: input, shape index: {}]   ;;  %s960_s2 = inlined_call_operand.vmem [shape: f32[1,8], index: 2, kind: input, shape index: {}]   ;;  %s961_s3 = inlined_call_operand.vmem [shape: f32[512,8], index: 3, kind: output, shape index: {}]  }
   0x1   :  { %v14_v0 = vld [vmem:[%s958_s0] sm:$0xff]  ;;  %v15_v3 = vld [vmem:[%s958_s0 + $0x8] sm:$0xff]  ;;  %v16_v6 = vld [vmem:[%s958_s0 + $0x10] sm:$0xff] }
   0x2   :  { %v375_v1 = vld [vmem:[%s959_s1] ss:$0 sm:$0xff]  ;;  %v17_v7 = vld [vmem:[%s958_s0 + $0x18] sm:$0xff]  ;;  %v19_v12 = vld [vmem:[%s958_s0 + $0x28] sm:$0xff] }
   0x3   :  { %v380_v2 = vld [vmem:[%s960_s2] ss:$0 sm:$0xff]  ;;  %v82_v4 = vmul.f32 %v375_v1, %v14_v0  ;;  %v83_v5 = vmul.f32 %v375_v1, %v15_v3  ;;  %v84_v9 = vmul.f32 %v375_v1, %v16_v6  ;;  %v85_v10 = vmul.f32 %v375_v1, %v17_v7  ;;  %v20_v13 = vld [vmem:[%s958_s0 + $0x30] sm:$0xff]  ;;  %v21_v14 = vld [vmem:[%s958_s0 + $0x38] sm:$0xff] }
   0x4   :  { %v18_v8 = vld [vmem:[%s958_s0 + $0x20] sm:$0xff]  ;;  %v87_v17 = vmul.f32 %v375_v1, %v19_v12  ;;  %v88_v18 = vmul.f32 %v375_v1, %v20_v13  ;;  %v89_v22 = vmul.f32 %v375_v1, %v21_v14  ;;  %v23_v24 = vld [vmem:[%s958_s0 + $0x48] sm:$0xff]  ;;  %v24_v29 = vld [vmem:[%s958_s0 + $0x50] sm:$0xff] }
   0x5   :  { %v86_v11 = vmul.f32 %v375_v1, %v18_v8  ;;  %v150_v15 = vadd.f32 %v380_v2, %v82_v4  ;;  %v151_v16 = vadd.f32 %v380_v2, %v83_v5  ;;  %v152_v19 = vadd.f32 %v380_v2, %v84_v9  ;;  %v22_v23 = vld [vmem:[%s958_s0 + $0x40] sm:$0xff]  ;;  %v25_v30 = vld [vmem:[%s958_s0 + $0x58] sm:$0xff]  ;;  %v27_v35 = vld [vmem:[%s958_s0 + $0x68] sm:$0xff] }
   0x6   :  { %v153_v20 = vadd.f32 %v380_v2, %v85_v10  ;;  %v155_v27 = vadd.f32 %v380_v2, %v87_v17  ;;  %v156_v28 = vadd.f32 %v380_v2, %v88_v18  ;;  %v26_v31 = vld [vmem:[%s958_s0 + $0x60] sm:$0xff]  ;;  %v157_v34 = vadd.f32 %v380_v2, %v89_v22  ;;  %v28_v36 = vld [vmem:[%s958_s0 + $0x70] sm:$0xff]  ;;  %v29_v41 = vld [vmem:[%s958_s0 + $0x78] sm:$0xff] }
   0x7   :  { %v154_v21 = vadd.f32 %v380_v2, %v86_v11  ;;  %v214_v25 = vmax.f32 %v150_v15, 0.0  ;;  %v215_v26 = vmax.f32 %v151_v16, 0.0  ;;  %v216_v32 = vmax.f32 %v152_v19, 0.0  ;;  %v30_v54 = vld [vmem:[%s958_s0 + $0x80] sm:$0xff]  ;;  %v31_v55 = vld [vmem:[%s958_s0 + $0x88] sm:$0xff]  ;;  %v32_v58 = vld [vmem:[%s958_s0 + $0x90] sm:$0xff] }
   0x8   :  { %v217_v33 = vmax.f32 %v153_v20, 0.0  ;;  %v219_v38 = vmax.f32 %v155_v27, 0.0  ;;  %v90_v39 = vmul.f32 %v375_v1, %v22_v23  ;;  %v91_v40 = vmul.f32 %v375_v1, %v23_v24  ;;  %v33_v59 = vld [vmem:[%s958_s0 + $0x98] sm:$0xff]  ;;  %v34_v62 = vld [vmem:[%s958_s0 + $0xa0] sm:$0xff]  ;;  %v35_v5 = vld [vmem:[%s958_s0 + $0xa8] sm:$0xff] }
   0x9   :  { %279 = vst.msk [vmem:[%s961_s3] sm:$0xff] %vm278_vm0, %v214_v25  ;;  %v218_v37 = vmax.f32 %v154_v21, 0.0  ;;  %v220_v42 = vmax.f32 %v156_v28, 0.0  ;;  %v92_v43 = vmul.f32 %v375_v1, %v24_v29  ;;  %v93_v44 = vmul.f32 %v375_v1, %v25_v30  ;;  %v36_v10 = vld [vmem:[%s958_s0 + $0xb0] sm:$0xff]  ;;  %v37_v14 = vld [vmem:[%s958_s0 + $0xb8] sm:$0xff]  ;;  %v38_v18 = vld [vmem:[%s958_s0 + $0xc0] sm:$0xff] }
   0xa   :  { %280 = vst.msk [vmem:[%s961_s3 + $0x8] sm:$0xff] %vm278_vm0, %v215_v26  ;;  %v94_v45 = vmul.f32 %v375_v1, %v26_v31  ;;  %v158_v46 = vadd.f32 %v380_v2, %v90_v39  ;;  %v159_v47 = vadd.f32 %v380_v2, %v91_v40  ;;  %v95_v48 = vmul.f32 %v375_v1, %v27_v35  ;;  %v39_v22 = vld [vmem:[%s958_s0 + $0xc8] sm:$0xff]  ;;  %v40_v26 = vld [vmem:[%s958_s0 + $0xd0] sm:$0xff]  ;;  %v41_v30 = vld [vmem:[%s958_s0 + $0xd8] sm:$0xff] }
   0xb   :  { %281 = vst.msk [vmem:[%s961_s3 + $0x10] sm:$0xff] %vm278_vm0, %v216_v32  ;;  %v96_v49 = vmul.f32 %v375_v1, %v28_v36  ;;  %v221_v50 = vmax.f32 %v157_v34, 0.0  ;;  %v160_v51 = vadd.f32 %v380_v2, %v92_v43  ;;  %v161_v52 = vadd.f32 %v380_v2, %v93_v44  ;;  %v42_v34 = vld [vmem:[%s958_s0 + $0xe0] sm:$0xff] }
   0xc   :  { %282 = vst.msk [vmem:[%s961_s3 + $0x18] sm:$0xff] %vm278_vm0, %v217_v33  ;;  %v97_v53 = vmul.f32 %v375_v1, %v29_v41  ;;  %v222_v56 = vmax.f32 %v158_v46, 0.0  ;;  %v162_v57 = vadd.f32 %v380_v2, %v94_v45  ;;  %v223_v60 = vmax.f32 %v159_v47, 0.0  ;;  %v45_v46 = vld [vmem:[%s958_s0 + $0xf8] sm:$0xff] }
   0xd   :  { %283 = vst.msk [vmem:[%s961_s3 + $0x20] sm:$0xff] %vm278_vm0, %v218_v37  ;;  %v163_v61 = vadd.f32 %v380_v2, %v95_v48  ;;  %v224_v63 = vmax.f32 %v160_v51, 0.0  ;;  %v164_v0 = vadd.f32 %v380_v2, %v96_v49  ;;  %v98_v3 = vmul.f32 %v375_v1, %v30_v54  ;;  %v47_v54 = vld [vmem:[%s958_s0 + $0x108] sm:$0xff] }
   0xe   :  { %284 = vst.msk [vmem:[%s961_s3 + $0x28] sm:$0xff] %vm278_vm0, %v219_v38  ;;  %v99_v4 = vmul.f32 %v375_v1, %v31_v55  ;;  %v225_v6 = vmax.f32 %v161_v52, 0.0  ;;  %v165_v7 = vadd.f32 %v380_v2, %v97_v53  ;;  %v100_v8 = vmul.f32 %v375_v1, %v32_v58  ;;  %v43_v38 = vld [vmem:[%s958_s0 + $0xe8] sm:$0xff]  ;;  %v48_v58 = vld [vmem:[%s958_s0 + $0x110] sm:$0xff] }
   0xf   :  { %285 = vst.msk [vmem:[%s961_s3 + $0x30] sm:$0xff] %vm278_vm0, %v220_v42  ;;  %v101_v9 = vmul.f32 %v375_v1, %v33_v59  ;;  %v226_v11 = vmax.f32 %v162_v57, 0.0  ;;  %v166_v12 = vadd.f32 %v380_v2, %v98_v3  ;;  %v102_v13 = vmul.f32 %v375_v1, %v34_v62  ;;  %v44_v42 = vld [vmem:[%s958_s0 + $0xf0] sm:$0xff]  ;;  %v49_v62 = vld [vmem:[%s958_s0 + $0x118] sm:$0xff] }
  0x10   :  { %286 = vst.msk [vmem:[%s961_s3 + $0x38] sm:$0xff] %vm278_vm0, %v221_v50  ;;  %v227_v15 = vmax.f32 %v163_v61, 0.0  ;;  %v167_v16 = vadd.f32 %v380_v2, %v99_v4  ;;  %v103_v17 = vmul.f32 %v375_v1, %v35_v5  ;;  %v228_v19 = vmax.f32 %v164_v0, 0.0  ;;  %v46_v50 = vld [vmem:[%s958_s0 + $0x100] sm:$0xff] }
  0x11   :  { %287 = vst.msk [vmem:[%s961_s3 + $0x40] sm:$0xff] %vm278_vm0, %v222_v56  ;;  %v168_v20 = vadd.f32 %v380_v2, %v100_v8  ;;  %v104_v21 = vmul.f32 %v375_v1, %v36_v10  ;;  %v229_v23 = vmax.f32 %v165_v7, 0.0  ;;  %v169_v24 = vadd.f32 %v380_v2, %v101_v9  ;;  %v50_v4 = vld [vmem:[%s958_s0 + $0x120] sm:$0xff]  ;;  %v51_v8 = vld [vmem:[%s958_s0 + $0x128] sm:$0xff] }
  0x12   :  { %288 = vst.msk [vmem:[%s961_s3 + $0x48] sm:$0xff] %vm278_vm0, %v223_v60  ;;  %v105_v25 = vmul.f32 %v375_v1, %v37_v14  ;;  %v230_v27 = vmax.f32 %v166_v12, 0.0  ;;  %v170_v28 = vadd.f32 %v380_v2, %v102_v13  ;;  %v106_v29 = vmul.f32 %v375_v1, %v38_v18  ;;  %v52_v12 = vld [vmem:[%s958_s0 + $0x130] sm:$0xff] }
  0x13   :  { %289 = vst.msk [vmem:[%s961_s3 + $0x50] sm:$0xff] %vm278_vm0, %v224_v63  ;;  %v231_v31 = vmax.f32 %v167_v16, 0.0  ;;  %v171_v32 = vadd.f32 %v380_v2, %v103_v17  ;;  %v107_v33 = vmul.f32 %v375_v1, %v39_v22  ;;  %v232_v35 = vmax.f32 %v168_v20, 0.0  ;;  %v53_v16 = vld [vmem:[%s958_s0 + $0x138] sm:$0xff]  ;;  %v54_v20 = vld [vmem:[%s958_s0 + $0x140] sm:$0xff] }
  0x14   :  { %290 = vst.msk [vmem:[%s961_s3 + $0x58] sm:$0xff] %vm278_vm0, %v225_v6  ;;  %v172_v36 = vadd.f32 %v380_v2, %v104_v21  ;;  %v108_v37 = vmul.f32 %v375_v1, %v40_v26  ;;  %v233_v39 = vmax.f32 %v169_v24, 0.0  ;;  %v173_v40 = vadd.f32 %v380_v2, %v105_v25  ;;  %v55_v24 = vld [vmem:[%s958_s0 + $0x148] sm:$0xff] }
  0x15   :  { %291 = vst.msk [vmem:[%s961_s3 + $0x60] sm:$0xff] %vm278_vm0, %v226_v11  ;;  %v109_v41 = vmul.f32 %v375_v1, %v41_v30  ;;  %v234_v43 = vmax.f32 %v170_v28, 0.0  ;;  %v174_v44 = vadd.f32 %v380_v2, %v106_v29  ;;  %v110_v45 = vmul.f32 %v375_v1, %v42_v34  ;;  %v56_v28 = vld [vmem:[%s958_s0 + $0x150] sm:$0xff] }
  0x16   :  { %292 = vst.msk [vmem:[%s961_s3 + $0x68] sm:$0xff] %vm278_vm0, %v227_v15  ;;  %v235_v47 = vmax.f32 %v171_v32, 0.0  ;;  %v175_v48 = vadd.f32 %v380_v2, %v107_v33  ;;  %v111_v49 = vmul.f32 %v375_v1, %v43_v38  ;;  %v236_v51 = vmax.f32 %v172_v36, 0.0  ;;  %v57_v32 = vld [vmem:[%s958_s0 + $0x158] sm:$0xff]  ;;  %v58_v36 = vld [vmem:[%s958_s0 + $0x160] sm:$0xff] }
  0x17   :  { %293 = vst.msk [vmem:[%s961_s3 + $0x70] sm:$0xff] %vm278_vm0, %v228_v19  ;;  %v176_v52 = vadd.f32 %v380_v2, %v108_v37  ;;  %v112_v53 = vmul.f32 %v375_v1, %v44_v42  ;;  %v237_v55 = vmax.f32 %v173_v40, 0.0  ;;  %v177_v56 = vadd.f32 %v380_v2, %v109_v41  ;;  %v59_v40 = vld [vmem:[%s958_s0 + $0x168] sm:$0xff] }
  0x18   :  { %294 = vst.msk [vmem:[%s961_s3 + $0x78] sm:$0xff] %vm278_vm0, %v229_v23  ;;  %v113_v57 = vmul.f32 %v375_v1, %v45_v46  ;;  %v238_v59 = vmax.f32 %v174_v44, 0.0  ;;  %v178_v60 = vadd.f32 %v380_v2, %v110_v45  ;;  %v114_v61 = vmul.f32 %v375_v1, %v46_v50  ;;  %v60_v44 = vld [vmem:[%s958_s0 + $0x170] sm:$0xff] }
  0x19   :  { %295 = vst.msk [vmem:[%s961_s3 + $0x80] sm:$0xff] %vm278_vm0, %v230_v27  ;;  %v239_v63 = vmax.f32 %v175_v48, 0.0  ;;  %v179_v0 = vadd.f32 %v380_v2, %v111_v49  ;;  %v115_v3 = vmul.f32 %v375_v1, %v47_v54  ;;  %v240_v5 = vmax.f32 %v176_v52, 0.0  ;;  %v61_v48 = vld [vmem:[%s958_s0 + $0x178] sm:$0xff]  ;;  %v62_v52 = vld [vmem:[%s958_s0 + $0x180] sm:$0xff] }
  0x1a   :  { %296 = vst.msk [vmem:[%s961_s3 + $0x88] sm:$0xff] %vm278_vm0, %v231_v31  ;;  %v180_v6 = vadd.f32 %v380_v2, %v112_v53  ;;  %v116_v7 = vmul.f32 %v375_v1, %v48_v58  ;;  %v241_v9 = vmax.f32 %v177_v56, 0.0  ;;  %v181_v10 = vadd.f32 %v380_v2, %v113_v57  ;;  %v63_v56 = vld [vmem:[%s958_s0 + $0x188] sm:$0xff] }
  0x1b   :  { %297 = vst.msk [vmem:[%s961_s3 + $0x90] sm:$0xff] %vm278_vm0, %v232_v35  ;;  %v117_v11 = vmul.f32 %v375_v1, %v49_v62  ;;  %v242_v13 = vmax.f32 %v178_v60, 0.0  ;;  %v182_v14 = vadd.f32 %v380_v2, %v114_v61  ;;  %v118_v15 = vmul.f32 %v375_v1, %v50_v4  ;;  %v64_v60 = vld [vmem:[%s958_s0 + $0x190] sm:$0xff] }
  0x1c   :  { %298 = vst.msk [vmem:[%s961_s3 + $0x98] sm:$0xff] %vm278_vm0, %v233_v39  ;;  %v243_v17 = vmax.f32 %v179_v0, 0.0  ;;  %v183_v18 = vadd.f32 %v380_v2, %v115_v3  ;;  %v119_v19 = vmul.f32 %v375_v1, %v51_v8  ;;  %v244_v21 = vmax.f32 %v180_v6, 0.0  ;;  %v65_v0 = vld [vmem:[%s958_s0 + $0x198] sm:$0xff] }
  0x1d   :  { %299 = vst.msk [vmem:[%s961_s3 + $0xa0] sm:$0xff] %vm278_vm0, %v234_v43  ;;  %v184_v22 = vadd.f32 %v380_v2, %v116_v7  ;;  %v120_v23 = vmul.f32 %v375_v1, %v52_v12  ;;  %v245_v25 = vmax.f32 %v181_v10, 0.0  ;;  %v185_v26 = vadd.f32 %v380_v2, %v117_v11  ;;  %v77_v3 = vld [vmem:[%s958_s0 + $0x1f8] sm:$0xff]  ;;  %v66_v7 = vld [vmem:[%s958_s0 + $0x1a0] sm:$0xff]  ;;  %v67_v11 = vld [vmem:[%s958_s0 + $0x1a8] sm:$0xff] }
  0x1e   :  { %300 = vst.msk [vmem:[%s961_s3 + $0xa8] sm:$0xff] %vm278_vm0, %v235_v47  ;;  %v121_v27 = vmul.f32 %v375_v1, %v53_v16  ;;  %v246_v29 = vmax.f32 %v182_v14, 0.0  ;;  %v186_v30 = vadd.f32 %v380_v2, %v118_v15  ;;  %v122_v31 = vmul.f32 %v375_v1, %v54_v20  ;;  %v68_v15 = vld [vmem:[%s958_s0 + $0x1b0] sm:$0xff]  ;;  %v69_v20 = vld [vmem:[%s958_s0 + $0x1b8] sm:$0xff] }
  0x1f   :  { %301 = vst.msk [vmem:[%s961_s3 + $0xb0] sm:$0xff] %vm278_vm0, %v236_v51  ;;  %v247_v33 = vmax.f32 %v183_v18, 0.0  ;;  %v187_v34 = vadd.f32 %v380_v2, %v119_v19  ;;  %v123_v35 = vmul.f32 %v375_v1, %v55_v24  ;;  %v248_v37 = vmax.f32 %v184_v22, 0.0  ;;  %v70_v24 = vld [vmem:[%s958_s0 + $0x1c0] sm:$0xff] }
  0x20   :  { %302 = vst.msk [vmem:[%s961_s3 + $0xb8] sm:$0xff] %vm278_vm0, %v237_v55  ;;  %v188_v38 = vadd.f32 %v380_v2, %v120_v23  ;;  %v124_v39 = vmul.f32 %v375_v1, %v56_v28  ;;  %v249_v41 = vmax.f32 %v185_v26, 0.0  ;;  %v189_v42 = vadd.f32 %v380_v2, %v121_v27 }
  0x21   :  { %303 = vst.msk [vmem:[%s961_s3 + $0xc0] sm:$0xff] %vm278_vm0, %v238_v59  ;;  %v125_v43 = vmul.f32 %v375_v1, %v57_v32  ;;  %v250_v45 = vmax.f32 %v186_v30, 0.0  ;;  %v190_v46 = vadd.f32 %v380_v2, %v122_v31  ;;  %v126_v47 = vmul.f32 %v375_v1, %v58_v36 }
  0x22   :  { %304 = vst.msk [vmem:[%s961_s3 + $0xc8] sm:$0xff] %vm278_vm0, %v239_v63  ;;  %v251_v49 = vmax.f32 %v187_v34, 0.0  ;;  %v191_v50 = vadd.f32 %v380_v2, %v123_v35  ;;  %v127_v51 = vmul.f32 %v375_v1, %v59_v40  ;;  %v252_v53 = vmax.f32 %v188_v38, 0.0 }
  0x23   :  { %305 = vst.msk [vmem:[%s961_s3 + $0xd0] sm:$0xff] %vm278_vm0, %v240_v5  ;;  %v192_v54 = vadd.f32 %v380_v2, %v124_v39  ;;  %v128_v55 = vmul.f32 %v375_v1, %v60_v44  ;;  %v253_v57 = vmax.f32 %v189_v42, 0.0  ;;  %v193_v58 = vadd.f32 %v380_v2, %v125_v43 }
  0x24   :  { %306 = vst.msk [vmem:[%s961_s3 + $0xd8] sm:$0xff] %vm278_vm0, %v241_v9  ;;  %v129_v59 = vmul.f32 %v375_v1, %v61_v48  ;;  %v254_v61 = vmax.f32 %v190_v46, 0.0  ;;  %v194_v62 = vadd.f32 %v380_v2, %v126_v47  ;;  %v130_v63 = vmul.f32 %v375_v1, %v62_v52 }
  0x25   :  { %307 = vst.msk [vmem:[%s961_s3 + $0xe0] sm:$0xff] %vm278_vm0, %v242_v13  ;;  %v255_v4 = vmax.f32 %v191_v50, 0.0  ;;  %v195_v5 = vadd.f32 %v380_v2, %v127_v51  ;;  %v131_v6 = vmul.f32 %v375_v1, %v63_v56  ;;  %v256_v8 = vmax.f32 %v192_v54, 0.0 }
  0x26   :  { %308 = vst.msk [vmem:[%s961_s3 + $0xe8] sm:$0xff] %vm278_vm0, %v243_v17  ;;  %v196_v9 = vadd.f32 %v380_v2, %v128_v55  ;;  %v132_v10 = vmul.f32 %v375_v1, %v64_v60  ;;  %v257_v12 = vmax.f32 %v193_v58, 0.0  ;;  %v197_v13 = vadd.f32 %v380_v2, %v129_v59 }
  0x27   :  { %309 = vst.msk [vmem:[%s961_s3 + $0xf0] sm:$0xff] %vm278_vm0, %v244_v21  ;;  %v133_v14 = vmul.f32 %v375_v1, %v65_v0  ;;  %v145_v16 = vmul.f32 %v375_v1, %v77_v3  ;;  %v258_v17 = vmax.f32 %v194_v62, 0.0  ;;  %v198_v18 = vadd.f32 %v380_v2, %v130_v63 }
  0x28   :  { %310 = vst.msk [vmem:[%s961_s3 + $0xf8] sm:$0xff] %vm278_vm0, %v245_v25  ;;  %v134_v19 = vmul.f32 %v375_v1, %v66_v7  ;;  %v259_v21 = vmax.f32 %v195_v5, 0.0  ;;  %v199_v22 = vadd.f32 %v380_v2, %v131_v6  ;;  %v135_v23 = vmul.f32 %v375_v1, %v67_v11 }
  0x29   :  { %311 = vst.msk [vmem:[%s961_s3 + $0x100] sm:$0xff] %vm278_vm0, %v246_v29  ;;  %v827_v25 = vadd.f32 %v380_v2, %v145_v16  ;;  %v260_v26 = vmax.f32 %v196_v9, 0.0  ;;  %v200_v27 = vadd.f32 %v380_v2, %v132_v10  ;;  %v136_v28 = vmul.f32 %v375_v1, %v68_v15  ;;  %v71_v29 = vld [vmem:[%s958_s0 + $0x1c8] sm:$0xff] }
  0x2a   :  { %312 = vst.msk [vmem:[%s961_s3 + $0x108] sm:$0xff] %vm278_vm0, %v247_v33  ;;  %v261_v30 = vmax.f32 %v197_v13, 0.0  ;;  %v201_v31 = vadd.f32 %v380_v2, %v133_v14  ;;  %v137_v32 = vmul.f32 %v375_v1, %v69_v20  ;;  %v72_v33 = vld [vmem:[%s958_s0 + $0x1d0] sm:$0xff]  ;;  %v262_v34 = vmax.f32 %v198_v18, 0.0 }
  0x2b   :  { %313 = vst.msk [vmem:[%s961_s3 + $0x110] sm:$0xff] %vm278_vm0, %v248_v37  ;;  %v202_v35 = vadd.f32 %v380_v2, %v134_v19  ;;  %v138_v36 = vmul.f32 %v375_v1, %v70_v24  ;;  %v73_v37 = vld [vmem:[%s958_s0 + $0x1d8] sm:$0xff]  ;;  %v263_v38 = vmax.f32 %v199_v22, 0.0  ;;  %v203_v39 = vadd.f32 %v380_v2, %v135_v23 }
  0x2c   :  { %314 = vst.msk [vmem:[%s961_s3 + $0x118] sm:$0xff] %vm278_vm0, %v249_v41  ;;  %v139_v40 = vmul.f32 %v375_v1, %v71_v29  ;;  %v74_v41 = vld [vmem:[%s958_s0 + $0x1e0] sm:$0xff]  ;;  %v264_v42 = vmax.f32 %v200_v27, 0.0  ;;  %v204_v43 = vadd.f32 %v380_v2, %v136_v28  ;;  %v140_v44 = vmul.f32 %v375_v1, %v72_v33 }
  0x2d   :  { %315 = vst.msk [vmem:[%s961_s3 + $0x120] sm:$0xff] %vm278_vm0, %v250_v45  ;;  %v75_v45 = vld [vmem:[%s958_s0 + $0x1e8] sm:$0xff]  ;;  %v265_v46 = vmax.f32 %v201_v31, 0.0  ;;  %v205_v47 = vadd.f32 %v380_v2, %v137_v32  ;;  %v141_v48 = vmul.f32 %v375_v1, %v73_v37  ;;  %v266_v50 = vmax.f32 %v202_v35, 0.0 }
  0x2e   :  { %316 = vst.msk [vmem:[%s961_s3 + $0x128] sm:$0xff] %vm278_vm0, %v251_v49  ;;  %v76_v49 = vld [vmem:[%s958_s0 + $0x1f0] sm:$0xff]  ;;  %v206_v51 = vadd.f32 %v380_v2, %v138_v36  ;;  %v142_v52 = vmul.f32 %v375_v1, %v74_v41  ;;  %v207_v54 = vadd.f32 %v380_v2, %v139_v40  ;;  %v143_v55 = vmul.f32 %v375_v1, %v75_v45 }
  0x2f   :  { %317 = vst.msk [vmem:[%s961_s3 + $0x130] sm:$0xff] %vm278_vm0, %v252_v53  ;;  %v267_v53 = vmax.f32 %v203_v39, 0.0  ;;  %v268_v56 = vmax.f32 %v204_v43, 0.0  ;;  %v144_v58 = vmul.f32 %v375_v1, %v76_v49  ;;  %v269_v59 = vmax.f32 %v205_v47, 0.0 }
  0x30   :  { %318 = vst.msk [vmem:[%s961_s3 + $0x138] sm:$0xff] %vm278_vm0, %v253_v57  ;;  %v208_v57 = vadd.f32 %v380_v2, %v140_v44  ;;  %v209_v60 = vadd.f32 %v380_v2, %v141_v48  ;;  %v210_v62 = vadd.f32 %v380_v2, %v142_v52  ;;  %v271_v1 = vmax.f32 %v207_v54, 0.0 }
  0x31   :  { %319 = vst.msk [vmem:[%s961_s3 + $0x140] sm:$0xff] %vm278_vm0, %v254_v61  ;;  %v270_v61 = vmax.f32 %v206_v51, 0.0  ;;  %v211_v63 = vadd.f32 %v380_v2, %v143_v55  ;;  %v212_v3 = vadd.f32 %v380_v2, %v144_v58  ;;  %v277_v7 = vmax.f32 %v827_v25, 0.0 }
  0x32   :  { %320 = vst.msk [vmem:[%s961_s3 + $0x148] sm:$0xff] %vm278_vm0, %v255_v4  ;;  %v272_v0 = vmax.f32 %v208_v57, 0.0  ;;  %v273_v4 = vmax.f32 %v209_v60, 0.0  ;;  %v274_v5 = vmax.f32 %v210_v62, 0.0 }
  0x33   :  { %321 = vst.msk [vmem:[%s961_s3 + $0x150] sm:$0xff] %vm278_vm0, %v256_v8  ;;  %v275_v6 = vmax.f32 %v211_v63, 0.0  ;;  %v276_v2 = vmax.f32 %v212_v3, 0.0 }
  0x34   :  { %322 = vst.msk [vmem:[%s961_s3 + $0x158] sm:$0xff] %vm278_vm0, %v257_v12 }
  0x35   :  { %323 = vst.msk [vmem:[%s961_s3 + $0x160] sm:$0xff] %vm278_vm0, %v258_v17 }
  0x36   :  { %324 = vst.msk [vmem:[%s961_s3 + $0x168] sm:$0xff] %vm278_vm0, %v259_v21 }
  0x37   :  { %325 = vst.msk [vmem:[%s961_s3 + $0x170] sm:$0xff] %vm278_vm0, %v260_v26 }
  0x38   :  { %326 = vst.msk [vmem:[%s961_s3 + $0x178] sm:$0xff] %vm278_vm0, %v261_v30 }
  0x39   :  { %327 = vst.msk [vmem:[%s961_s3 + $0x180] sm:$0xff] %vm278_vm0, %v262_v34 }
  0x3a   :  { %328 = vst.msk [vmem:[%s961_s3 + $0x188] sm:$0xff] %vm278_vm0, %v263_v38 }
  0x3b   :  { %329 = vst.msk [vmem:[%s961_s3 + $0x190] sm:$0xff] %vm278_vm0, %v264_v42 }
  0x3c   :  { %330 = vst.msk [vmem:[%s961_s3 + $0x198] sm:$0xff] %vm278_vm0, %v265_v46 }
  0x3d   :  { %331 = vst.msk [vmem:[%s961_s3 + $0x1a0] sm:$0xff] %vm278_vm0, %v266_v50 }
  0x3e   :  { %332 = vst.msk [vmem:[%s961_s3 + $0x1a8] sm:$0xff] %vm278_vm0, %v267_v53 }
  0x3f   :  { %333 = vst.msk [vmem:[%s961_s3 + $0x1b0] sm:$0xff] %vm278_vm0, %v268_v56 }
  0x40   :  { %334 = vst.msk [vmem:[%s961_s3 + $0x1b8] sm:$0xff] %vm278_vm0, %v269_v59 }
  0x41   :  { %335 = vst.msk [vmem:[%s961_s3 + $0x1c0] sm:$0xff] %vm278_vm0, %v270_v61 }
  0x42   :  { %336 = vst.msk [vmem:[%s961_s3 + $0x1c8] sm:$0xff] %vm278_vm0, %v271_v1 }
  0x43   :  { %337 = vst.msk [vmem:[%s961_s3 + $0x1d0] sm:$0xff] %vm278_vm0, %v272_v0 }
  0x44   :  { %338 = vst.msk [vmem:[%s961_s3 + $0x1d8] sm:$0xff] %vm278_vm0, %v273_v4 }
  0x45   :  { %339 = vst.msk [vmem:[%s961_s3 + $0x1e0] sm:$0xff] %vm278_vm0, %v274_v5 }
  0x46   :  { %340 = vst.msk [vmem:[%s961_s3 + $0x1e8] sm:$0xff] %vm278_vm0, %v275_v6 }
  0x47   :  { %341 = vst.msk [vmem:[%s961_s3 + $0x1f0] sm:$0xff] %vm278_vm0, %v276_v2 }
  0x48   :  { %342 = vst.msk [vmem:[%s961_s3 + $0x1f8] sm:$0xff] %vm278_vm0, %v277_v7 }

// kernel: attention_generator_forward.78
= control target key start
LH: loop header
LB: loop body
LE: loop exit
PB: predicated region body
PF: predicated region fallthrough
CT: control target
= control target key end

     0   :  { %s1141_s12 = smov 0   ;;  %s1143_s13 = smov 0   ;;  %s1307_s0 = inlined_call_operand.vmem [shape: bf16[512,98], index: 0, kind: input, shape index: {}]   ;;  %s1308_s1 = inlined_call_operand.vmem [shape: bf16[98,128], index: 1, kind: input, shape index: {}]   ;;  %s1309_s2 = inlined_call_operand.vmem [shape: f32[1,128], index: 2, kind: input, shape index: {}]   ;;  %s1310_s3 = inlined_call_operand.vmem [shape: f32[512,128], index: 3, kind: output, shape index: {}]  }
   0x1   :  { %s1145_s14 = smov 0  }
   0x2 LB: > { %s32_s15 = sadd.s32 1, %s1115_s13  ;;  %p918_p0 = scmp.ge.s32.totalorder %s1119_s14, 1  ;;  %s1119_s14 = sphi %s1145_s14, %s13_s14   ;;  %s1115_s13 = sphi %s1143_s13, %s1312_s13   ;;  %s1111_s12 = sphi %s1141_s12, %s1311_s12  }
   0x3   : > { %p34_p1 = scmp.ge.s32.totalorder %s32_s15, 2  ;;  %p188_p2 = scmp.lt.s32.totalorder %s1119_s14, 3 }
   0x5   : > { %s1314_s15 = smov (%p34_p1, %s32_s15), 0  ;;  %p189_p3 = pnand %p918_p0, %p188_p2 }
   0x6   : > { %s919_s22 = sshll.u32 (!%p189_p3), %s1111_s12, 5 }
   0x7   : > { %192 = sbr.rel (%p189_p3) target bundleno = 238 (0xee), region = 32  ;;  %p230_p4 = scmp.lt.s32.totalorder (!%p189_p3), %s919_s22, 63 }
   0xc   : > { %v372_v0 = vld [vmem:[%s1308_s1 + $0x30] sm:$0x1]  ;;  %vm541_vm0 = vcmask 1040384   ;;  %v1050_v4 = vld [vmem:[%s1308_s1 + $0x28] sm:$0xff]  ;;  %v1049_v5 = vld [vmem:[%s1308_s1 + $0x20] sm:$0xff]  ;;  %s1316_s22 = smov (!%p230_p4, %s919_s22), 63 }
   0xd   : > { %v478_v1 = vunpack.c.l.b16 %v372_v0  ;;  %v1048_v6 = vld [vmem:[%s1308_s1 + $0x18] sm:$0xff]  ;;  %v1047_v7 = vld [vmem:[%s1308_s1 + $0x10] sm:$0xff]  ;;  %v1046_v8 = vld [vmem:[%s1308_s1 + $0x8] sm:$0xff]  ;;  %s920_s29 = sshll.u32 %s1316_s22, 2  ;;  %vm492_vm1 = vcmask 801792   ;;  %s922_s8 = sshll.u32 %s1316_s22, 3 }
   0xe   : > { %v1045_v9 = vld [vmem:[%s1308_s1] sm:$0xff]  ;;  %s1189_s7 = scalar_lea.vmem %s1307_s0, %s920_s29  ;;  %s1232_s16 = scalar_lea.vmem %s1310_s3, %s922_s8 }
   0xf   : > { %v485_v2 = vpack.c.b16 %v478_v1, %v478_v1  ;;  %v1029_v10 = vld [vmem:[%s1189_s7] sm:$0xff]  ;;  %v1030_v14 = vld [vmem:[%s1189_s7 + $0x8] sm:$0xff]  ;;  %v1031_v18 = vld [vmem:[%s1189_s7 + $0x10] sm:$0xff] }
  0x10   : > { %v1033_v11 = vld [vmem:[%s1189_s7 + $0x20] sm:$0xff]  ;;  %v1034_v15 = vld [vmem:[%s1189_s7 + $0x28] sm:$0xff]  ;;  %v1035_v19 = vld [vmem:[%s1189_s7 + $0x30] sm:$0xff] }
  0x11   : > { %v543_v3 = vsel %vm541_vm0, %v485_v2, 0  ;;  %v1037_v12 = vld [vmem:[%s1189_s7 + $0x40] sm:$0xff]  ;;  %v1038_v16 = vld [vmem:[%s1189_s7 + $0x48] sm:$0xff]  ;;  %v1039_v20 = vld [vmem:[%s1189_s7 + $0x50] sm:$0xff] }
  0x12   : > { %546 = vmatpush.bf16.msra.mxu0 %v543_v3  ;;  %1051 = vmatpush.bf16.msra.mxu1 %v543_v3  ;;  %v1041_v13 = vld [vmem:[%s1189_s7 + $0x60] sm:$0xff]  ;;  %v1042_v17 = vld [vmem:[%s1189_s7 + $0x68] sm:$0xff]  ;;  %v1043_v21 = vld [vmem:[%s1189_s7 + $0x70] sm:$0xff] }
  0x13   : > { %1052 = vmatpush.bf16.msra.mxu2 %v543_v3  ;;  %1053 = vmatpush.bf16.msra.mxu3 %v543_v3  ;;  %v1032_v22 = vld [vmem:[%s1189_s7 + $0x18] sm:$0xff]  ;;  %v1227_v26 = vld [vmem:[%s1309_s2] ss:$0 sm:$0xff] }
  0x14   : > { %v1036_v23 = vld [vmem:[%s1189_s7 + $0x38] sm:$0xff] }
  0x15   : > { %v1040_v24 = vld [vmem:[%s1189_s7 + $0x58] sm:$0xff] }
  0x16   : > { %547 = vmatpush.bf16.msra.mxu0 %v1050_v4  ;;  %1054 = vmatpush.bf16.msra.mxu1 %v1050_v4  ;;  %v1044_v25 = vld [vmem:[%s1189_s7 + $0x78] sm:$0xff] }
  0x17   : > { %1055 = vmatpush.bf16.msra.mxu2 %v1050_v4  ;;  %1056 = vmatpush.bf16.msra.mxu3 %v1050_v4 }
  0x1a   : > { %548 = vmatpush.bf16.msra.mxu0 %v1049_v5  ;;  %1057 = vmatpush.bf16.msra.mxu1 %v1049_v5 }
  0x1b   : > { %1058 = vmatpush.bf16.msra.mxu2 %v1049_v5  ;;  %1059 = vmatpush.bf16.msra.mxu3 %v1049_v5 }
  0x1e   : > { %549 = vmatpush.bf16.msra.mxu0 %v1048_v6  ;;  %1060 = vmatpush.bf16.msra.mxu1 %v1048_v6 }
  0x1f   : > { %1061 = vmatpush.bf16.msra.mxu2 %v1048_v6  ;;  %1062 = vmatpush.bf16.msra.mxu3 %v1048_v6 }
  0x22   : > { %550 = vmatpush.bf16.msra.mxu0 %v1047_v7  ;;  %1063 = vmatpush.bf16.msra.mxu1 %v1047_v7 }
  0x23   : > { %1064 = vmatpush.bf16.msra.mxu2 %v1047_v7  ;;  %1065 = vmatpush.bf16.msra.mxu3 %v1047_v7 }
  0x26   : > { %551 = vmatpush.bf16.msra.mxu0 %v1046_v8  ;;  %1066 = vmatpush.bf16.msra.mxu1 %v1046_v8 }
  0x27   : > { %1067 = vmatpush.bf16.msra.mxu2 %v1046_v8  ;;  %1068 = vmatpush.bf16.msra.mxu3 %v1046_v8 }
  0x2a   : > { %552 = vmatpush.bf16.msra.mxu0 %v1045_v9  ;;  %1069 = vmatpush.bf16.msra.mxu1 %v1045_v9 }
  0x2b   : > { %1070 = vmatpush.bf16.msra.mxu2 %v1045_v9  ;;  %1071 = vmatpush.bf16.msra.mxu3 %v1045_v9 }
  0x2d   : > { %1011 = vmatmul.msk.bf16.vlgmr.msra.gmra.mxu0 %vm492_vm1, %v1029_v10  ;;  %1015 = vmatmul.msk.bf16.vlgmr.msra.gmra.mxu1 %vm492_vm1, %v1033_v11 }
  0x2e   : > { %1019 = vmatmul.msk.bf16.vlgmr.msra.gmra.mxu2 %vm492_vm1, %v1037_v12  ;;  %1023 = vmatmul.msk.bf16.vlgmr.msra.gmra.mxu3 %vm492_vm1, %v1041_v13 }
  0x3d   : > { %1012 = vmatmul.msk.bf16.gmra.mxu0 %vm492_vm1, %v1030_v14  ;;  %1016 = vmatmul.msk.bf16.gmra.mxu1 %vm492_vm1, %v1034_v15 }
  0x3e   : > { %1020 = vmatmul.msk.bf16.gmra.mxu2 %vm492_vm1, %v1038_v16  ;;  %1024 = vmatmul.msk.bf16.gmra.mxu3 %vm492_vm1, %v1042_v17 }
  0x4d   : > { %1013 = vmatmul.msk.bf16.gmra.mxu0 %vm492_vm1, %v1031_v18  ;;  %1017 = vmatmul.msk.bf16.gmra.mxu1 %vm492_vm1, %v1035_v19 }
  0x4e   : > { %1021 = vmatmul.msk.bf16.gmra.mxu2 %vm492_vm1, %v1039_v20  ;;  %1025 = vmatmul.msk.bf16.gmra.mxu3 %vm492_vm1, %v1043_v21 }
  0x5d   : > { %1014 = vmatmul.msk.bf16.gmra.mxu0 %vm492_vm1, %v1032_v22  ;;  %1018 = vmatmul.msk.bf16.gmra.mxu1 %vm492_vm1, %v1036_v23 }
  0x5e   : > { %1022 = vmatmul.msk.bf16.gmra.mxu2 %vm492_vm1, %v1040_v24  ;;  %1026 = vmatmul.msk.bf16.gmra.mxu3 %vm492_vm1, %v1044_v25 }
  0xaa   : > { %v554_v27 = vpop.f32.mrf.mxu0  ;;  %v574_v28 = vpop.f32.mrf.mxu1 }
  0xab   : > { %v737_v29 = vadd.f32 %v1227_v26, %v554_v27  ;;  %v745_v30 = vadd.f32 %v1227_v26, %v574_v28 }
  0xad   : > { %769 = vst [vmem:[%s1232_s16] sm:$0xff] %v737_v29 }
  0xae   : > { %777 = vst [vmem:[%s1232_s16 + $0x40] sm:$0xff] %v745_v30 }
  0xb1   : > { %v594_v31 = vpop.f32.mrf.mxu2  ;;  %v614_v32 = vpop.f32.mrf.mxu3 }
  0xb2   : > { %v753_v33 = vadd.f32 %v1227_v26, %v594_v31  ;;  %v761_v34 = vadd.f32 %v1227_v26, %v614_v32  ;;  %v556_v35 = vpop.f32.mrf.mxu0  ;;  %v576_v36 = vpop.f32.mrf.mxu1 }
  0xb3   : > { %v738_v37 = vadd.f32 %v1227_v26, %v556_v35  ;;  %v746_v38 = vadd.f32 %v1227_v26, %v576_v36 }
  0xb4   : > { %785 = vst [vmem:[%s1232_s16 + $0x80] sm:$0xff] %v753_v33 }
  0xb5   : > { %793 = vst [vmem:[%s1232_s16 + $0xc0] sm:$0xff] %v761_v34 }
  0xb6   : > { %770 = vst [vmem:[%s1232_s16 + $0x8] sm:$0xff] %v738_v37 }
  0xb7   : > { %778 = vst [vmem:[%s1232_s16 + $0x48] sm:$0xff] %v746_v38 }
  0xb9   : > { %v596_v39 = vpop.f32.mrf.mxu2  ;;  %v616_v40 = vpop.f32.mrf.mxu3 }
  0xba   : > { %v754_v41 = vadd.f32 %v1227_v26, %v596_v39  ;;  %v762_v42 = vadd.f32 %v1227_v26, %v616_v40  ;;  %v559_v43 = vpop.f32.mrf.mxu0  ;;  %v579_v44 = vpop.f32.mrf.mxu1 }
  0xbb   : > { %v739_v45 = vadd.f32 %v1227_v26, %v559_v43  ;;  %v747_v46 = vadd.f32 %v1227_v26, %v579_v44 }
  0xbc   : > { %786 = vst [vmem:[%s1232_s16 + $0x88] sm:$0xff] %v754_v41 }
  0xbd   : > { %794 = vst [vmem:[%s1232_s16 + $0xc8] sm:$0xff] %v762_v42 }
  0xbe   : > { %771 = vst [vmem:[%s1232_s16 + $0x10] sm:$0xff] %v739_v45 }
  0xbf   : > { %779 = vst [vmem:[%s1232_s16 + $0x50] sm:$0xff] %v747_v46 }
  0xc1   : > { %v599_v47 = vpop.f32.mrf.mxu2  ;;  %v619_v48 = vpop.f32.mrf.mxu3 }
  0xc2   : > { %v755_v49 = vadd.f32 %v1227_v26, %v599_v47  ;;  %v763_v50 = vadd.f32 %v1227_v26, %v619_v48  ;;  %v561_v51 = vpop.f32.mrf.mxu0  ;;  %v581_v52 = vpop.f32.mrf.mxu1 }
  0xc3   : > { %v740_v53 = vadd.f32 %v1227_v26, %v561_v51  ;;  %v748_v54 = vadd.f32 %v1227_v26, %v581_v52 }
  0xc4   : > { %787 = vst [vmem:[%s1232_s16 + $0x90] sm:$0xff] %v755_v49 }
  0xc5   : > { %795 = vst [vmem:[%s1232_s16 + $0xd0] sm:$0xff] %v763_v50 }
  0xc6   : > { %772 = vst [vmem:[%s1232_s16 + $0x18] sm:$0xff] %v740_v53 }
  0xc7   : > { %780 = vst [vmem:[%s1232_s16 + $0x58] sm:$0xff] %v748_v54 }
  0xc9   : > { %v601_v55 = vpop.f32.mrf.mxu2  ;;  %v621_v56 = vpop.f32.mrf.mxu3 }
  0xca   : > { %v756_v57 = vadd.f32 %v1227_v26, %v601_v55  ;;  %v764_v58 = vadd.f32 %v1227_v26, %v621_v56  ;;  %v564_v59 = vpop.f32.mrf.mxu0  ;;  %v584_v60 = vpop.f32.mrf.mxu1 }
  0xcb   : > { %v741_v61 = vadd.f32 %v1227_v26, %v564_v59  ;;  %v749_v62 = vadd.f32 %v1227_v26, %v584_v60 }
  0xcc   : > { %788 = vst [vmem:[%s1232_s16 + $0x98] sm:$0xff] %v756_v57 }
  0xcd   : > { %796 = vst [vmem:[%s1232_s16 + $0xd8] sm:$0xff] %v764_v58 }
  0xce   : > { %773 = vst [vmem:[%s1232_s16 + $0x20] sm:$0xff] %v741_v61 }
  0xcf   : > { %781 = vst [vmem:[%s1232_s16 + $0x60] sm:$0xff] %v749_v62 }
  0xd1   : > { %v604_v63 = vpop.f32.mrf.mxu2  ;;  %v624_v0 = vpop.f32.mrf.mxu3 }
  0xd2   : > { %v757_v1 = vadd.f32 %v1227_v26, %v604_v63  ;;  %v765_v2 = vadd.f32 %v1227_v26, %v624_v0  ;;  %v566_v3 = vpop.f32.mrf.mxu0  ;;  %v586_v4 = vpop.f32.mrf.mxu1 }
  0xd3   : > { %v742_v5 = vadd.f32 %v1227_v26, %v566_v3  ;;  %v750_v6 = vadd.f32 %v1227_v26, %v586_v4 }
  0xd4   : > { %789 = vst [vmem:[%s1232_s16 + $0xa0] sm:$0xff] %v757_v1 }
  0xd5   : > { %797 = vst [vmem:[%s1232_s16 + $0xe0] sm:$0xff] %v765_v2 }
  0xd6   : > { %774 = vst [vmem:[%s1232_s16 + $0x28] sm:$0xff] %v742_v5 }
  0xd7   : > { %782 = vst [vmem:[%s1232_s16 + $0x68] sm:$0xff] %v750_v6 }
  0xd9   : > { %v606_v7 = vpop.f32.mrf.mxu2  ;;  %v626_v8 = vpop.f32.mrf.mxu3 }
  0xda   : > { %v758_v9 = vadd.f32 %v1227_v26, %v606_v7  ;;  %v766_v10 = vadd.f32 %v1227_v26, %v626_v8  ;;  %v569_v11 = vpop.f32.mrf.mxu0  ;;  %v589_v12 = vpop.f32.mrf.mxu1 }
  0xdb   : > { %v743_v13 = vadd.f32 %v1227_v26, %v569_v11  ;;  %v751_v14 = vadd.f32 %v1227_v26, %v589_v12 }
  0xdc   : > { %790 = vst [vmem:[%s1232_s16 + $0xa8] sm:$0xff] %v758_v9 }
  0xdd   : > { %798 = vst [vmem:[%s1232_s16 + $0xe8] sm:$0xff] %v766_v10 }
  0xde   : > { %775 = vst [vmem:[%s1232_s16 + $0x30] sm:$0xff] %v743_v13 }
  0xdf   : > { %783 = vst [vmem:[%s1232_s16 + $0x70] sm:$0xff] %v751_v14 }
  0xe1   : > { %v609_v15 = vpop.f32.mrf.mxu2  ;;  %v629_v16 = vpop.f32.mrf.mxu3 }
  0xe2   : > { %v759_v17 = vadd.f32 %v1227_v26, %v609_v15  ;;  %v767_v18 = vadd.f32 %v1227_v26, %v629_v16  ;;  %v571_v19 = vpop.f32.mrf.mxu0  ;;  %v591_v20 = vpop.f32.mrf.mxu1 }
  0xe3   : > { %v744_v21 = vadd.f32 %v1227_v26, %v571_v19  ;;  %v752_v22 = vadd.f32 %v1227_v26, %v591_v20 }
  0xe4   : > { %791 = vst [vmem:[%s1232_s16 + $0xb0] sm:$0xff] %v759_v17 }
  0xe5   : > { %799 = vst [vmem:[%s1232_s16 + $0xf0] sm:$0xff] %v767_v18 }
  0xe6   : > { %776 = vst [vmem:[%s1232_s16 + $0x38] sm:$0xff] %v744_v21 }
  0xe7   : > { %784 = vst [vmem:[%s1232_s16 + $0x78] sm:$0xff] %v752_v22 }
  0xe9   : > { %v611_v23 = vpop.f32.mrf.mxu2  ;;  %v631_v24 = vpop.f32.mrf.mxu3 }
  0xea   : > { %v760_v25 = vadd.f32 %v1227_v26, %v611_v23  ;;  %v768_v27 = vadd.f32 %v1227_v26, %v631_v24 }
  0xec   : > { %792 = vst [vmem:[%s1232_s16 + $0xb8] sm:$0xff] %v760_v25 }
  0xed   : > { %800 = vst [vmem:[%s1232_s16 + $0xf8] sm:$0xff] %v768_v27 }
  0xee PF: > { %s13_s14 = sadd.s32 1, %s1119_s14   ;;  %s1311_s12 = smov %s1115_s13 }
  0xef   : > { %p10_p5 = scmp.ge.s32.totalorder %s13_s14, 4   ;;  %s1312_s13 = smov %s1314_s15 }
  0xf1   :  { %12 = sbr.rel (!%p10_p5) target bundleno = 2 (0x2), region = 76 }

// kernel: attention_generator_forward.60
= control target key start
LH: loop header
LB: loop body
LE: loop exit
PB: predicated region body
PF: predicated region fallthrough
CT: control target
= control target key end

     0   :  { %vm168_vm0 = vcmask 1043456   ;;  %vm143_vm1 = vcmask 588800   ;;  %s514_s1 = inlined_call_operand.vmem [shape: bf16[72,128], index: 1, kind: input, shape index: {}]   ;;  %s515_s2 = inlined_call_operand.vmem [shape: f32[1,128], index: 2, kind: input, shape index: {}]   ;;  %s516_s0 = inlined_call_operand.vmem [shape: bf16[128,72], index: 0, kind: input, shape index: {}]   ;;  %s517_s3 = inlined_call_operand.vmem [shape: f32[128,128], index: 3, kind: output, shape index: {}]  }
   0x1   :  { %v75_v0 = vld [vmem:[%s514_s1 + $0x20] sm:$0xf]  ;;  %v379_v4 = vld [vmem:[%s514_s1 + $0x18] sm:$0xff]  ;;  %v378_v5 = vld [vmem:[%s514_s1 + $0x10] sm:$0xff] }
   0x2   :  { %v133_v1 = vunpack.c.l.b16 %v75_v0  ;;  %v377_v6 = vld [vmem:[%s514_s1 + $0x8] sm:$0xff]  ;;  %v376_v7 = vld [vmem:[%s514_s1] sm:$0xff]  ;;  %v370_v9 = vld [vmem:[%s516_s0 + $0x10] sm:$0xff] }
   0x3   :  { %v368_v8 = vld [vmem:[%s516_s0] sm:$0xff]  ;;  %v374_v11 = vld [vmem:[%s516_s0 + $0x30] sm:$0xff]  ;;  %v369_v12 = vld [vmem:[%s516_s0 + $0x8] sm:$0xff] }
   0x4   :  { %v138_v2 = vpack.c.b16 %v133_v1, %v133_v1  ;;  %v372_v10 = vld [vmem:[%s516_s0 + $0x20] sm:$0xff]  ;;  %v371_v13 = vld [vmem:[%s516_s0 + $0x18] sm:$0xff]  ;;  %v373_v14 = vld [vmem:[%s516_s0 + $0x28] sm:$0xff] }
   0x5   :  { %v375_v15 = vld [vmem:[%s516_s0 + $0x38] sm:$0xff]  ;;  %v395_v16 = vld [vmem:[%s515_s2] ss:$0 sm:$0xff] }
   0x6   :  { %v170_v3 = vsel %vm168_vm0, %v138_v2, 0 }
   0x7   :  { %175 = vmatpush.bf16.msra.mxu0 %v170_v3  ;;  %380 = vmatpush.bf16.msra.mxu1 %v170_v3 }
   0x8   :  { %381 = vmatpush.bf16.msra.mxu2 %v170_v3  ;;  %382 = vmatpush.bf16.msra.mxu3 %v170_v3 }
   0xb   :  { %176 = vmatpush.bf16.msra.mxu0 %v379_v4  ;;  %383 = vmatpush.bf16.msra.mxu1 %v379_v4 }
   0xc   :  { %384 = vmatpush.bf16.msra.mxu2 %v379_v4  ;;  %385 = vmatpush.bf16.msra.mxu3 %v379_v4 }
   0xf   :  { %177 = vmatpush.bf16.msra.mxu0 %v378_v5  ;;  %386 = vmatpush.bf16.msra.mxu1 %v378_v5 }
  0x10   :  { %387 = vmatpush.bf16.msra.mxu2 %v378_v5  ;;  %388 = vmatpush.bf16.msra.mxu3 %v378_v5 }
  0x13   :  { %178 = vmatpush.bf16.msra.mxu0 %v377_v6  ;;  %389 = vmatpush.bf16.msra.mxu1 %v377_v6 }
  0x14   :  { %390 = vmatpush.bf16.msra.mxu2 %v377_v6  ;;  %391 = vmatpush.bf16.msra.mxu3 %v377_v6 }
  0x17   :  { %179 = vmatpush.bf16.msra.mxu0 %v376_v7  ;;  %392 = vmatpush.bf16.msra.mxu1 %v376_v7 }
  0x18   :  { %393 = vmatpush.bf16.msra.mxu2 %v376_v7  ;;  %394 = vmatpush.bf16.msra.mxu3 %v376_v7 }
  0x1a   :  { %360 = vmatmul.msk.bf16.vlgmr.msra.gmra.mxu0 %vm143_vm1, %v368_v8  ;;  %362 = vmatmul.msk.bf16.vlgmr.msra.gmra.mxu1 %vm143_vm1, %v370_v9 }
  0x1b   :  { %364 = vmatmul.msk.bf16.vlgmr.msra.gmra.mxu2 %vm143_vm1, %v372_v10  ;;  %366 = vmatmul.msk.bf16.vlgmr.msra.gmra.mxu3 %vm143_vm1, %v374_v11 }
  0x2a   :  { %361 = vmatmul.msk.bf16.gmra.mxu0 %vm143_vm1, %v369_v12  ;;  %363 = vmatmul.msk.bf16.gmra.mxu1 %vm143_vm1, %v371_v13 }
  0x2b   :  { %365 = vmatmul.msk.bf16.gmra.mxu2 %vm143_vm1, %v373_v14  ;;  %367 = vmatmul.msk.bf16.gmra.mxu3 %vm143_vm1, %v375_v15 }
  0x97   :  { %v181_v17 = vpop.f32.mrf.mxu0  ;;  %v191_v18 = vpop.f32.mrf.mxu1 }
  0x98   :  { %v276_v19 = vadd.f32 %v395_v16, %v181_v17  ;;  %v280_v20 = vadd.f32 %v395_v16, %v191_v18 }
  0x9a   :  { %292 = vst [vmem:[%s517_s3] sm:$0xff] %v276_v19 }
  0x9b   :  { %296 = vst [vmem:[%s517_s3 + $0x20] sm:$0xff] %v280_v20 }
  0x9e   :  { %v201_v21 = vpop.f32.mrf.mxu2  ;;  %v211_v22 = vpop.f32.mrf.mxu3 }
  0x9f   :  { %v284_v23 = vadd.f32 %v395_v16, %v201_v21  ;;  %v288_v24 = vadd.f32 %v395_v16, %v211_v22  ;;  %v183_v25 = vpop.f32.mrf.mxu0  ;;  %v193_v26 = vpop.f32.mrf.mxu1 }
  0xa0   :  { %v277_v27 = vadd.f32 %v395_v16, %v183_v25  ;;  %v281_v28 = vadd.f32 %v395_v16, %v193_v26 }
  0xa1   :  { %300 = vst [vmem:[%s517_s3 + $0x40] sm:$0xff] %v284_v23 }
  0xa2   :  { %304 = vst [vmem:[%s517_s3 + $0x60] sm:$0xff] %v288_v24 }
  0xa3   :  { %293 = vst [vmem:[%s517_s3 + $0x8] sm:$0xff] %v277_v27 }
  0xa4   :  { %297 = vst [vmem:[%s517_s3 + $0x28] sm:$0xff] %v281_v28 }
  0xa6   :  { %v203_v29 = vpop.f32.mrf.mxu2  ;;  %v213_v30 = vpop.f32.mrf.mxu3 }
  0xa7   :  { %v285_v31 = vadd.f32 %v395_v16, %v203_v29  ;;  %v289_v32 = vadd.f32 %v395_v16, %v213_v30  ;;  %v186_v33 = vpop.f32.mrf.mxu0  ;;  %v196_v34 = vpop.f32.mrf.mxu1 }
  0xa8   :  { %v278_v35 = vadd.f32 %v395_v16, %v186_v33  ;;  %v282_v36 = vadd.f32 %v395_v16, %v196_v34 }
  0xa9   :  { %301 = vst [vmem:[%s517_s3 + $0x48] sm:$0xff] %v285_v31 }
  0xaa   :  { %305 = vst [vmem:[%s517_s3 + $0x68] sm:$0xff] %v289_v32 }
  0xab   :  { %294 = vst [vmem:[%s517_s3 + $0x10] sm:$0xff] %v278_v35 }
  0xac   :  { %298 = vst [vmem:[%s517_s3 + $0x30] sm:$0xff] %v282_v36 }
  0xae   :  { %v206_v37 = vpop.f32.mrf.mxu2  ;;  %v216_v38 = vpop.f32.mrf.mxu3 }
  0xaf   :  { %v286_v39 = vadd.f32 %v395_v16, %v206_v37  ;;  %v290_v40 = vadd.f32 %v395_v16, %v216_v38  ;;  %v188_v41 = vpop.f32.mrf.mxu0  ;;  %v198_v42 = vpop.f32.mrf.mxu1 }
  0xb0   :  { %v279_v43 = vadd.f32 %v395_v16, %v188_v41  ;;  %v283_v44 = vadd.f32 %v395_v16, %v198_v42 }
  0xb1   :  { %302 = vst [vmem:[%s517_s3 + $0x50] sm:$0xff] %v286_v39 }
  0xb2   :  { %306 = vst [vmem:[%s517_s3 + $0x70] sm:$0xff] %v290_v40 }
  0xb3   :  { %295 = vst [vmem:[%s517_s3 + $0x18] sm:$0xff] %v279_v43 }
  0xb4   :  { %299 = vst [vmem:[%s517_s3 + $0x38] sm:$0xff] %v283_v44 }
  0xb6   :  { %v208_v45 = vpop.f32.mrf.mxu2  ;;  %v218_v46 = vpop.f32.mrf.mxu3 }
  0xb7   :  { %v287_v47 = vadd.f32 %v395_v16, %v208_v45  ;;  %v291_v48 = vadd.f32 %v395_v16, %v218_v46 }
  0xb9   :  { %303 = vst [vmem:[%s517_s3 + $0x58] sm:$0xff] %v287_v47 }
  0xba   :  { %307 = vst [vmem:[%s517_s3 + $0x78] sm:$0xff] %v291_v48 }

// kernel: attention_generator_forward.61
= control target key start
LH: loop header
LB: loop body
LE: loop exit
PB: predicated region body
PF: predicated region fallthrough
CT: control target
= control target key end

     0   :  { %vm14_vm0 = vcmask 122880   ;;  %vm34_vm1 = vcmask 130048   ;;  %v140_v0 = vmov 0.0   ;;  %s258_s0 = inlined_call_operand.vmem [shape: f32[128,16], index: 0, kind: input, shape index: {}]   ;;  %s259_s1 = inlined_call_operand.vmem [shape: f32[1,16], index: 1, kind: output, shape index: {0}]   ;;  %s260_s2 = inlined_call_operand.vmem [shape: f32[1,16], index: 2, kind: output, shape index: {1}]  }
   0x1   :  { %15 = vst.msk [vmem:[%s259_s1] sm:$0x1] %vm14_vm0, %v140_v0  ;;  %v17_v1 = vld [vmem:[%s258_s0] sm:$0xff]  ;;  %v18_v2 = vld [vmem:[%s258_s0 + $0x8] sm:$0xff]  ;;  %v19_v3 = vld [vmem:[%s258_s0 + $0x10] sm:$0xff] }
   0x2   :  { %v35_v4 = vsel %vm34_vm1, %v17_v1, 0.0  ;;  %v36_v5 = vsel %vm34_vm1, %v18_v2, 0.0  ;;  %v38_v6 = vsel %vm34_vm1, %v19_v3, 0.0  ;;  %v20_v7 = vld [vmem:[%s258_s0 + $0x18] sm:$0xff]  ;;  %v21_v10 = vld [vmem:[%s258_s0 + $0x20] sm:$0xff]  ;;  %v22_v13 = vld [vmem:[%s258_s0 + $0x28] sm:$0xff]  ;;  %v76_v15 = vmul.f32 %v17_v1, %v17_v1 }
   0x3   :  { %v37_v8 = vadd.f32 %v36_v5, %v35_v4  ;;  %v40_v9 = vsel %vm34_vm1, %v20_v7, 0.0  ;;  %v42_v12 = vsel %vm34_vm1, %v21_v10, 0.0  ;;  %16 = vst.msk [vmem:[%s260_s2] sm:$0x1] %vm14_vm0, %v140_v0  ;;  %v77_v16 = vmul.f32 %v18_v2, %v18_v2  ;;  %v23_v19 = vld [vmem:[%s258_s0 + $0x30] sm:$0xff]  ;;  %v24_v24 = vld [vmem:[%s258_s0 + $0x38] sm:$0xff] }
   0x4   :  { %v78_v17 = vmul.f32 %v19_v3, %v19_v3  ;;  %v44_v18 = vsel %vm34_vm1, %v22_v13, 0.0  ;;  %v79_v21 = vmul.f32 %v20_v7, %v20_v7  ;;  %v46_v22 = vsel %vm34_vm1, %v23_v19, 0.0  ;;  %v25_v31 = vld [vmem:[%s258_s0 + $0x40] sm:$0xff]  ;;  %v26_v37 = vld [vmem:[%s258_s0 + $0x48] sm:$0xff]  ;;  %v27_v43 = vld [vmem:[%s258_s0 + $0x50] sm:$0xff] }
   0x5   :  { %v39_v11 = vadd.f32 %v38_v6, %v37_v8  ;;  %v80_v23 = vmul.f32 %v21_v10, %v21_v10  ;;  %v92_v26 = vsel %vm34_vm1, %v76_v15, 0.0  ;;  %v93_v27 = vsel %vm34_vm1, %v77_v16, 0.0  ;;  %v28_v49 = vld [vmem:[%s258_s0 + $0x58] sm:$0xff]  ;;  %v29_v55 = vld [vmem:[%s258_s0 + $0x60] sm:$0xff]  ;;  %v30_v61 = vld [vmem:[%s258_s0 + $0x68] sm:$0xff] }
   0x6   :  { %v95_v28 = vsel %vm34_vm1, %v78_v17, 0.0  ;;  %v48_v29 = vsel %vm34_vm1, %v24_v24, 0.0  ;;  %v94_v30 = vadd.f32 %v93_v27, %v92_v26  ;;  %v81_v33 = vmul.f32 %v22_v13, %v22_v13  ;;  %v31_v3 = vld [vmem:[%s258_s0 + $0x70] sm:$0xff] }
   0x7   :  { %v41_v14 = vadd.f32 %v40_v9, %v39_v11  ;;  %v97_v34 = vsel %vm34_vm1, %v79_v21, 0.0  ;;  %v50_v35 = vsel %vm34_vm1, %v25_v31, 0.0  ;;  %v82_v39 = vmul.f32 %v23_v19, %v23_v19  ;;  %v32_v9 = vld [vmem:[%s258_s0 + $0x78] sm:$0xff] }
   0x8   :  { %v96_v36 = vadd.f32 %v95_v28, %v94_v30  ;;  %v99_v40 = vsel %vm34_vm1, %v80_v23, 0.0  ;;  %v52_v41 = vsel %vm34_vm1, %v26_v37, 0.0  ;;  %v83_v45 = vmul.f32 %v24_v24, %v24_v24 }
   0x9   :  { %v43_v20 = vadd.f32 %v42_v12, %v41_v14  ;;  %v101_v46 = vsel %vm34_vm1, %v81_v33, 0.0  ;;  %v54_v47 = vsel %vm34_vm1, %v27_v43, 0.0  ;;  %v84_v51 = vmul.f32 %v25_v31, %v25_v31 }
   0xa   :  { %v98_v42 = vadd.f32 %v97_v34, %v96_v36  ;;  %v103_v52 = vsel %vm34_vm1, %v82_v39, 0.0  ;;  %v56_v53 = vsel %vm34_vm1, %v28_v49, 0.0  ;;  %v85_v57 = vmul.f32 %v26_v37, %v26_v37  ;;  %v33_v36 = vld [vmem:[%s259_s1] sm:$0x1] }
   0xb   :  { %v45_v25 = vadd.f32 %v44_v18, %v43_v20  ;;  %v105_v58 = vsel %vm34_vm1, %v83_v45, 0.0  ;;  %v58_v59 = vsel %vm34_vm1, %v29_v55, 0.0  ;;  %v86_v63 = vmul.f32 %v27_v43, %v27_v43 }
   0xc   :  { %v100_v48 = vadd.f32 %v99_v40, %v98_v42  ;;  %v107_v0 = vsel %vm34_vm1, %v84_v51, 0.0  ;;  %v60_v1 = vsel %vm34_vm1, %v30_v61, 0.0  ;;  %v87_v5 = vmul.f32 %v28_v49, %v28_v49 }
   0xd   :  { %v47_v32 = vadd.f32 %v46_v22, %v45_v25  ;;  %v109_v6 = vsel %vm34_vm1, %v85_v57, 0.0  ;;  %v62_v7 = vsel %vm34_vm1, %v31_v3, 0.0  ;;  %v88_v11 = vmul.f32 %v29_v55, %v29_v55 }
   0xe   :  { %v102_v54 = vadd.f32 %v101_v46, %v100_v48  ;;  %v111_v12 = vsel %vm34_vm1, %v86_v63, 0.0  ;;  %v64_v13 = vsel %vm34_vm1, %v32_v9, 0.0  ;;  %v89_v16 = vmul.f32 %v30_v61, %v30_v61 }
   0xf   :  { %v49_v38 = vadd.f32 %v48_v29, %v47_v32  ;;  %v113_v17 = vsel %vm34_vm1, %v87_v5, 0.0  ;;  %v90_v20 = vmul.f32 %v31_v3, %v31_v3  ;;  %v115_v21 = vsel %vm34_vm1, %v88_v11, 0.0 }
  0x10   :  { %v104_v60 = vadd.f32 %v103_v52, %v102_v54  ;;  %v91_v24 = vmul.f32 %v32_v9, %v32_v9  ;;  %v117_v25 = vsel %vm34_vm1, %v89_v16, 0.0 }
  0x11   :  { %v51_v44 = vadd.f32 %v50_v35, %v49_v38  ;;  %v119_v28 = vsel %vm34_vm1, %v90_v20, 0.0 }
  0x12   :  { %v106_v2 = vadd.f32 %v105_v58, %v104_v60  ;;  %v121_v31 = vsel %vm34_vm1, %v91_v24, 0.0 }
  0x13   :  { %v53_v50 = vadd.f32 %v52_v41, %v51_v44  ;;  %v75_v44 = vld [vmem:[%s260_s2] sm:$0x1] }
  0x14   :  { %v108_v8 = vadd.f32 %v107_v0, %v106_v2 }
  0x15   :  { %v55_v56 = vadd.f32 %v54_v47, %v53_v50 }
  0x16   :  { %v110_v14 = vadd.f32 %v109_v6, %v108_v8 }
  0x17   :  { %v57_v62 = vadd.f32 %v56_v53, %v55_v56 }
  0x18   :  { %v112_v18 = vadd.f32 %v111_v12, %v110_v14 }
  0x19   :  { %v59_v4 = vadd.f32 %v58_v59, %v57_v62 }
  0x1a   :  { %v114_v22 = vadd.f32 %v113_v17, %v112_v18 }
  0x1b   :  { %v61_v10 = vadd.f32 %v60_v1, %v59_v4 }
  0x1c   :  { %v116_v26 = vadd.f32 %v115_v21, %v114_v22 }
  0x1d   :  { %v63_v15 = vadd.f32 %v62_v7, %v61_v10 }
  0x1e   :  { %v118_v29 = vadd.f32 %v117_v25, %v116_v26 }
  0x1f   :  { %v65_v19 = vadd.f32 %v64_v13, %v63_v15 }
  0x20   :  { %v120_v32 = vadd.f32 %v119_v28, %v118_v29 }
  0x21   :  { %v66_v23 = vrot.slane %v65_v19, 4 }
  0x22   :  { %v122_v34 = vadd.f32 %v121_v31, %v120_v32 }
  0x23   :  { %v67_v27 = vadd.f32 %v66_v23, %v65_v19 }
  0x24   :  { %v123_v37 = vrot.slane %v122_v34, 4 }
  0x25   :  { %v68_v30 = vrot.slane %v67_v27, 2 }
  0x26   :  { %v124_v39 = vadd.f32 %v123_v37, %v122_v34 }
  0x27   :  { %v69_v33 = vadd.f32 %v68_v30, %v67_v27 }
  0x28   :  { %v125_v41 = vrot.slane %v124_v39, 2 }
  0x29   :  { %v70_v35 = vrot.slane %v69_v33, 1 }
  0x2a   :  { %v126_v42 = vadd.f32 %v125_v41, %v124_v39 }
  0x2b   :  { %v71_v38 = vadd.f32 %v70_v35, %v69_v33 }
  0x2c   :  { %v127_v43 = vrot.slane %v126_v42, 1 }
  0x2d   :  { %v72_v40 = vadd.f32 %v71_v38, %v33_v36 }
  0x2e   :  { %v128_v45 = vadd.f32 %v127_v43, %v126_v42 }
  0x2f   :  { %74 = vst.msk [vmem:[%s259_s1] sm:$0x1] %vm14_vm0, %v72_v40 }
  0x30   :  { %v129_v46 = vadd.f32 %v128_v45, %v75_v44 }
  0x32   :  { %130 = vst.msk [vmem:[%s260_s2] sm:$0x1] %vm14_vm0, %v129_v46 }

// kernel: attention_generator_forward.62
= control target key start
LH: loop header
LB: loop body
LE: loop exit
PB: predicated region body
PF: predicated region fallthrough
CT: control target
= control target key end

     0   :  { %vm86_vm0 = vcmask 130048   ;;  %s265_s0 = inlined_call_operand.vmem [shape: f32[128,16], index: 0, kind: input, shape index: {}]   ;;  %s266_s1 = inlined_call_operand.vmem [shape: f32[1,16], index: 1, kind: input, shape index: {}]   ;;  %s267_s2 = inlined_call_operand.vmem [shape: f32[1,16], index: 2, kind: input, shape index: {}]   ;;  %s268_s3 = inlined_call_operand.vmem [shape: f32[128,16], index: 3, kind: output, shape index: {}]  }
   0x1   :  { %v14_v0 = vld [vmem:[%s265_s0] sm:$0xff]  ;;  %v15_v3 = vld [vmem:[%s265_s0 + $0x8] sm:$0xff]  ;;  %v16_v6 = vld [vmem:[%s265_s0 + $0x10] sm:$0xff] }
   0x2   :  { %v107_v1 = vld [vmem:[%s266_s1] ss:$0 sm:$0xff]  ;;  %v17_v7 = vld [vmem:[%s265_s0 + $0x18] sm:$0xff]  ;;  %v19_v12 = vld [vmem:[%s265_s0 + $0x28] sm:$0xff] }
   0x3   :  { %v138_v2 = vld [vmem:[%s267_s2] ss:$0 sm:$0xff]  ;;  %v34_v4 = vmul.f32 %v107_v1, %v14_v0  ;;  %v35_v5 = vmul.f32 %v107_v1, %v15_v3  ;;  %v36_v9 = vmul.f32 %v107_v1, %v16_v6  ;;  %v37_v10 = vmul.f32 %v107_v1, %v17_v7  ;;  %v20_v13 = vld [vmem:[%s265_s0 + $0x30] sm:$0xff]  ;;  %v21_v14 = vld [vmem:[%s265_s0 + $0x38] sm:$0xff] }
   0x4   :  { %v18_v8 = vld [vmem:[%s265_s0 + $0x20] sm:$0xff]  ;;  %v39_v17 = vmul.f32 %v107_v1, %v19_v12  ;;  %v40_v18 = vmul.f32 %v107_v1, %v20_v13  ;;  %v41_v22 = vmul.f32 %v107_v1, %v21_v14  ;;  %v23_v24 = vld [vmem:[%s265_s0 + $0x48] sm:$0xff]  ;;  %v24_v29 = vld [vmem:[%s265_s0 + $0x50] sm:$0xff] }
   0x5   :  { %v38_v11 = vmul.f32 %v107_v1, %v18_v8  ;;  %v54_v15 = vadd.f32 %v138_v2, %v34_v4  ;;  %v55_v16 = vadd.f32 %v138_v2, %v35_v5  ;;  %v56_v19 = vadd.f32 %v138_v2, %v36_v9  ;;  %v22_v23 = vld [vmem:[%s265_s0 + $0x40] sm:$0xff]  ;;  %v25_v30 = vld [vmem:[%s265_s0 + $0x58] sm:$0xff]  ;;  %v27_v35 = vld [vmem:[%s265_s0 + $0x68] sm:$0xff] }
   0x6   :  { %v57_v20 = vadd.f32 %v138_v2, %v37_v10  ;;  %v59_v27 = vadd.f32 %v138_v2, %v39_v17  ;;  %v60_v28 = vadd.f32 %v138_v2, %v40_v18  ;;  %v26_v31 = vld [vmem:[%s265_s0 + $0x60] sm:$0xff]  ;;  %v61_v34 = vadd.f32 %v138_v2, %v41_v22  ;;  %v28_v36 = vld [vmem:[%s265_s0 + $0x70] sm:$0xff]  ;;  %v29_v41 = vld [vmem:[%s265_s0 + $0x78] sm:$0xff] }
   0x7   :  { %v58_v21 = vadd.f32 %v138_v2, %v38_v11  ;;  %v70_v25 = vmax.f32 %v54_v15, 0.0  ;;  %v71_v26 = vmax.f32 %v55_v16, 0.0  ;;  %v72_v32 = vmax.f32 %v56_v19, 0.0 }
   0x8   :  { %v73_v33 = vmax.f32 %v57_v20, 0.0  ;;  %v75_v38 = vmax.f32 %v59_v27, 0.0  ;;  %v42_v39 = vmul.f32 %v107_v1, %v22_v23  ;;  %v43_v40 = vmul.f32 %v107_v1, %v23_v24 }
   0x9   :  { %87 = vst.msk [vmem:[%s268_s3] sm:$0xff] %vm86_vm0, %v70_v25  ;;  %v74_v37 = vmax.f32 %v58_v21, 0.0  ;;  %v76_v42 = vmax.f32 %v60_v28, 0.0  ;;  %v44_v43 = vmul.f32 %v107_v1, %v24_v29  ;;  %v45_v44 = vmul.f32 %v107_v1, %v25_v30 }
   0xa   :  { %88 = vst.msk [vmem:[%s268_s3 + $0x8] sm:$0xff] %vm86_vm0, %v71_v26  ;;  %v46_v45 = vmul.f32 %v107_v1, %v26_v31  ;;  %v62_v46 = vadd.f32 %v138_v2, %v42_v39  ;;  %v63_v47 = vadd.f32 %v138_v2, %v43_v40  ;;  %v47_v48 = vmul.f32 %v107_v1, %v27_v35 }
   0xb   :  { %89 = vst.msk [vmem:[%s268_s3 + $0x10] sm:$0xff] %vm86_vm0, %v72_v32  ;;  %v48_v49 = vmul.f32 %v107_v1, %v28_v36  ;;  %v77_v50 = vmax.f32 %v61_v34, 0.0  ;;  %v64_v51 = vadd.f32 %v138_v2, %v44_v43  ;;  %v65_v52 = vadd.f32 %v138_v2, %v45_v44 }
   0xc   :  { %90 = vst.msk [vmem:[%s268_s3 + $0x18] sm:$0xff] %vm86_vm0, %v73_v33  ;;  %v49_v53 = vmul.f32 %v107_v1, %v29_v41  ;;  %v78_v54 = vmax.f32 %v62_v46, 0.0  ;;  %v66_v55 = vadd.f32 %v138_v2, %v46_v45  ;;  %v79_v56 = vmax.f32 %v63_v47, 0.0 }
   0xd   :  { %91 = vst.msk [vmem:[%s268_s3 + $0x20] sm:$0xff] %vm86_vm0, %v74_v37  ;;  %v67_v57 = vadd.f32 %v138_v2, %v47_v48  ;;  %v80_v58 = vmax.f32 %v64_v51, 0.0  ;;  %v68_v59 = vadd.f32 %v138_v2, %v48_v49  ;;  %v81_v60 = vmax.f32 %v65_v52, 0.0 }
   0xe   :  { %92 = vst.msk [vmem:[%s268_s3 + $0x28] sm:$0xff] %vm86_vm0, %v75_v38  ;;  %v69_v61 = vadd.f32 %v138_v2, %v49_v53  ;;  %v82_v62 = vmax.f32 %v66_v55, 0.0 }
   0xf   :  { %93 = vst.msk [vmem:[%s268_s3 + $0x30] sm:$0xff] %vm86_vm0, %v76_v42  ;;  %v83_v63 = vmax.f32 %v67_v57, 0.0  ;;  %v84_v0 = vmax.f32 %v68_v59, 0.0 }
  0x10   :  { %94 = vst.msk [vmem:[%s268_s3 + $0x38] sm:$0xff] %vm86_vm0, %v77_v50  ;;  %v85_v1 = vmax.f32 %v69_v61, 0.0 }
  0x11   :  { %95 = vst.msk [vmem:[%s268_s3 + $0x40] sm:$0xff] %vm86_vm0, %v78_v54 }
  0x12   :  { %96 = vst.msk [vmem:[%s268_s3 + $0x48] sm:$0xff] %vm86_vm0, %v79_v56 }
  0x13   :  { %97 = vst.msk [vmem:[%s268_s3 + $0x50] sm:$0xff] %vm86_vm0, %v80_v58 }
  0x14   :  { %98 = vst.msk [vmem:[%s268_s3 + $0x58] sm:$0xff] %vm86_vm0, %v81_v60 }
  0x15   :  { %99 = vst.msk [vmem:[%s268_s3 + $0x60] sm:$0xff] %vm86_vm0, %v82_v62 }
  0x16   :  { %100 = vst.msk [vmem:[%s268_s3 + $0x68] sm:$0xff] %vm86_vm0, %v83_v63 }
  0x17   :  { %101 = vst.msk [vmem:[%s268_s3 + $0x70] sm:$0xff] %vm86_vm0, %v84_v0 }
  0x18   :  { %102 = vst.msk [vmem:[%s268_s3 + $0x78] sm:$0xff] %vm86_vm0, %v85_v1 }

// kernel: attention_generator_forward.64
= control target key start
LH: loop header
LB: loop body
LE: loop exit
PB: predicated region body
PF: predicated region fallthrough
CT: control target
= control target key end

     0   :  { %vm14_vm0 = vcmask 253952   ;;  %vm22_vm1 = vcmask 261120   ;;  %v68_v0 = vmov 0.0   ;;  %s126_s0 = inlined_call_operand.vmem [shape: f32[32,32], index: 0, kind: input, shape index: {}]   ;;  %s127_s1 = inlined_call_operand.vmem [shape: f32[1,32], index: 1, kind: output, shape index: {0}]   ;;  %s128_s2 = inlined_call_operand.vmem [shape: f32[1,32], index: 2, kind: output, shape index: {1}]  }
   0x1   :  { %15 = vst.msk [vmem:[%s127_s1] sm:$0x1] %vm14_vm0, %v68_v0  ;;  %v17_v1 = vld [vmem:[%s126_s0] sm:$0xff]  ;;  %v18_v2 = vld [vmem:[%s126_s0 + $0x8] sm:$0xff]  ;;  %v19_v3 = vld [vmem:[%s126_s0 + $0x10] sm:$0xff] }
   0x2   :  { %v20_v4 = vld [vmem:[%s126_s0 + $0x18] sm:$0xff]  ;;  %v23_v5 = vsel %vm22_vm1, %v17_v1, 0.0  ;;  %v24_v6 = vsel %vm22_vm1, %v18_v2, 0.0  ;;  %v26_v7 = vsel %vm22_vm1, %v19_v3, 0.0  ;;  %16 = vst.msk [vmem:[%s128_s2] sm:$0x1] %vm14_vm0, %v68_v0  ;;  %v40_v8 = vmul.f32 %v17_v1, %v17_v1 }
   0x3   :  { %v25_v9 = vadd.f32 %v24_v6, %v23_v5  ;;  %v41_v10 = vmul.f32 %v18_v2, %v18_v2  ;;  %v42_v11 = vmul.f32 %v19_v3, %v19_v3  ;;  %v28_v12 = vsel %vm22_vm1, %v20_v4, 0.0 }
   0x4   :  { %v43_v13 = vmul.f32 %v20_v4, %v20_v4  ;;  %v44_v14 = vsel %vm22_vm1, %v40_v8, 0.0 }
   0x5   :  { %v27_v15 = vadd.f32 %v26_v7, %v25_v9  ;;  %v45_v16 = vsel %vm22_vm1, %v41_v10, 0.0  ;;  %v47_v17 = vsel %vm22_vm1, %v42_v11, 0.0 }
   0x6   :  { %v46_v18 = vadd.f32 %v45_v16, %v44_v14  ;;  %v49_v20 = vsel %vm22_vm1, %v43_v13, 0.0 }
   0x7   :  { %v29_v19 = vadd.f32 %v28_v12, %v27_v15 }
   0x8   :  { %v48_v21 = vadd.f32 %v47_v17, %v46_v18  ;;  %v21_v31 = vld [vmem:[%s127_s1] sm:$0x1] }
   0x9   :  { %v30_v22 = vrot.slane %v29_v19, 4  ;;  %v39_v36 = vld [vmem:[%s128_s2] sm:$0x1] }
   0xa   :  { %v50_v23 = vadd.f32 %v49_v20, %v48_v21 }
   0xb   :  { %v31_v24 = vadd.f32 %v30_v22, %v29_v19 }
   0xc   :  { %v51_v25 = vrot.slane %v50_v23, 4 }
   0xd   :  { %v32_v26 = vrot.slane %v31_v24, 2 }
   0xe   :  { %v52_v27 = vadd.f32 %v51_v25, %v50_v23 }
   0xf   :  { %v33_v28 = vadd.f32 %v32_v26, %v31_v24 }
  0x10   :  { %v53_v29 = vrot.slane %v52_v27, 2 }
  0x11   :  { %v34_v30 = vrot.slane %v33_v28, 1 }
  0x12   :  { %v54_v32 = vadd.f32 %v53_v29, %v52_v27 }
  0x13   :  { %v35_v33 = vadd.f32 %v34_v30, %v33_v28 }
  0x14   :  { %v55_v34 = vrot.slane %v54_v32, 1 }
  0x15   :  { %v36_v35 = vadd.f32 %v35_v33, %v21_v31 }
  0x16   :  { %v56_v37 = vadd.f32 %v55_v34, %v54_v32 }
  0x17   :  { %38 = vst.msk [vmem:[%s127_s1] sm:$0x1] %vm14_vm0, %v36_v35 }
  0x18   :  { %v57_v38 = vadd.f32 %v56_v37, %v39_v36 }
  0x1a   :  { %58 = vst.msk [vmem:[%s128_s2] sm:$0x1] %vm14_vm0, %v57_v38 }

// kernel: attention_generator_forward.63
= control target key start
LH: loop header
LB: loop body
LE: loop exit
PB: predicated region body
PF: predicated region fallthrough
CT: control target
= control target key end

     0   :  { %vm121_vm0 = vcmask 130048   ;;  %s361_s1 = inlined_call_operand.vmem [shape: bf16[144,128], index: 1, kind: input, shape index: {}]   ;;  %s362_s0 = inlined_call_operand.vmem [shape: bf16[32,144], index: 0, kind: input, shape index: {}]   ;;  %s363_s2 = inlined_call_operand.vmem [shape: f32[1,128], index: 2, kind: input, shape index: {}]   ;;  %s364_s3 = inlined_call_operand.vmem [shape: f32[32,128], index: 3, kind: output, shape index: {}]  }
   0x1   :  { %v262_v0 = vld [vmem:[%s361_s1 + $0x38] sm:$0xff]  ;;  %v263_v1 = vld [vmem:[%s361_s1 + $0x40] sm:$0xff]  ;;  %v261_v3 = vld [vmem:[%s361_s1 + $0x30] sm:$0xff] }
   0x2   :  { %v251_v2 = vld [vmem:[%s362_s0 + $0x4] sm:$0xf]  ;;  %128 = vmatpush.bf16.msra.mxu0 %v262_v0  ;;  %264 = vmatpush.bf16.msra.mxu2 %v262_v0  ;;  %v201_v4 = vld [vmem:[%s362_s0 + $0x8] sm:$0xf0]  ;;  %v258_v8 = vld [vmem:[%s361_s1 + $0x18] sm:$0xff] }
   0x3   :  { %154 = vmatpush.bf16.msra.mxu1 %v263_v1  ;;  %v204_v5 = vor.u32 %v251_v2, %v201_v4  ;;  %v260_v6 = vld [vmem:[%s361_s1 + $0x28] sm:$0xff]  ;;  %v259_v7 = vld [vmem:[%s361_s1 + $0x20] sm:$0xff]  ;;  %v253_v9 = vld [vmem:[%s362_s0 + $0x14] sm:$0xf] }
   0x4   :  { %v209_v10 = vld [vmem:[%s362_s0 + $0x18] sm:$0xf0]  ;;  %v257_v11 = vld [vmem:[%s361_s1 + $0x10] sm:$0xff]  ;;  %v256_v13 = vld [vmem:[%s361_s1 + $0x8] sm:$0xff] }
   0x5   :  { %v212_v12 = vor.u32 %v253_v9, %v209_v10  ;;  %v255_v14 = vld [vmem:[%s361_s1] sm:$0xff]  ;;  %v252_v16 = vld [vmem:[%s362_s0 + $0x4] sm:$0xf0]  ;;  %v207_v17 = vld [vmem:[%s362_s0 + $0x10] sm:$0xf] }
   0x6   :  { %129 = vmatpush.bf16.msra.mxu0 %v261_v3  ;;  %265 = vmatpush.bf16.msra.mxu2 %v261_v3  ;;  %v199_v15 = vld [vmem:[%s362_s0] sm:$0xf]  ;;  %v254_v18 = vld [vmem:[%s362_s0 + $0x14] sm:$0xf0] }
   0x7   :  { %249 = vmatmul.msk.bf16.vlgmr.msra.gmra.mxu1 %vm121_vm0, %v204_v5  ;;  %v200_v19 = vor.u32 %v252_v16, %v199_v15  ;;  %v208_v20 = vor.u32 %v254_v18, %v207_v17  ;;  %v272_v23 = vld [vmem:[%s363_s2] ss:$0 sm:$0xff] }
   0xa   :  { %130 = vmatpush.bf16.msra.mxu0 %v260_v6  ;;  %266 = vmatpush.bf16.msra.mxu2 %v260_v6 }
   0xe   :  { %131 = vmatpush.bf16.msra.mxu0 %v259_v7  ;;  %267 = vmatpush.bf16.msra.mxu2 %v259_v7 }
  0x12   :  { %132 = vmatpush.bf16.msra.mxu0 %v258_v8  ;;  %268 = vmatpush.bf16.msra.mxu2 %v258_v8 }
  0x16   :  { %133 = vmatpush.bf16.msra.mxu0 %v257_v11  ;;  %269 = vmatpush.bf16.msra.mxu2 %v257_v11 }
  0x17   :  { %250 = vmatmul.msk.bf16.gmra.mxu1 %vm121_vm0, %v212_v12 }
  0x1a   :  { %134 = vmatpush.bf16.msra.mxu0 %v256_v13  ;;  %270 = vmatpush.bf16.msra.mxu2 %v256_v13 }
  0x1e   :  { %135 = vmatpush.bf16.msra.mxu0 %v255_v14  ;;  %271 = vmatpush.bf16.msra.mxu2 %v255_v14 }
  0x21   :  { %136 = vmatmul.bf16.vlgmr.msra.gmra.mxu0 %v200_v19  ;;  %141 = vmatmul.bf16.vlgmr.msra.gmra.mxu2 %v208_v20 }
  0x84   :  { %v156_v21 = vpop.f32.mrf.mxu1 }
  0x8c   :  { %v158_v22 = vpop.f32.mrf.mxu1 }
  0x94   :  { %v161_v27 = vpop.f32.mrf.mxu1 }
  0x9c   :  { %v163_v34 = vpop.f32.mrf.mxu1 }
  0x9e   :  { %v137_v24 = vpop.f32.mrf.mxu0 }
  0x9f   :  { %v157_v25 = vadd.f32 %v156_v21, %v137_v24 }
  0xa1   :  { %v185_v26 = vadd.f32 %v272_v23, %v157_v25 }
  0xa3   :  { %189 = vst [vmem:[%s364_s3] sm:$0xff] %v185_v26 }
  0xa4   :  { %v142_v28 = vpop.f32.mrf.mxu2 }
  0xa5   :  { %v162_v29 = vadd.f32 %v161_v27, %v142_v28 }
  0xa6   :  { %v139_v30 = vpop.f32.mrf.mxu0 }
  0xa7   :  { %v187_v31 = vadd.f32 %v272_v23, %v162_v29  ;;  %v159_v32 = vadd.f32 %v158_v22, %v139_v30 }
  0xa9   :  { %191 = vst [vmem:[%s364_s3 + $0x10] sm:$0xff] %v187_v31  ;;  %v186_v33 = vadd.f32 %v272_v23, %v159_v32 }
  0xab   :  { %190 = vst [vmem:[%s364_s3 + $0x8] sm:$0xff] %v186_v33 }
  0xac   :  { %v144_v35 = vpop.f32.mrf.mxu2 }
  0xad   :  { %v164_v36 = vadd.f32 %v163_v34, %v144_v35 }
  0xaf   :  { %v188_v37 = vadd.f32 %v272_v23, %v164_v36 }
  0xb1   :  { %192 = vst [vmem:[%s364_s3 + $0x18] sm:$0xff] %v188_v37 }

// kernel: attention_generator_forward.65
= control target key start
LH: loop header
LB: loop body
LE: loop exit
PB: predicated region body
PF: predicated region fallthrough
CT: control target
= control target key end

     0   :  { %vm38_vm0 = vcmask 261120   ;;  %s99_s0 = inlined_call_operand.vmem [shape: f32[32,32], index: 0, kind: input, shape index: {}]   ;;  %s100_s1 = inlined_call_operand.vmem [shape: f32[1,32], index: 1, kind: input, shape index: {}]   ;;  %s101_s2 = inlined_call_operand.vmem [shape: f32[1,32], index: 2, kind: input, shape index: {}]   ;;  %s102_s3 = inlined_call_operand.vmem [shape: f32[32,32], index: 3, kind: output, shape index: {}]  }
   0x1   :  { %v14_v0 = vld [vmem:[%s99_s0] sm:$0xff]  ;;  %v15_v3 = vld [vmem:[%s99_s0 + $0x8] sm:$0xff]  ;;  %v16_v6 = vld [vmem:[%s99_s0 + $0x10] sm:$0xff] }
   0x2   :  { %v47_v1 = vld [vmem:[%s100_s1] ss:$0 sm:$0xff]  ;;  %v17_v7 = vld [vmem:[%s99_s0 + $0x18] sm:$0xff] }
   0x3   :  { %v48_v2 = vld [vmem:[%s101_s2] ss:$0 sm:$0xff]  ;;  %v22_v4 = vmul.f32 %v47_v1, %v14_v0  ;;  %v23_v5 = vmul.f32 %v47_v1, %v15_v3  ;;  %v24_v8 = vmul.f32 %v47_v1, %v16_v6  ;;  %v25_v9 = vmul.f32 %v47_v1, %v17_v7 }
   0x5   :  { %v30_v10 = vadd.f32 %v48_v2, %v22_v4  ;;  %v31_v11 = vadd.f32 %v48_v2, %v23_v5  ;;  %v32_v12 = vadd.f32 %v48_v2, %v24_v8  ;;  %v33_v13 = vadd.f32 %v48_v2, %v25_v9 }
   0x7   :  { %v34_v14 = vmax.f32 %v30_v10, 0.0  ;;  %v35_v15 = vmax.f32 %v31_v11, 0.0  ;;  %v36_v16 = vmax.f32 %v32_v12, 0.0  ;;  %v37_v17 = vmax.f32 %v33_v13, 0.0 }
   0x9   :  { %39 = vst.msk [vmem:[%s102_s3] sm:$0xff] %vm38_vm0, %v34_v14 }
   0xa   :  { %40 = vst.msk [vmem:[%s102_s3 + $0x8] sm:$0xff] %vm38_vm0, %v35_v15 }
   0xb   :  { %41 = vst.msk [vmem:[%s102_s3 + $0x10] sm:$0xff] %vm38_vm0, %v36_v16 }
   0xc   :  { %42 = vst.msk [vmem:[%s102_s3 + $0x18] sm:$0xff] %vm38_vm0, %v37_v17 }

// kernel: attention_generator_forward.71
= control target key start
LH: loop header
LB: loop body
LE: loop exit
PB: predicated region body
PF: predicated region fallthrough
CT: control target
= control target key end

     0   :  { %vm45_vm0 = vcmask 261120   ;;  %s123_s0 = inlined_call_operand.vmem [shape: f32[32,32], index: 0, kind: input, shape index: {}]   ;;  %s124_s1 = inlined_call_operand.vmem [shape: f32[1,32], index: 1, kind: input, shape index: {}]   ;;  %s125_s2 = inlined_call_operand.vmem [shape: f32[1,32], index: 2, kind: input, shape index: {}]   ;;  %s126_s3 = inlined_call_operand.vmem [shape: f32[32,32], index: 3, kind: input, shape index: {}]   ;;  %s127_s4 = inlined_call_operand.vmem [shape: f32[32,32], index: 4, kind: output, shape index: {}]  }
   0x1   :  { %v17_v0 = vld [vmem:[%s123_s0] sm:$0xff]  ;;  %v18_v4 = vld [vmem:[%s123_s0 + $0x8] sm:$0xff]  ;;  %v19_v5 = vld [vmem:[%s123_s0 + $0x10] sm:$0xff] }
   0x2   :  { %v54_v1 = vld [vmem:[%s124_s1] ss:$0 sm:$0xff]  ;;  %v20_v9 = vld [vmem:[%s123_s0 + $0x18] sm:$0xff]  ;;  %v38_v11 = vld [vmem:[%s126_s3 + $0x8] sm:$0xff] }
   0x3   :  { %v55_v2 = vld [vmem:[%s125_s2] ss:$0 sm:$0xff]  ;;  %v25_v3 = vmul.f32 %v54_v1, %v17_v0  ;;  %v26_v7 = vmul.f32 %v54_v1, %v18_v4  ;;  %v27_v8 = vmul.f32 %v54_v1, %v19_v5  ;;  %v39_v12 = vld [vmem:[%s126_s3 + $0x10] sm:$0xff]  ;;  %v28_v13 = vmul.f32 %v54_v1, %v20_v9  ;;  %v40_v16 = vld [vmem:[%s126_s3 + $0x18] sm:$0xff] }
   0x4   :  { %v37_v6 = vld [vmem:[%s126_s3] sm:$0xff] }
   0x5   :  { %v33_v10 = vadd.f32 %v55_v2, %v25_v3  ;;  %v34_v14 = vadd.f32 %v55_v2, %v26_v7  ;;  %v35_v15 = vadd.f32 %v55_v2, %v27_v8  ;;  %v36_v18 = vadd.f32 %v55_v2, %v28_v13 }
   0x7   :  { %v41_v17 = vadd.f32 %v37_v6, %v33_v10  ;;  %v42_v19 = vadd.f32 %v38_v11, %v34_v14  ;;  %v43_v20 = vadd.f32 %v39_v12, %v35_v15  ;;  %v44_v21 = vadd.f32 %v40_v16, %v36_v18 }
   0x9   :  { %46 = vst.msk [vmem:[%s127_s4] sm:$0xff] %vm45_vm0, %v41_v17 }
   0xa   :  { %47 = vst.msk [vmem:[%s127_s4 + $0x8] sm:$0xff] %vm45_vm0, %v42_v19 }
   0xb   :  { %48 = vst.msk [vmem:[%s127_s4 + $0x10] sm:$0xff] %vm45_vm0, %v43_v20 }
   0xc   :  { %49 = vst.msk [vmem:[%s127_s4 + $0x18] sm:$0xff] %vm45_vm0, %v44_v21 }

// kernel: attention_generator_forward.87
= control target key start
LH: loop header
LB: loop body
LE: loop exit
PB: predicated region body
PF: predicated region fallthrough
CT: control target
= control target key end

     0   :  { %vm209_vm0 = vcmask 261120   ;;  %s562_s1 = inlined_call_operand.vmem [shape: bf16[288,128], index: 1, kind: input, shape index: {}]   ;;  %s563_s0 = inlined_call_operand.vmem [shape: bf16[32,288], index: 0, kind: input, shape index: {}]   ;;  %s564_s2 = inlined_call_operand.vmem [shape: f32[1,128], index: 2, kind: input, shape index: {}]   ;;  %s565_s3 = inlined_call_operand.vmem [shape: f32[32,128], index: 3, kind: output, shape index: {}]  }
   0x1   :  { %v415_v0 = vld [vmem:[%s562_s1 + $0x38] sm:$0xff]  ;;  %v414_v2 = vld [vmem:[%s562_s1 + $0x30] sm:$0xff]  ;;  %v425_v4 = vld [vmem:[%s562_s1 + $0x88] sm:$0xff] }
   0x2   :  { %v423_v1 = vld [vmem:[%s562_s1 + $0x78] sm:$0xff]  ;;  %216 = vmatpush.bf16.msra.mxu0 %v415_v0  ;;  %v422_v3 = vld [vmem:[%s562_s1 + $0x70] sm:$0xff]  ;;  %426 = vmatpush.bf16.msra.mxu3 %v415_v0  ;;  %v424_v5 = vld [vmem:[%s562_s1 + $0x80] sm:$0xff] }
   0x3   :  { %235 = vmatpush.bf16.msra.mxu1 %v423_v1  ;;  %260 = vmatpush.bf16.msra.mxu2 %v425_v4  ;;  %v314_v6 = vld [vmem:[%s563_s0 + $0x8] sm:$0xf]  ;;  %v404_v7 = vld [vmem:[%s563_s0 + $0x10] sm:$0xf0]  ;;  %v412_v11 = vld [vmem:[%s562_s1 + $0x20] sm:$0xff] }
   0x4   :  { %v413_v8 = vld [vmem:[%s562_s1 + $0x28] sm:$0xff]  ;;  %v315_v10 = vor.u32 %v404_v7, %v314_v6  ;;  %v420_v12 = vld [vmem:[%s562_s1 + $0x60] sm:$0xff]  ;;  %v411_v13 = vld [vmem:[%s562_s1 + $0x18] sm:$0xff] }
   0x5   :  { %v421_v9 = vld [vmem:[%s562_s1 + $0x68] sm:$0xff]  ;;  %v419_v14 = vld [vmem:[%s562_s1 + $0x58] sm:$0xff]  ;;  %v410_v15 = vld [vmem:[%s562_s1 + $0x10] sm:$0xff] }
   0x6   :  { %217 = vmatpush.bf16.msra.mxu0 %v414_v2  ;;  %427 = vmatpush.bf16.msra.mxu3 %v414_v2  ;;  %v418_v16 = vld [vmem:[%s562_s1 + $0x50] sm:$0xff]  ;;  %v326_v17 = vld [vmem:[%s563_s0 + $0x20] sm:$0xf]  ;;  %v407_v18 = vld [vmem:[%s563_s0 + $0x28] sm:$0xf0] }
   0x7   :  { %236 = vmatpush.bf16.msra.mxu1 %v422_v3  ;;  %261 = vmatpush.bf16.msra.mxu2 %v424_v5  ;;  %v409_v19 = vld [vmem:[%s562_s1 + $0x8] sm:$0xff]  ;;  %v327_v21 = vor.u32 %v407_v18, %v326_v17  ;;  %v408_v22 = vld [vmem:[%s562_s1] sm:$0xff]  ;;  %v308_v27 = vld [vmem:[%s563_s0 + $0xc] sm:$0xf0] }
   0x8   :  { %v417_v20 = vld [vmem:[%s562_s1 + $0x48] sm:$0xff]  ;;  %v416_v23 = vld [vmem:[%s562_s1 + $0x40] sm:$0xff]  ;;  %v318_v28 = vld [vmem:[%s563_s0 + $0x18] sm:$0xf] }
   0x9   :  { %v306_v24 = vld [vmem:[%s563_s0] sm:$0xf]  ;;  %v403_v25 = vld [vmem:[%s563_s0 + $0x8] sm:$0xf0]  ;;  %v402_v26 = vld [vmem:[%s563_s0 + $0x4] sm:$0xf] }
   0xa   :  { %218 = vmatpush.bf16.msra.mxu0 %v413_v8  ;;  %428 = vmatpush.bf16.msra.mxu3 %v413_v8  ;;  %v406_v29 = vld [vmem:[%s563_s0 + $0x20] sm:$0xf0]  ;;  %v307_v30 = vor.u32 %v403_v25, %v306_v24  ;;  %v311_v31 = vor.u32 %v402_v26, %v308_v27  ;;  %v405_v33 = vld [vmem:[%s563_s0 + $0x1c] sm:$0xf]  ;;  %v320_v34 = vld [vmem:[%s563_s0 + $0x24] sm:$0xf0] }
   0xb   :  { %237 = vmatpush.bf16.msra.mxu1 %v421_v9  ;;  %400 = vmatmul.msk.bf16.vlgmr.msra.gmra.mxu2 %vm209_vm0, %v315_v10  ;;  %v319_v32 = vor.u32 %v406_v29, %v318_v28  ;;  %v323_v35 = vor.u32 %v405_v33, %v320_v34  ;;  %v434_v40 = vld [vmem:[%s564_s2] ss:$0 sm:$0xff] }
   0xe   :  { %219 = vmatpush.bf16.msra.mxu0 %v412_v11  ;;  %429 = vmatpush.bf16.msra.mxu3 %v412_v11 }
   0xf   :  { %238 = vmatpush.bf16.msra.mxu1 %v420_v12 }
  0x12   :  { %220 = vmatpush.bf16.msra.mxu0 %v411_v13  ;;  %430 = vmatpush.bf16.msra.mxu3 %v411_v13 }
  0x13   :  { %239 = vmatpush.bf16.msra.mxu1 %v419_v14 }
  0x16   :  { %221 = vmatpush.bf16.msra.mxu0 %v410_v15  ;;  %431 = vmatpush.bf16.msra.mxu3 %v410_v15 }
  0x17   :  { %240 = vmatpush.bf16.msra.mxu1 %v418_v16 }
  0x1a   :  { %222 = vmatpush.bf16.msra.mxu0 %v409_v19  ;;  %432 = vmatpush.bf16.msra.mxu3 %v409_v19 }
  0x1b   :  { %241 = vmatpush.bf16.msra.mxu1 %v417_v20  ;;  %401 = vmatmul.msk.bf16.gmra.mxu2 %vm209_vm0, %v327_v21 }
  0x1e   :  { %223 = vmatpush.bf16.msra.mxu0 %v408_v22  ;;  %433 = vmatpush.bf16.msra.mxu3 %v408_v22 }
  0x1f   :  { %242 = vmatpush.bf16.msra.mxu1 %v416_v23 }
  0x21   :  { %224 = vmatmul.bf16.vlgmr.msra.gmra.mxu0 %v307_v30  ;;  %229 = vmatmul.bf16.vlgmr.msra.gmra.mxu3 %v319_v32 }
  0x22   :  { %243 = vmatmul.bf16.vlgmr.msra.gmra.mxu1 %v311_v31 }
  0x32   :  { %248 = vmatmul.bf16.gmra.mxu1 %v323_v35 }
  0x8e   :  { %v263_v36 = vpop.f32.mrf.mxu2 }
  0x96   :  { %v265_v43 = vpop.f32.mrf.mxu2 }
  0x9e   :  { %v225_v37 = vpop.f32.mrf.mxu0  ;;  %v268_v50 = vpop.f32.mrf.mxu2 }
  0x9f   :  { %v244_v38 = vpop.f32.mrf.mxu1 }
  0xa0   :  { %v245_v39 = vadd.f32 %v244_v38, %v225_v37 }
  0xa2   :  { %v264_v41 = vadd.f32 %v263_v36, %v245_v39 }
  0xa4   :  { %v292_v42 = vadd.f32 %v434_v40, %v264_v41  ;;  %v230_v49 = vpop.f32.mrf.mxu3 }
  0xa6   :  { %296 = vst [vmem:[%s565_s3] sm:$0xff] %v292_v42  ;;  %v227_v44 = vpop.f32.mrf.mxu0  ;;  %v270_v58 = vpop.f32.mrf.mxu2 }
  0xa7   :  { %v246_v45 = vpop.f32.mrf.mxu1 }
  0xa8   :  { %v247_v46 = vadd.f32 %v246_v45, %v227_v44 }
  0xaa   :  { %v266_v47 = vadd.f32 %v265_v43, %v247_v46 }
  0xac   :  { %v293_v48 = vadd.f32 %v434_v40, %v266_v47  ;;  %v232_v55 = vpop.f32.mrf.mxu3 }
  0xae   :  { %297 = vst [vmem:[%s565_s3 + $0x8] sm:$0xff] %v293_v48 }
  0xaf   :  { %v249_v51 = vpop.f32.mrf.mxu1 }
  0xb0   :  { %v250_v52 = vadd.f32 %v249_v51, %v230_v49 }
  0xb2   :  { %v269_v53 = vadd.f32 %v268_v50, %v250_v52 }
  0xb4   :  { %v294_v54 = vadd.f32 %v434_v40, %v269_v53 }
  0xb6   :  { %298 = vst [vmem:[%s565_s3 + $0x10] sm:$0xff] %v294_v54 }
  0xb7   :  { %v251_v56 = vpop.f32.mrf.mxu1 }
  0xb8   :  { %v252_v57 = vadd.f32 %v251_v56, %v232_v55 }
  0xba   :  { %v271_v59 = vadd.f32 %v270_v58, %v252_v57 }
  0xbc   :  { %v295_v60 = vadd.f32 %v434_v40, %v271_v59 }
  0xbe   :  { %299 = vst [vmem:[%s565_s3 + $0x18] sm:$0xff] %v295_v60 }

// kernel: attention_generator_forward.100
= control target key start
LH: loop header
LB: loop body
LE: loop exit
PB: predicated region body
PF: predicated region fallthrough
CT: control target
= control target key end

     0   :  { %vm57_vm0 = vcmask 261120   ;;  %s186_s1 = inlined_call_operand.vmem [shape: bf16[32,128], index: 1, kind: input, shape index: {}]   ;;  %s187_s2 = inlined_call_operand.vmem [shape: f32[1,128], index: 2, kind: input, shape index: {}]   ;;  %s188_s0 = inlined_call_operand.vmem [shape: bf16[32,32], index: 0, kind: input, shape index: {}]   ;;  %s189_s3 = inlined_call_operand.vmem [shape: f32[32,128], index: 3, kind: output, shape index: {}]  }
   0x1   :  { %v135_v0 = vld [vmem:[%s186_s1 + $0x8] sm:$0xff]  ;;  %v134_v1 = vld [vmem:[%s186_s1] sm:$0xff] }
   0x2   :  { %70 = vmatpush.bf16.msra.mxu0 %v135_v0  ;;  %136 = vmatpush.bf16.msra.mxu1 %v135_v0  ;;  %v132_v2 = vld [vmem:[%s188_s0] sm:$0xff]  ;;  %v133_v3 = vld [vmem:[%s188_s0 + $0x8] sm:$0xff] }
   0x3   :  { %v138_v4 = vld [vmem:[%s187_s2] ss:$0 sm:$0xff] }
   0x6   :  { %71 = vmatpush.bf16.msra.mxu0 %v134_v1  ;;  %137 = vmatpush.bf16.msra.mxu1 %v134_v1 }
   0x9   :  { %130 = vmatmul.msk.bf16.vlgmr.msra.gmra.mxu0 %vm57_vm0, %v132_v2  ;;  %131 = vmatmul.msk.bf16.vlgmr.msra.gmra.mxu1 %vm57_vm0, %v133_v3 }
  0x86   :  { %v73_v5 = vpop.f32.mrf.mxu0  ;;  %v78_v6 = vpop.f32.mrf.mxu1 }
  0x87   :  { %v102_v7 = vadd.f32 %v138_v4, %v73_v5  ;;  %v104_v8 = vadd.f32 %v138_v4, %v78_v6 }
  0x89   :  { %106 = vst [vmem:[%s189_s3] sm:$0xff] %v102_v7 }
  0x8a   :  { %108 = vst [vmem:[%s189_s3 + $0x10] sm:$0xff] %v104_v8 }
  0x8e   :  { %v75_v9 = vpop.f32.mrf.mxu0  ;;  %v80_v10 = vpop.f32.mrf.mxu1 }
  0x8f   :  { %v103_v11 = vadd.f32 %v138_v4, %v75_v9  ;;  %v105_v12 = vadd.f32 %v138_v4, %v80_v10 }
  0x91   :  { %107 = vst [vmem:[%s189_s3 + $0x8] sm:$0xff] %v103_v11 }
  0x92   :  { %109 = vst [vmem:[%s189_s3 + $0x18] sm:$0xff] %v105_v12 }

// kernel: attention_generator_forward.102
= control target key start
LH: loop header
LB: loop body
LE: loop exit
PB: predicated region body
PF: predicated region fallthrough
CT: control target
= control target key end

     0   :  { %vm49_vm0 = vcmask 130048   ;;  %s169_s1 = inlined_call_operand.vmem [shape: bf16[16,128], index: 1, kind: input, shape index: {}]   ;;  %s170_s0 = inlined_call_operand.vmem [shape: bf16[32,16], index: 0, kind: input, shape index: {}]   ;;  %s171_s2 = inlined_call_operand.vmem [shape: f32[1,128], index: 2, kind: input, shape index: {}]   ;;  %s172_s3 = inlined_call_operand.vmem [shape: f32[32,128], index: 3, kind: output, shape index: {}]  }
   0x1   :  { %v122_v0 = vld [vmem:[%s169_s1] sm:$0xff]  ;;  %v121_v2 = vld [vmem:[%s170_s0 + $0x8] sm:$0xff] }
   0x2   :  { %v120_v1 = vld [vmem:[%s170_s0] sm:$0xff]  ;;  %63 = vmatpush.bf16.msra.mxu0 %v122_v0  ;;  %123 = vmatpush.bf16.msra.mxu1 %v122_v0 }
   0x3   :  { %v124_v3 = vld [vmem:[%s171_s2] ss:$0 sm:$0xff] }
   0x5   :  { %118 = vmatmul.msk.bf16.vlgmr.msra.gmra.mxu0 %vm49_vm0, %v120_v1  ;;  %119 = vmatmul.msk.bf16.vlgmr.msra.gmra.mxu1 %vm49_vm0, %v121_v2 }
  0x82   :  { %v65_v4 = vpop.f32.mrf.mxu0  ;;  %v70_v5 = vpop.f32.mrf.mxu1 }
  0x83   :  { %v94_v6 = vadd.f32 %v124_v3, %v65_v4  ;;  %v96_v7 = vadd.f32 %v124_v3, %v70_v5 }
  0x85   :  { %98 = vst [vmem:[%s172_s3] sm:$0xff] %v94_v6 }
  0x86   :  { %100 = vst [vmem:[%s172_s3 + $0x10] sm:$0xff] %v96_v7 }
  0x8a   :  { %v67_v8 = vpop.f32.mrf.mxu0  ;;  %v72_v9 = vpop.f32.mrf.mxu1 }
  0x8b   :  { %v95_v10 = vadd.f32 %v124_v3, %v67_v8  ;;  %v97_v11 = vadd.f32 %v124_v3, %v72_v9 }
  0x8d   :  { %99 = vst [vmem:[%s172_s3 + $0x8] sm:$0xff] %v95_v10 }
  0x8e   :  { %101 = vst [vmem:[%s172_s3 + $0x18] sm:$0xff] %v97_v11 }

// kernel: attention_generator_forward.101
= control target key start
LH: loop header
LB: loop body
LE: loop exit
PB: predicated region body
PF: predicated region fallthrough
CT: control target
= control target key end

     0   :  { %s442_s12 = smov 0   ;;  %s478_s0 = inlined_call_operand.vmem [shape: bf16[2,16,16], index: 0, kind: input, shape index: {}]   ;;  %s479_s1 = inlined_call_operand.vmem [shape: bf16[2,16,4], index: 1, kind: input, shape index: {}]   ;;  %s480_s2 = inlined_call_operand.vmem [shape: bf16[2,4,16], index: 2, kind: input, shape index: {}]   ;;  %s481_s3 = inlined_call_operand.vmem [shape: f32[2,16,16], index: 3, kind: output, shape index: {}]  }
   0x1 LB: > { %s369_s13 = sadd.s32 4294967295, %s420_s12   ;;  %p373_p0 = scmp.ge.s32.totalorder %s420_s12, 1  ;;  %s420_s12 = sphi %s442_s12, %s13_s12  }
   0x2   : > { %p156_p1 = scmp.lt.s32.totalorder %s420_s12, 3 }
   0x4   : > { %p157_p2 = pnand %p373_p0, %p156_p1 }
   0x5   : > { %p189_p3 = scmp.lt.s32.totalorder (!%p157_p2), %s369_s13, 1 }
   0x6   : > { %160 = sbr.rel (%p157_p2) target bundleno = 543 (0x21f), region = 32 }
   0xb   : > { %s483_s13 = smov (!%p189_p3, %s369_s13), 1  ;;  %vm225_vm0 = vcmask 130048   ;;  %vm243_vm1 = vcmask 31744   ;;  %vm270_vm2 = vcmask 1041408  }
   0xc   : > { %s393_s14 = sshll.u32 %s483_s13, 3  ;;  %s378_s21 = sshll.u32 %s483_s13, 1 }
   0xd   : > { %s193_s17 = scalar_lea.vmem %s478_s0, %s393_s14  ;;  %s198_s20 = scalar_lea.vmem %s479_s1, %s393_s14 }
   0xe   : > { %v397_v0 = vld [vmem:[%s198_s20] sm:$0xff]  ;;  %s202_s24 = scalar_lea.vmem %s480_s2, %s378_s21  ;;  %s395_s25 = sshll.u32 %s483_s13, 4 }
   0xf   : > { %v396_v1 = vld [vmem:[%s193_s17] sm:$0xff]  ;;  %236 = vmatpush.bf16.msra.mxu0 %v397_v0  ;;  %s207_s28 = scalar_lea.vmem %s481_s3, %s395_s25 }
  0x10   : > { %v213_v16 = vld [vmem:[%s202_s24] sm:$0x3] }
  0x11   : > { %v272_v17 = vsel %vm270_vm2, %v213_v16, 0 }
  0x12   : > { %389 = vmatmul.msk.bf16.vlgmr.msra.gmra.mxu0 %vm225_vm0, %v396_v1  ;;  %281 = vmatpush.bf16.msra.mxu1 %v272_v17 }
  0x8f   : > { %v238_v2 = vpop.f32.mrf.mxu0 }
  0x90   : > { %v244_v3 = vsel %vm243_vm1, %v238_v2, -inf }
  0x91   : > { %245 = vmax.xlane.f32.xlu0 %v244_v3 }
  0x97   : > { %v240_v4 = vpop.f32.mrf.mxu0 }
  0x98   : > { %v247_v5 = vsel %vm243_vm1, %v240_v4, -inf }
  0x99   : > { %248 = vmax.xlane.f32.xlu0 %v247_v5 }
 0x104   : > { %v246_v6 = vpop.xlane.xlu0 %245 }
 0x105   : > { %v250_v7 = vsub.f32 %v238_v2, %v246_v6 }
 0x107   : > { %v252_v8 = vmul.f32 1.442695, %v250_v7 }
 0x109   : > { %406 = vpow2.f32 %v252_v8 }
 0x10c   : > { %v249_v9 = vpop.xlane.xlu0 %248 }
 0x10d   : > { %v251_v10 = vsub.f32 %v240_v4, %v249_v9 }
 0x10f   : > { %v407_v11 = vpop.eup %406  ;;  %v254_v12 = vmul.f32 1.442695, %v251_v10 }
 0x110   : > { %v256_v13 = vsel %vm243_vm1, %v407_v11, 0.0 }
 0x111   : > { %408 = vpow2.f32 %v254_v12  ;;  %257 = vadd.xlane.f32.xlu1 %v256_v13 }
 0x117   : > { %v409_v14 = vpop.eup %408 }
 0x118   : > { %v259_v15 = vsel %vm243_vm1, %v409_v14, 0.0 }
 0x119   : > { %260 = vadd.xlane.f32.xlu1 %v259_v15 }
 0x184   : > { %v258_v18 = vpop.xlane.xlu1 %257 }
 0x185   : > { %410 = vrcp.f32 %v258_v18 }
 0x18b   : > { %v411_v20 = vpop.eup %410 }
 0x18c   : > { %v261_v19 = vpop.xlane.xlu1 %260  ;;  %v264_v22 = vmul.f32 %v411_v20, %v407_v11 }
 0x18d   : > { %412 = vrcp.f32 %v261_v19 }
 0x193   : > { %v413_v21 = vpop.eup %412 }
 0x194   : > { %v265_v23 = vmul.f32 %v413_v21, %v409_v14 }
 0x196   : > { %v266_v24 = vpack.c.bf16 %v265_v23, %v264_v22 }
 0x198   : > { %390 = vmatmul.msk.bf16.vlgmr.msra.gmra.mxu1 %vm243_vm1, %v266_v24 }
 0x215   : > { %v283_v25 = vpop.f32.mrf.mxu1 }
 0x216   : > { %288 = vst.msk [vmem:[%s207_s28] sm:$0xff] %vm225_vm0, %v283_v25 }
 0x21d   : > { %v285_v26 = vpop.f32.mrf.mxu1 }
 0x21e   : > { %289 = vst.msk [vmem:[%s207_s28 + $0x8] sm:$0xff] %vm225_vm0, %v285_v26 }
 0x21f PF: > { %s13_s12 = sadd.s32 1, %s420_s12  }
 0x220   : > { %p10_p4 = scmp.ge.s32.totalorder %s13_s12, 4  }
 0x222   :  { %12 = sbr.rel (!%p10_p4) target bundleno = 1 (0x1), region = 68 }

// kernel: attention_generator_forward.105
= control target key start
LH: loop header
LB: loop body
LE: loop exit
PB: predicated region body
PF: predicated region fallthrough
CT: control target
= control target key end

     0   :  { %s280_s1 = inlined_call_operand.vmem [shape: bf16[128,128], index: 1, kind: input, shape index: {}]   ;;  %s281_s2 = inlined_call_operand.vmem [shape: f32[1,128], index: 2, kind: input, shape index: {}]   ;;  %s282_s0 = inlined_call_operand.vmem [shape: bf16[32,128], index: 0, kind: input, shape index: {}]   ;;  %s283_s3 = inlined_call_operand.vmem [shape: f32[32,128], index: 3, kind: output, shape index: {}]  }
   0x1   :  { %v205_v0 = vld [vmem:[%s280_s1 + $0x38] sm:$0xff]  ;;  %v204_v1 = vld [vmem:[%s280_s1 + $0x30] sm:$0xff]  ;;  %v203_v2 = vld [vmem:[%s280_s1 + $0x28] sm:$0xff] }
   0x2   :  { %106 = vmatpush.bf16.msra.mxu0 %v205_v0  ;;  %206 = vmatpush.bf16.msra.mxu1 %v205_v0  ;;  %v202_v3 = vld [vmem:[%s280_s1 + $0x20] sm:$0xff]  ;;  %v201_v4 = vld [vmem:[%s280_s1 + $0x18] sm:$0xff]  ;;  %v200_v5 = vld [vmem:[%s280_s1 + $0x10] sm:$0xff] }
   0x3   :  { %v199_v6 = vld [vmem:[%s280_s1 + $0x8] sm:$0xff]  ;;  %v198_v7 = vld [vmem:[%s280_s1] sm:$0xff] }
   0x4   :  { %v196_v8 = vld [vmem:[%s282_s0] sm:$0xff]  ;;  %v197_v9 = vld [vmem:[%s282_s0 + $0x8] sm:$0xff] }
   0x5   :  { %v214_v10 = vld [vmem:[%s281_s2] ss:$0 sm:$0xff] }
   0x6   :  { %107 = vmatpush.bf16.msra.mxu0 %v204_v1  ;;  %207 = vmatpush.bf16.msra.mxu1 %v204_v1 }
   0xa   :  { %108 = vmatpush.bf16.msra.mxu0 %v203_v2  ;;  %208 = vmatpush.bf16.msra.mxu1 %v203_v2 }
   0xe   :  { %109 = vmatpush.bf16.msra.mxu0 %v202_v3  ;;  %209 = vmatpush.bf16.msra.mxu1 %v202_v3 }
  0x12   :  { %110 = vmatpush.bf16.msra.mxu0 %v201_v4  ;;  %210 = vmatpush.bf16.msra.mxu1 %v201_v4 }
  0x16   :  { %111 = vmatpush.bf16.msra.mxu0 %v200_v5  ;;  %211 = vmatpush.bf16.msra.mxu1 %v200_v5 }
  0x1a   :  { %112 = vmatpush.bf16.msra.mxu0 %v199_v6  ;;  %212 = vmatpush.bf16.msra.mxu1 %v199_v6 }
  0x1e   :  { %113 = vmatpush.bf16.msra.mxu0 %v198_v7  ;;  %213 = vmatpush.bf16.msra.mxu1 %v198_v7 }
  0x21   :  { %114 = vmatmul.bf16.vlgmr.msra.gmra.mxu0 %v196_v8  ;;  %119 = vmatmul.bf16.vlgmr.msra.gmra.mxu1 %v197_v9 }
  0x9e   :  { %v115_v11 = vpop.f32.mrf.mxu0  ;;  %v120_v12 = vpop.f32.mrf.mxu1 }
  0x9f   :  { %v144_v13 = vadd.f32 %v214_v10, %v115_v11  ;;  %v146_v14 = vadd.f32 %v214_v10, %v120_v12 }
  0xa1   :  { %148 = vst [vmem:[%s283_s3] sm:$0xff] %v144_v13 }
  0xa2   :  { %150 = vst [vmem:[%s283_s3 + $0x10] sm:$0xff] %v146_v14 }
  0xa6   :  { %v117_v15 = vpop.f32.mrf.mxu0  ;;  %v122_v16 = vpop.f32.mrf.mxu1 }
  0xa7   :  { %v145_v17 = vadd.f32 %v214_v10, %v117_v15  ;;  %v147_v18 = vadd.f32 %v214_v10, %v122_v16 }
  0xa9   :  { %149 = vst [vmem:[%s283_s3 + $0x8] sm:$0xff] %v145_v17 }
  0xaa   :  { %151 = vst [vmem:[%s283_s3 + $0x18] sm:$0xff] %v147_v18 }

// kernel: attention_generator_forward.108
= control target key start
LH: loop header
LB: loop body
LE: loop exit
PB: predicated region body
PF: predicated region fallthrough
CT: control target
= control target key end

     0   :  { %vm139_vm0 = vcmask 523264   ;;  %s500_s1 = inlined_call_operand.vmem [shape: bf16[64,128], index: 1, kind: input, shape index: {}]   ;;  %s501_s2 = inlined_call_operand.vmem [shape: f32[1,128], index: 2, kind: input, shape index: {}]   ;;  %s502_s0 = inlined_call_operand.vmem [shape: bf16[128,64], index: 0, kind: input, shape index: {}]   ;;  %s503_s3 = inlined_call_operand.vmem [shape: f32[128,128], index: 3, kind: output, shape index: {}]  }
   0x1   :  { %v371_v0 = vld [vmem:[%s500_s1 + $0x18] sm:$0xff]  ;;  %v370_v1 = vld [vmem:[%s500_s1 + $0x10] sm:$0xff]  ;;  %v369_v2 = vld [vmem:[%s500_s1 + $0x8] sm:$0xff] }
   0x2   :  { %168 = vmatpush.bf16.msra.mxu0 %v371_v0  ;;  %372 = vmatpush.bf16.msra.mxu1 %v371_v0  ;;  %v368_v3 = vld [vmem:[%s500_s1] sm:$0xff]  ;;  %v362_v5 = vld [vmem:[%s502_s0 + $0x10] sm:$0xff]  ;;  %v361_v8 = vld [vmem:[%s502_s0 + $0x8] sm:$0xff] }
   0x3   :  { %373 = vmatpush.bf16.msra.mxu2 %v371_v0  ;;  %374 = vmatpush.bf16.msra.mxu3 %v371_v0  ;;  %v360_v4 = vld [vmem:[%s502_s0] sm:$0xff]  ;;  %v366_v7 = vld [vmem:[%s502_s0 + $0x30] sm:$0xff]  ;;  %v363_v9 = vld [vmem:[%s502_s0 + $0x18] sm:$0xff] }
   0x4   :  { %v364_v6 = vld [vmem:[%s502_s0 + $0x20] sm:$0xff]  ;;  %v365_v10 = vld [vmem:[%s502_s0 + $0x28] sm:$0xff]  ;;  %v367_v11 = vld [vmem:[%s502_s0 + $0x38] sm:$0xff] }
   0x5   :  { %v384_v12 = vld [vmem:[%s501_s2] ss:$0 sm:$0xff] }
   0x6   :  { %169 = vmatpush.bf16.msra.mxu0 %v370_v1  ;;  %375 = vmatpush.bf16.msra.mxu1 %v370_v1 }
   0x7   :  { %376 = vmatpush.bf16.msra.mxu2 %v370_v1  ;;  %377 = vmatpush.bf16.msra.mxu3 %v370_v1 }
   0xa   :  { %170 = vmatpush.bf16.msra.mxu0 %v369_v2  ;;  %378 = vmatpush.bf16.msra.mxu1 %v369_v2 }
   0xb   :  { %379 = vmatpush.bf16.msra.mxu2 %v369_v2  ;;  %380 = vmatpush.bf16.msra.mxu3 %v369_v2 }
   0xe   :  { %171 = vmatpush.bf16.msra.mxu0 %v368_v3  ;;  %381 = vmatpush.bf16.msra.mxu1 %v368_v3 }
   0xf   :  { %382 = vmatpush.bf16.msra.mxu2 %v368_v3  ;;  %383 = vmatpush.bf16.msra.mxu3 %v368_v3 }
  0x11   :  { %352 = vmatmul.msk.bf16.vlgmr.msra.gmra.mxu0 %vm139_vm0, %v360_v4  ;;  %354 = vmatmul.msk.bf16.vlgmr.msra.gmra.mxu1 %vm139_vm0, %v362_v5 }
  0x12   :  { %356 = vmatmul.msk.bf16.vlgmr.msra.gmra.mxu2 %vm139_vm0, %v364_v6  ;;  %358 = vmatmul.msk.bf16.vlgmr.msra.gmra.mxu3 %vm139_vm0, %v366_v7 }
  0x21   :  { %353 = vmatmul.msk.bf16.gmra.mxu0 %vm139_vm0, %v361_v8  ;;  %355 = vmatmul.msk.bf16.gmra.mxu1 %vm139_vm0, %v363_v9 }
  0x22   :  { %357 = vmatmul.msk.bf16.gmra.mxu2 %vm139_vm0, %v365_v10  ;;  %359 = vmatmul.msk.bf16.gmra.mxu3 %vm139_vm0, %v367_v11 }
  0x8e   :  { %v173_v13 = vpop.f32.mrf.mxu0  ;;  %v183_v14 = vpop.f32.mrf.mxu1 }
  0x8f   :  { %v268_v15 = vadd.f32 %v384_v12, %v173_v13  ;;  %v272_v16 = vadd.f32 %v384_v12, %v183_v14 }
  0x91   :  { %284 = vst [vmem:[%s503_s3] sm:$0xff] %v268_v15 }
  0x92   :  { %288 = vst [vmem:[%s503_s3 + $0x20] sm:$0xff] %v272_v16 }
  0x95   :  { %v193_v17 = vpop.f32.mrf.mxu2  ;;  %v203_v18 = vpop.f32.mrf.mxu3 }
  0x96   :  { %v276_v19 = vadd.f32 %v384_v12, %v193_v17  ;;  %v280_v20 = vadd.f32 %v384_v12, %v203_v18  ;;  %v175_v21 = vpop.f32.mrf.mxu0  ;;  %v185_v22 = vpop.f32.mrf.mxu1 }
  0x97   :  { %v269_v23 = vadd.f32 %v384_v12, %v175_v21  ;;  %v273_v24 = vadd.f32 %v384_v12, %v185_v22 }
  0x98   :  { %292 = vst [vmem:[%s503_s3 + $0x40] sm:$0xff] %v276_v19 }
  0x99   :  { %296 = vst [vmem:[%s503_s3 + $0x60] sm:$0xff] %v280_v20 }
  0x9a   :  { %285 = vst [vmem:[%s503_s3 + $0x8] sm:$0xff] %v269_v23 }
  0x9b   :  { %289 = vst [vmem:[%s503_s3 + $0x28] sm:$0xff] %v273_v24 }
  0x9d   :  { %v195_v25 = vpop.f32.mrf.mxu2  ;;  %v205_v26 = vpop.f32.mrf.mxu3 }
  0x9e   :  { %v277_v27 = vadd.f32 %v384_v12, %v195_v25  ;;  %v281_v28 = vadd.f32 %v384_v12, %v205_v26  ;;  %v178_v29 = vpop.f32.mrf.mxu0  ;;  %v188_v30 = vpop.f32.mrf.mxu1 }
  0x9f   :  { %v270_v31 = vadd.f32 %v384_v12, %v178_v29  ;;  %v274_v32 = vadd.f32 %v384_v12, %v188_v30 }
  0xa0   :  { %293 = vst [vmem:[%s503_s3 + $0x48] sm:$0xff] %v277_v27 }
  0xa1   :  { %297 = vst [vmem:[%s503_s3 + $0x68] sm:$0xff] %v281_v28 }
  0xa2   :  { %286 = vst [vmem:[%s503_s3 + $0x10] sm:$0xff] %v270_v31 }
  0xa3   :  { %290 = vst [vmem:[%s503_s3 + $0x30] sm:$0xff] %v274_v32 }
  0xa5   :  { %v198_v33 = vpop.f32.mrf.mxu2  ;;  %v208_v34 = vpop.f32.mrf.mxu3 }
  0xa6   :  { %v278_v35 = vadd.f32 %v384_v12, %v198_v33  ;;  %v282_v36 = vadd.f32 %v384_v12, %v208_v34  ;;  %v180_v37 = vpop.f32.mrf.mxu0  ;;  %v190_v38 = vpop.f32.mrf.mxu1 }
  0xa7   :  { %v271_v39 = vadd.f32 %v384_v12, %v180_v37  ;;  %v275_v40 = vadd.f32 %v384_v12, %v190_v38 }
  0xa8   :  { %294 = vst [vmem:[%s503_s3 + $0x50] sm:$0xff] %v278_v35 }
  0xa9   :  { %298 = vst [vmem:[%s503_s3 + $0x70] sm:$0xff] %v282_v36 }
  0xaa   :  { %287 = vst [vmem:[%s503_s3 + $0x18] sm:$0xff] %v271_v39 }
  0xab   :  { %291 = vst [vmem:[%s503_s3 + $0x38] sm:$0xff] %v275_v40 }
  0xad   :  { %v200_v41 = vpop.f32.mrf.mxu2  ;;  %v210_v42 = vpop.f32.mrf.mxu3 }
  0xae   :  { %v279_v43 = vadd.f32 %v384_v12, %v200_v41  ;;  %v283_v44 = vadd.f32 %v384_v12, %v210_v42 }
  0xb0   :  { %295 = vst [vmem:[%s503_s3 + $0x58] sm:$0xff] %v279_v43 }
  0xb1   :  { %299 = vst [vmem:[%s503_s3 + $0x78] sm:$0xff] %v283_v44 }

// kernel: attention_generator_forward.111
= control target key start
LH: loop header
LB: loop body
LE: loop exit
PB: predicated region body
PF: predicated region fallthrough
CT: control target
= control target key end

     0   :  { %s2226_s12 = smov 0   ;;  %s2228_s13 = smov 0   ;;  %s2555_s0 = inlined_call_operand.vmem [shape: bf16[512,392], index: 0, kind: input, shape index: {}]   ;;  %s2556_s1 = inlined_call_operand.vmem [shape: bf16[392,128], index: 1, kind: input, shape index: {}]   ;;  %s2557_s2 = inlined_call_operand.vmem [shape: f32[1,128], index: 2, kind: input, shape index: {}]   ;;  %s2558_s3 = inlined_call_operand.vmem [shape: f32[512,128], index: 3, kind: output, shape index: {}]  }
   0x1   :  { %s2230_s14 = smov 0  }
   0x2 LB: > { %s32_s15 = sadd.s32 1, %s2200_s13  ;;  %p1628_p0 = scmp.ge.s32.totalorder %s2204_s14, 1  ;;  %s2204_s14 = sphi %s2230_s14, %s13_s14   ;;  %s2200_s13 = sphi %s2228_s13, %s2560_s13   ;;  %s2196_s12 = sphi %s2226_s12, %s2559_s12  }
   0x3   : > { %p34_p1 = scmp.ge.s32.totalorder %s32_s15, 2  ;;  %p191_p2 = scmp.lt.s32.totalorder %s2204_s14, 3 }
   0x5   : > { %s2562_s15 = smov (%p34_p1, %s32_s15), 0  ;;  %p192_p3 = pnand %p1628_p0, %p191_p2 }
   0x6   : > { %s1629_s22 = sshll.u32 (!%p192_p3), %s2196_s12, 5 }
   0x7   : > { %195 = sbr.rel (%p192_p3) target bundleno = 440 (0x1b8), region = 32  ;;  %p236_p4 = scmp.lt.s32.totalorder (!%p192_p3), %s1629_s22, 63 }
   0xc   : > { %v2076_v0 = vld [vmem:[%s2556_s1 + $0x38] sm:$0xff]  ;;  %v2075_v3 = vld [vmem:[%s2556_s1 + $0x30] sm:$0xff]  ;;  %s2564_s22 = smov (!%p236_p4, %s1629_s22), 63  ;;  %v2074_v6 = vld [vmem:[%s2556_s1 + $0x28] sm:$0xff]  ;;  %vm949_vm0 = vcmask 1043456   ;;  %vm900_vm1 = vcmask 64512  }
   0xd   : > { %v2084_v1 = vld [vmem:[%s2556_s1 + $0x78] sm:$0xff]  ;;  %953 = vmatpush.bf16.msra.mxu0 %v2076_v0  ;;  %v2083_v4 = vld [vmem:[%s2556_s1 + $0x70] sm:$0xff]  ;;  %s2004_s29 = sshll.u32 %s2564_s22, 4  ;;  %v2082_v7 = vld [vmem:[%s2556_s1 + $0x68] sm:$0xff]  ;;  %s1633_s28 = sshll.u32 %s2564_s22, 3 }
   0xe   : > { %v2092_v2 = vld [vmem:[%s2556_s1 + $0xb8] sm:$0xff]  ;;  %1042 = vmatpush.bf16.msra.mxu1 %v2084_v1  ;;  %v2091_v5 = vld [vmem:[%s2556_s1 + $0xb0] sm:$0xff]  ;;  %v448_v8 = vld [vmem:[%s2556_s1 + $0xc0] sm:$0xf]  ;;  %s2277_s11 = scalar_lea.vmem %s2555_s0, %s2004_s29  ;;  %s2430_s4 = scalar_lea.vmem %s2558_s3, %s1633_s28 }
   0xf   : > { %1131 = vmatpush.bf16.msra.mxu2 %v2092_v2  ;;  %v2090_v9 = vld [vmem:[%s2556_s1 + $0xa8] sm:$0xff]  ;;  %v850_v10 = vunpack.c.l.b16 %v448_v8  ;;  %v1646_v12 = vld [vmem:[%s2277_s11 + $0x18] sm:$0xf0]  ;;  %v2073_v14 = vld [vmem:[%s2556_s1 + $0x20] sm:$0xff] }
  0x10   : > { %v2006_v11 = vld [vmem:[%s2277_s11 + $0xc] sm:$0xf]  ;;  %v2081_v15 = vld [vmem:[%s2556_s1 + $0x60] sm:$0xff]  ;;  %v2072_v19 = vld [vmem:[%s2556_s1 + $0x18] sm:$0xff] }
  0x11   : > { %954 = vmatpush.bf16.msra.mxu0 %v2075_v3  ;;  %v875_v13 = vpack.c.b16 %v850_v10, %v850_v10  ;;  %v2089_v16 = vld [vmem:[%s2556_s1 + $0xa0] sm:$0xff]  ;;  %v1649_v18 = vor.u32 %v2006_v11, %v1646_v12  ;;  %v2080_v20 = vld [vmem:[%s2556_s1 + $0x58] sm:$0xff]  ;;  %v2071_v22 = vld [vmem:[%s2556_s1 + $0x10] sm:$0xff] }
  0x12   : > { %1043 = vmatpush.bf16.msra.mxu1 %v2083_v4  ;;  %v2088_v21 = vld [vmem:[%s2556_s1 + $0x98] sm:$0xff]  ;;  %v2079_v23 = vld [vmem:[%s2556_s1 + $0x50] sm:$0xff]  ;;  %v2070_v25 = vld [vmem:[%s2556_s1 + $0x8] sm:$0xff] }
  0x13   : > { %1132 = vmatpush.bf16.msra.mxu2 %v2091_v5  ;;  %v951_v17 = vsel %vm949_vm0, %v875_v13, 0  ;;  %v2087_v24 = vld [vmem:[%s2556_s1 + $0x90] sm:$0xff]  ;;  %v2078_v26 = vld [vmem:[%s2556_s1 + $0x48] sm:$0xff]  ;;  %v1662_v29 = vld [vmem:[%s2277_s11 + $0x38] sm:$0xf0] }
  0x14   : > { %1227 = vmatpush.bf16.msra.mxu3 %v951_v17  ;;  %v2086_v27 = vld [vmem:[%s2556_s1 + $0x88] sm:$0xff]  ;;  %v2069_v30 = vld [vmem:[%s2556_s1] sm:$0xff]  ;;  %v2007_v33 = vld [vmem:[%s2277_s11 + $0xc] sm:$0xf0] }
  0x15   : > { %955 = vmatpush.bf16.msra.mxu0 %v2074_v6  ;;  %v2010_v28 = vld [vmem:[%s2277_s11 + $0x2c] sm:$0xf]  ;;  %v2077_v31 = vld [vmem:[%s2556_s1 + $0x40] sm:$0xff]  ;;  %v1638_v35 = vld [vmem:[%s2277_s11 + $0x10] sm:$0xf0] }
  0x16   : > { %1044 = vmatpush.bf16.msra.mxu1 %v2082_v7  ;;  %v1636_v32 = vld [vmem:[%s2277_s11] sm:$0xf]  ;;  %v2005_v34 = vld [vmem:[%s2277_s11 + $0x4] sm:$0xf]  ;;  %v1644_v37 = vld [vmem:[%s2277_s11 + $0x8] sm:$0xf]  ;;  %v1665_v39 = vor.u32 %v2010_v28, %v1662_v29 }
  0x17   : > { %1133 = vmatpush.bf16.msra.mxu2 %v2090_v9  ;;  %1986 = vmatmul.msk.bf16.vlgmr.msra.gmra.mxu3 %vm900_vm1, %v1649_v18  ;;  %v2085_v36 = vld [vmem:[%s2556_s1 + $0x80] sm:$0xff]  ;;  %v2008_v38 = vld [vmem:[%s2277_s11 + $0x14] sm:$0xf0]  ;;  %v1637_v40 = vor.u32 %v2007_v33, %v1636_v32  ;;  %v1641_v41 = vor.u32 %v2005_v34, %v1638_v35  ;;  %v2014_v43 = vld [vmem:[%s2277_s11 + $0x4c] sm:$0xf] }
  0x18   : > { %v1645_v42 = vor.u32 %v2008_v38, %v1644_v37  ;;  %v1678_v44 = vld [vmem:[%s2277_s11 + $0x58] sm:$0xf0]  ;;  %v1652_v45 = vld [vmem:[%s2277_s11 + $0x20] sm:$0xf]  ;;  %v2011_v46 = vld [vmem:[%s2277_s11 + $0x2c] sm:$0xf0] }
  0x19   : > { %956 = vmatpush.bf16.msra.mxu0 %v2073_v14  ;;  %v2009_v47 = vld [vmem:[%s2277_s11 + $0x24] sm:$0xf]  ;;  %v1654_v48 = vld [vmem:[%s2277_s11 + $0x30] sm:$0xf0]  ;;  %v1660_v49 = vld [vmem:[%s2277_s11 + $0x28] sm:$0xf]  ;;  %v1681_v51 = vor.u32 %v2014_v43, %v1678_v44  ;;  %v1653_v52 = vor.u32 %v2011_v46, %v1652_v45 }
  0x1a   : > { %1045 = vmatpush.bf16.msra.mxu1 %v2081_v15  ;;  %v2012_v50 = vld [vmem:[%s2277_s11 + $0x34] sm:$0xf0]  ;;  %v1657_v53 = vor.u32 %v2009_v47, %v1654_v48  ;;  %v2018_v55 = vld [vmem:[%s2277_s11 + $0x6c] sm:$0xf]  ;;  %v1694_v56 = vld [vmem:[%s2277_s11 + $0x78] sm:$0xf0] }
  0x1b   : > { %1134 = vmatpush.bf16.msra.mxu2 %v2089_v16  ;;  %v1661_v54 = vor.u32 %v2012_v50, %v1660_v49  ;;  %v1668_v57 = vld [vmem:[%s2277_s11 + $0x40] sm:$0xf]  ;;  %v2015_v58 = vld [vmem:[%s2277_s11 + $0x4c] sm:$0xf0]  ;;  %v2013_v59 = vld [vmem:[%s2277_s11 + $0x44] sm:$0xf]  ;;  %v1697_v63 = vor.u32 %v2018_v55, %v1694_v56 }
  0x1c   : > { %v1670_v60 = vld [vmem:[%s2277_s11 + $0x50] sm:$0xf0]  ;;  %v1676_v61 = vld [vmem:[%s2277_s11 + $0x48] sm:$0xf]  ;;  %v2016_v62 = vld [vmem:[%s2277_s11 + $0x54] sm:$0xf0]  ;;  %v1669_v0 = vor.u32 %v2015_v58, %v1668_v57 }
  0x1d   : > { %957 = vmatpush.bf16.msra.mxu0 %v2072_v19  ;;  %v1673_v1 = vor.u32 %v2013_v59, %v1670_v60  ;;  %v1677_v2 = vor.u32 %v2016_v62, %v1676_v61  ;;  %v2022_v3 = vld [vmem:[%s2277_s11 + $0x8c] sm:$0xf]  ;;  %v1710_v4 = vld [vmem:[%s2277_s11 + $0x98] sm:$0xf0]  ;;  %v1684_v5 = vld [vmem:[%s2277_s11 + $0x60] sm:$0xf] }
  0x1e   : > { %1046 = vmatpush.bf16.msra.mxu1 %v2080_v20  ;;  %v2019_v6 = vld [vmem:[%s2277_s11 + $0x6c] sm:$0xf0]  ;;  %v2017_v7 = vld [vmem:[%s2277_s11 + $0x64] sm:$0xf]  ;;  %v1686_v8 = vld [vmem:[%s2277_s11 + $0x70] sm:$0xf0]  ;;  %v1713_v11 = vor.u32 %v2022_v3, %v1710_v4 }
  0x1f   : > { %1135 = vmatpush.bf16.msra.mxu2 %v2088_v21  ;;  %v1692_v9 = vld [vmem:[%s2277_s11 + $0x68] sm:$0xf]  ;;  %v2020_v10 = vld [vmem:[%s2277_s11 + $0x74] sm:$0xf0]  ;;  %v1685_v12 = vor.u32 %v2019_v6, %v1684_v5  ;;  %v1689_v13 = vor.u32 %v2017_v7, %v1686_v8  ;;  %v2026_v15 = vld [vmem:[%s2277_s11 + $0xac] sm:$0xf] }
  0x20   : > { %v1693_v14 = vor.u32 %v2020_v10, %v1692_v9  ;;  %v1726_v16 = vld [vmem:[%s2277_s11 + $0xb8] sm:$0xf0]  ;;  %v1700_v17 = vld [vmem:[%s2277_s11 + $0x80] sm:$0xf]  ;;  %v2023_v18 = vld [vmem:[%s2277_s11 + $0x8c] sm:$0xf0] }
  0x21   : > { %958 = vmatpush.bf16.msra.mxu0 %v2071_v22  ;;  %v2021_v19 = vld [vmem:[%s2277_s11 + $0x84] sm:$0xf]  ;;  %v1702_v20 = vld [vmem:[%s2277_s11 + $0x90] sm:$0xf0]  ;;  %v1708_v21 = vld [vmem:[%s2277_s11 + $0x88] sm:$0xf] }
  0x22   : > { %1047 = vmatpush.bf16.msra.mxu1 %v2079_v23  ;;  %v2024_v22 = vld [vmem:[%s2277_s11 + $0x94] sm:$0xf0]  ;;  %v1729_v23 = vor.u32 %v2026_v15, %v1726_v16  ;;  %v1742_v28 = vld [vmem:[%s2277_s11 + $0xd8] sm:$0xf0]  ;;  %v1716_v29 = vld [vmem:[%s2277_s11 + $0xa0] sm:$0xf] }
  0x23   : > { %1136 = vmatpush.bf16.msra.mxu2 %v2087_v24  ;;  %v1701_v24 = vor.u32 %v2023_v18, %v1700_v17  ;;  %v1718_v32 = vld [vmem:[%s2277_s11 + $0xb0] sm:$0xf0]  ;;  %v1724_v33 = vld [vmem:[%s2277_s11 + $0xa8] sm:$0xf]  ;;  %v2028_v34 = vld [vmem:[%s2277_s11 + $0xb4] sm:$0xf0] }
  0x24   : > { %v1725_v38 = vor.u32 %v2028_v34, %v1724_v33  ;;  %v2029_v43 = vld [vmem:[%s2277_s11 + $0xc4] sm:$0xf]  ;;  %v1734_v44 = vld [vmem:[%s2277_s11 + $0xd0] sm:$0xf0]  ;;  %v1740_v45 = vld [vmem:[%s2277_s11 + $0xc8] sm:$0xf] }
  0x25   : > { %959 = vmatpush.bf16.msra.mxu0 %v2070_v25  ;;  %v1705_v25 = vor.u32 %v2021_v19, %v1702_v20  ;;  %v2032_v46 = vld [vmem:[%s2277_s11 + $0xd4] sm:$0xf0]  ;;  %v1737_v49 = vor.u32 %v2029_v43, %v1734_v44  ;;  %v2033_v55 = vld [vmem:[%s2277_s11 + $0xe4] sm:$0xf]  ;;  %v1750_v56 = vld [vmem:[%s2277_s11 + $0xf0] sm:$0xf0] }
  0x26   : > { %1048 = vmatpush.bf16.msra.mxu1 %v2078_v26  ;;  %v1709_v26 = vor.u32 %v2024_v22, %v1708_v21  ;;  %v1741_v50 = vor.u32 %v2032_v46, %v1740_v45  ;;  %v1756_v57 = vld [vmem:[%s2277_s11 + $0xe8] sm:$0xf]  ;;  %v2036_v58 = vld [vmem:[%s2277_s11 + $0xf4] sm:$0xf0]  ;;  %v1753_v61 = vor.u32 %v2033_v55, %v1750_v56  ;;  %v2039_v3 = vld [vmem:[%s2277_s11 + $0x10c] sm:$0xf0] }
  0x27   : > { %1137 = vmatpush.bf16.msra.mxu2 %v2086_v27  ;;  %1987 = vmatmul.msk.bf16.gmra.mxu3 %vm900_vm1, %v1665_v39  ;;  %v2030_v27 = vld [vmem:[%s2277_s11 + $0xcc] sm:$0xf]  ;;  %v1757_v62 = vor.u32 %v2036_v58, %v1756_v57  ;;  %v2037_v4 = vld [vmem:[%s2277_s11 + $0x104] sm:$0xf]  ;;  %v1766_v5 = vld [vmem:[%s2277_s11 + $0x110] sm:$0xf0] }
  0x28   : > { %v1745_v35 = vor.u32 %v2030_v27, %v1742_v28  ;;  %v2034_v39 = vld [vmem:[%s2277_s11 + $0xec] sm:$0xf]  ;;  %v1772_v7 = vld [vmem:[%s2277_s11 + $0x108] sm:$0xf]  ;;  %v2040_v8 = vld [vmem:[%s2277_s11 + $0x114] sm:$0xf0] }
  0x29   : > { %960 = vmatpush.bf16.msra.mxu0 %v2069_v30  ;;  %v2027_v30 = vld [vmem:[%s2277_s11 + $0xac] sm:$0xf0]  ;;  %v2414_v19 = vld [vmem:[%s2557_s2] ss:$0 sm:$0xff]  ;;  %v2041_v28 = vld [vmem:[%s2277_s11 + $0x124] sm:$0xf] }
  0x2a   : > { %1049 = vmatpush.bf16.msra.mxu1 %v2077_v31  ;;  %v2025_v31 = vld [vmem:[%s2277_s11 + $0xa4] sm:$0xf]  ;;  %v2043_v27 = vld [vmem:[%s2277_s11 + $0x12c] sm:$0xf0] }
  0x2b   : > { %1138 = vmatpush.bf16.msra.mxu2 %v2085_v36  ;;  %v1717_v36 = vor.u32 %v2027_v30, %v1716_v29  ;;  %v1721_v37 = vor.u32 %v2025_v31, %v1718_v32  ;;  %v1782_v29 = vld [vmem:[%s2277_s11 + $0x130] sm:$0xf0]  ;;  %v1788_v31 = vld [vmem:[%s2277_s11 + $0x128] sm:$0xf]  ;;  %v2044_v32 = vld [vmem:[%s2277_s11 + $0x134] sm:$0xf0] }
  0x2c   : > { %961 = vmatmul.bf16.vlgmr.msra.gmra.mxu0 %v1637_v40  ;;  %v1758_v40 = vld [vmem:[%s2277_s11 + $0xf8] sm:$0xf0]  ;;  %v2047_v57 = vld [vmem:[%s2277_s11 + $0x14c] sm:$0xf0]  ;;  %v2045_v58 = vld [vmem:[%s2277_s11 + $0x144] sm:$0xf] }
  0x2d   : > { %1050 = vmatmul.bf16.vlgmr.msra.gmra.mxu1 %v1641_v41  ;;  %v1732_v41 = vld [vmem:[%s2277_s11 + $0xc0] sm:$0xf]  ;;  %v1761_v47 = vor.u32 %v2034_v39, %v1758_v40 }
  0x2e   : > { %1139 = vmatmul.bf16.vlgmr.msra.gmra.mxu2 %v1645_v42  ;;  %v2031_v42 = vld [vmem:[%s2277_s11 + $0xcc] sm:$0xf0] }
  0x2f   : > { %v1733_v48 = vor.u32 %v2031_v42, %v1732_v41  ;;  %v1789_v41 = vor.u32 %v2044_v32, %v1788_v31 }
  0x37   : > { %1988 = vmatmul.msk.bf16.gmra.mxu3 %vm900_vm1, %v1681_v51  ;;  %v2038_v51 = vld [vmem:[%s2277_s11 + $0x10c] sm:$0xf] }
  0x3c   : > { %966 = vmatmul.bf16.gmra.mxu0 %v1653_v52  ;;  %v1774_v52 = vld [vmem:[%s2277_s11 + $0x118] sm:$0xf0] }
  0x3d   : > { %1055 = vmatmul.bf16.gmra.mxu1 %v1657_v53  ;;  %v1748_v53 = vld [vmem:[%s2277_s11 + $0xe0] sm:$0xf]  ;;  %v1777_v59 = vor.u32 %v2038_v51, %v1774_v52  ;;  %v2050_v52 = vld [vmem:[%s2277_s11 + $0x16c] sm:$0xf] }
  0x3e   : > { %1144 = vmatmul.bf16.gmra.mxu2 %v1661_v54  ;;  %v2035_v54 = vld [vmem:[%s2277_s11 + $0xec] sm:$0xf0] }
  0x3f   : > { %v1749_v60 = vor.u32 %v2035_v54, %v1748_v53  ;;  %v1822_v53 = vld [vmem:[%s2277_s11 + $0x178] sm:$0xf0]  ;;  %v1796_v54 = vld [vmem:[%s2277_s11 + $0x140] sm:$0xf] }
  0x47   : > { %1989 = vmatmul.msk.bf16.gmra.mxu3 %vm900_vm1, %v1697_v63 }
  0x4c   : > { %971 = vmatmul.bf16.gmra.mxu0 %v1669_v0  ;;  %v2042_v0 = vld [vmem:[%s2277_s11 + $0x12c] sm:$0xf] }
  0x4d   : > { %1060 = vmatmul.bf16.gmra.mxu1 %v1673_v1  ;;  %v1790_v1 = vld [vmem:[%s2277_s11 + $0x138] sm:$0xf0] }
  0x4e   : > { %1149 = vmatmul.bf16.gmra.mxu2 %v1677_v2  ;;  %v1764_v2 = vld [vmem:[%s2277_s11 + $0x100] sm:$0xf]  ;;  %v1793_v9 = vor.u32 %v2042_v0, %v1790_v1 }
  0x4f   : > { %v1765_v10 = vor.u32 %v2039_v3, %v1764_v2  ;;  %v1797_v2 = vor.u32 %v2047_v57, %v1796_v54  ;;  %v2055_v54 = vld [vmem:[%s2277_s11 + $0x18c] sm:$0xf0] }
  0x57   : > { %1990 = vmatmul.msk.bf16.gmra.mxu3 %vm900_vm1, %v1713_v11  ;;  %v1769_v11 = vor.u32 %v2037_v4, %v1766_v5 }
  0x5c   : > { %976 = vmatmul.bf16.gmra.mxu0 %v1685_v12 }
  0x5d   : > { %1065 = vmatmul.bf16.gmra.mxu1 %v1689_v13 }
  0x5e   : > { %1154 = vmatmul.bf16.gmra.mxu2 %v1693_v14  ;;  %v1773_v14 = vor.u32 %v2040_v8, %v1772_v7 }
  0x67   : > { %1991 = vmatmul.msk.bf16.gmra.mxu3 %vm900_vm1, %v1729_v23  ;;  %v2046_v23 = vld [vmem:[%s2277_s11 + $0x14c] sm:$0xf] }
  0x6c   : > { %981 = vmatmul.bf16.gmra.mxu0 %v1701_v24  ;;  %v1806_v24 = vld [vmem:[%s2277_s11 + $0x158] sm:$0xf0] }
  0x6d   : > { %1070 = vmatmul.bf16.gmra.mxu1 %v1705_v25  ;;  %v1780_v25 = vld [vmem:[%s2277_s11 + $0x120] sm:$0xf]  ;;  %v1809_v33 = vor.u32 %v2046_v23, %v1806_v24  ;;  %v2051_v24 = vld [vmem:[%s2277_s11 + $0x16c] sm:$0xf0] }
  0x6e   : > { %1159 = vmatmul.bf16.gmra.mxu2 %v1709_v26 }
  0x77   : > { %1992 = vmatmul.msk.bf16.gmra.mxu3 %vm900_vm1, %v1745_v35 }
  0x7c   : > { %986 = vmatmul.bf16.gmra.mxu0 %v1717_v36  ;;  %v1781_v36 = vor.u32 %v2043_v27, %v1780_v25  ;;  %v2049_v25 = vld [vmem:[%s2277_s11 + $0x164] sm:$0xf] }
  0x7d   : > { %1075 = vmatmul.bf16.gmra.mxu1 %v1721_v37  ;;  %v1785_v37 = vor.u32 %v2041_v28, %v1782_v29  ;;  %v1820_v28 = vld [vmem:[%s2277_s11 + $0x168] sm:$0xf]  ;;  %v2052_v29 = vld [vmem:[%s2277_s11 + $0x174] sm:$0xf0] }
  0x7e   : > { %1164 = vmatmul.bf16.gmra.mxu2 %v1725_v38 }
  0x87   : > { %1993 = vmatmul.msk.bf16.gmra.mxu3 %vm900_vm1, %v1761_v47 }
  0x8c   : > { %991 = vmatmul.bf16.gmra.mxu0 %v1733_v48 }
  0x8d   : > { %1080 = vmatmul.bf16.gmra.mxu1 %v1737_v49 }
  0x8e   : > { %1169 = vmatmul.bf16.gmra.mxu2 %v1741_v50 }
  0x97   : > { %1994 = vmatmul.msk.bf16.gmra.mxu3 %vm900_vm1, %v1777_v59  ;;  %v1798_v59 = vld [vmem:[%s2277_s11 + $0x150] sm:$0xf0] }
  0x98   : > { %v1801_v3 = vor.u32 %v2045_v58, %v1798_v59  ;;  %v1836_v58 = vld [vmem:[%s2277_s11 + $0x188] sm:$0xf]  ;;  %v2056_v59 = vld [vmem:[%s2277_s11 + $0x194] sm:$0xf0] }
  0x9a   : > { %v1229_v63 = vpop.f32.mrf.mxu3 }
  0x9c   : > { %996 = vmatmul.bf16.gmra.mxu0 %v1749_v60 }
  0x9d   : > { %1085 = vmatmul.bf16.gmra.mxu1 %v1753_v61  ;;  %v1804_v61 = vld [vmem:[%s2277_s11 + $0x148] sm:$0xf] }
  0x9e   : > { %1174 = vmatmul.bf16.gmra.mxu2 %v1757_v62  ;;  %v2048_v62 = vld [vmem:[%s2277_s11 + $0x154] sm:$0xf0] }
  0x9f   : > { %v1805_v7 = vor.u32 %v2048_v62, %v1804_v61 }
  0xa2   : > { %v1231_v6 = vpop.f32.mrf.mxu3 }
  0xa7   : > { %1995 = vmatmul.msk.bf16.gmra.mxu3 %vm900_vm1, %v1793_v9 }
  0xa9   : > { %v962_v12 = vpop.f32.mrf.mxu0 }
  0xaa   : > { %v1051_v13 = vpop.f32.mrf.mxu1  ;;  %v1234_v16 = vpop.f32.mrf.mxu3 }
  0xab   : > { %v1052_v15 = vadd.f32 %v1051_v13, %v962_v12 }
  0xac   : > { %1001 = vmatmul.bf16.gmra.mxu0 %v1765_v10 }
  0xad   : > { %1090 = vmatmul.bf16.gmra.mxu1 %v1769_v11 }
  0xae   : > { %1179 = vmatmul.bf16.gmra.mxu2 %v1773_v14 }
  0xb1   : > { %v1140_v17 = vpop.f32.mrf.mxu2  ;;  %v964_v20 = vpop.f32.mrf.mxu0 }
  0xb2   : > { %v1141_v18 = vadd.f32 %v1140_v17, %v1052_v15  ;;  %v1053_v21 = vpop.f32.mrf.mxu1  ;;  %v1236_v30 = vpop.f32.mrf.mxu3 }
  0xb3   : > { %v1054_v34 = vadd.f32 %v1053_v21, %v964_v20  ;;  %v1838_v20 = vld [vmem:[%s2277_s11 + $0x198] sm:$0xf0]  ;;  %v1812_v21 = vld [vmem:[%s2277_s11 + $0x160] sm:$0xf] }
  0xb4   : > { %v1230_v22 = vadd.f32 %v1229_v63, %v1141_v18  ;;  %v1825_v63 = vor.u32 %v2050_v52, %v1822_v53  ;;  %v2054_v18 = vld [vmem:[%s2277_s11 + $0x18c] sm:$0xf] }
  0xb6   : > { %v1412_v26 = vadd.f32 %v2414_v19, %v1230_v22 }
  0xb7   : > { %1996 = vmatmul.msk.bf16.gmra.mxu3 %vm900_vm1, %v1809_v33  ;;  %v1813_v33 = vor.u32 %v2051_v24, %v1812_v21  ;;  %v2059_v21 = vld [vmem:[%s2277_s11 + $0x1ac] sm:$0xf0] }
  0xb8   : > { %2118 = vtanh.f32 %v1412_v26  ;;  %v1814_v26 = vld [vmem:[%s2277_s11 + $0x170] sm:$0xf0] }
  0xb9   : > { %v1142_v35 = vpop.f32.mrf.mxu2  ;;  %v967_v39 = vpop.f32.mrf.mxu0 }
  0xba   : > { %v1143_v38 = vadd.f32 %v1142_v35, %v1054_v34  ;;  %v1056_v40 = vpop.f32.mrf.mxu1  ;;  %v1239_v46 = vpop.f32.mrf.mxu3  ;;  %v1817_v34 = vor.u32 %v2049_v25, %v1814_v26  ;;  %v1852_v25 = vld [vmem:[%s2277_s11 + $0x1a8] sm:$0xf]  ;;  %v2060_v26 = vld [vmem:[%s2277_s11 + $0x1b4] sm:$0xf0] }
  0xbb   : > { %v1057_v45 = vadd.f32 %v1056_v40, %v967_v39 }
  0xbc   : > { %v1232_v42 = vadd.f32 %v1231_v6, %v1143_v38  ;;  %1006 = vmatmul.bf16.gmra.mxu0 %v1781_v36  ;;  %v1821_v38 = vor.u32 %v2052_v29, %v1820_v28 }
  0xbd   : > { %1095 = vmatmul.bf16.gmra.mxu1 %v1785_v37 }
  0xbe   : > { %v2119_v43 = vpop.eup %2118  ;;  %v1413_v44 = vadd.f32 %v2414_v19, %v1232_v42  ;;  %1184 = vmatmul.bf16.gmra.mxu2 %v1789_v41 }
  0xbf   : > { %1476 = vst [vmem:[%s2430_s4] sm:$0xff] %v2119_v43 }
  0xc0   : > { %2120 = vtanh.f32 %v1413_v44 }
  0xc1   : > { %v1145_v47 = vpop.f32.mrf.mxu2  ;;  %v969_v49 = vpop.f32.mrf.mxu0 }
  0xc2   : > { %v1146_v48 = vadd.f32 %v1145_v47, %v1057_v45  ;;  %v1058_v50 = vpop.f32.mrf.mxu1  ;;  %v1241_v60 = vpop.f32.mrf.mxu3 }
  0xc3   : > { %v1059_v0 = vadd.f32 %v1058_v50, %v969_v49  ;;  %v2058_v49 = vld [vmem:[%s2277_s11 + $0x1ac] sm:$0xf]  ;;  %v1854_v50 = vld [vmem:[%s2277_s11 + $0x1b8] sm:$0xf0] }
  0xc4   : > { %v1235_v51 = vadd.f32 %v1234_v16, %v1146_v48 }
  0xc6   : > { %v2121_v55 = vpop.eup %2120  ;;  %v1414_v56 = vadd.f32 %v2414_v19, %v1235_v51  ;;  %v1828_v51 = vld [vmem:[%s2277_s11 + $0x180] sm:$0xf] }
  0xc7   : > { %1477 = vst [vmem:[%s2430_s4 + $0x8] sm:$0xff] %v2121_v55  ;;  %1997 = vmatmul.msk.bf16.gmra.mxu3 %vm900_vm1, %v1825_v63  ;;  %v2053_v55 = vld [vmem:[%s2277_s11 + $0x184] sm:$0xf]  ;;  %v1829_v63 = vor.u32 %v2055_v54, %v1828_v51  ;;  %v2063_v51 = vld [vmem:[%s2277_s11 + $0x1cc] sm:$0xf0] }
  0xc8   : > { %2122 = vtanh.f32 %v1414_v56  ;;  %v1830_v56 = vld [vmem:[%s2277_s11 + $0x190] sm:$0xf0] }
  0xc9   : > { %v1147_v1 = vpop.f32.mrf.mxu2  ;;  %v972_v5 = vpop.f32.mrf.mxu0 }
  0xca   : > { %v1148_v4 = vadd.f32 %v1147_v1, %v1059_v0  ;;  %v1061_v6 = vpop.f32.mrf.mxu1  ;;  %v1244_v12 = vpop.f32.mrf.mxu3  ;;  %v1833_v0 = vor.u32 %v2053_v55, %v1830_v56  ;;  %v1868_v55 = vld [vmem:[%s2277_s11 + $0x1c8] sm:$0xf]  ;;  %v2064_v56 = vld [vmem:[%s2277_s11 + $0x1d4] sm:$0xf0] }
  0xcb   : > { %v1062_v11 = vadd.f32 %v1061_v6, %v972_v5 }
  0xcc   : > { %v1237_v8 = vadd.f32 %v1236_v30, %v1148_v4  ;;  %1011 = vmatmul.bf16.gmra.mxu0 %v1797_v2  ;;  %v1841_v30 = vor.u32 %v2054_v18, %v1838_v20  ;;  %v1837_v4 = vor.u32 %v2056_v59, %v1836_v58 }
  0xcd   : > { %1100 = vmatmul.bf16.gmra.mxu1 %v1801_v3 }
  0xce   : > { %v2123_v9 = vpop.eup %2122  ;;  %v1415_v10 = vadd.f32 %v2414_v19, %v1237_v8  ;;  %1189 = vmatmul.bf16.gmra.mxu2 %v1805_v7 }
  0xcf   : > { %1478 = vst [vmem:[%s2430_s4 + $0x10] sm:$0xff] %v2123_v9 }
  0xd0   : > { %2124 = vtanh.f32 %v1415_v10 }
  0xd1   : > { %v1150_v13 = vpop.f32.mrf.mxu2  ;;  %v974_v15 = vpop.f32.mrf.mxu0 }
  0xd2   : > { %v1151_v14 = vadd.f32 %v1150_v13, %v1062_v11  ;;  %v1063_v16 = vpop.f32.mrf.mxu1  ;;  %v1246_v27 = vpop.f32.mrf.mxu3 }
  0xd3   : > { %v1064_v31 = vadd.f32 %v1063_v16, %v974_v15  ;;  %v2062_v15 = vld [vmem:[%s2277_s11 + $0x1cc] sm:$0xf]  ;;  %v1870_v16 = vld [vmem:[%s2277_s11 + $0x1d8] sm:$0xf0] }
  0xd4   : > { %v1240_v17 = vadd.f32 %v1239_v46, %v1151_v14 }
  0xd6   : > { %v2125_v22 = vpop.eup %2124  ;;  %v1416_v23 = vadd.f32 %v2414_v19, %v1240_v17  ;;  %v1844_v17 = vld [vmem:[%s2277_s11 + $0x1a0] sm:$0xf] }
  0xd7   : > { %1479 = vst [vmem:[%s2430_s4 + $0x18] sm:$0xff] %v2125_v22  ;;  %1998 = vmatmul.msk.bf16.gmra.mxu3 %vm900_vm1, %v1841_v30  ;;  %v2057_v22 = vld [vmem:[%s2277_s11 + $0x1a4] sm:$0xf]  ;;  %v1845_v30 = vor.u32 %v2059_v21, %v1844_v17  ;;  %v1878_v17 = vld [vmem:[%s2277_s11 + $0x1f0] sm:$0xf0] }
  0xd8   : > { %2126 = vtanh.f32 %v1416_v23  ;;  %v1846_v23 = vld [vmem:[%s2277_s11 + $0x1b0] sm:$0xf0]  ;;  %v2068_v21 = vld [vmem:[%s2277_s11 + $0x1f4] sm:$0xf0] }
  0xd9   : > { %v1152_v32 = vpop.f32.mrf.mxu2  ;;  %v977_v36 = vpop.f32.mrf.mxu0 }
  0xda   : > { %v1153_v35 = vadd.f32 %v1152_v32, %v1064_v31  ;;  %v1066_v37 = vpop.f32.mrf.mxu1  ;;  %v1249_v43 = vpop.f32.mrf.mxu3  ;;  %v1849_v31 = vor.u32 %v2057_v22, %v1846_v23 }
  0xdb   : > { %v1067_v42 = vadd.f32 %v1066_v37, %v977_v36 }
  0xdc   : > { %v1242_v39 = vadd.f32 %v1241_v60, %v1153_v35  ;;  %1016 = vmatmul.bf16.gmra.mxu0 %v1813_v33  ;;  %v1857_v60 = vor.u32 %v2058_v49, %v1854_v50  ;;  %v1853_v35 = vor.u32 %v2060_v26, %v1852_v25 }
  0xdd   : > { %1105 = vmatmul.bf16.gmra.mxu1 %v1817_v34 }
  0xde   : > { %v2127_v40 = vpop.eup %2126  ;;  %v1417_v41 = vadd.f32 %v2414_v19, %v1242_v39  ;;  %1194 = vmatmul.bf16.gmra.mxu2 %v1821_v38 }
  0xdf   : > { %1480 = vst [vmem:[%s2430_s4 + $0x20] sm:$0xff] %v2127_v40 }
  0xe0   : > { %2128 = vtanh.f32 %v1417_v41 }
  0xe1   : > { %v1155_v44 = vpop.f32.mrf.mxu2  ;;  %v979_v46 = vpop.f32.mrf.mxu0 }
  0xe2   : > { %v1156_v45 = vadd.f32 %v1155_v44, %v1067_v42  ;;  %v1068_v47 = vpop.f32.mrf.mxu1  ;;  %v1251_v57 = vpop.f32.mrf.mxu3 }
  0xe3   : > { %v1069_v61 = vadd.f32 %v1068_v47, %v979_v46  ;;  %v2066_v46 = vld [vmem:[%s2277_s11 + $0x1ec] sm:$0xf]  ;;  %v1886_v47 = vld [vmem:[%s2277_s11 + $0x1f8] sm:$0xf0] }
  0xe4   : > { %v1245_v48 = vadd.f32 %v1244_v12, %v1156_v45 }
  0xe6   : > { %v2129_v52 = vpop.eup %2128  ;;  %v1418_v53 = vadd.f32 %v2414_v19, %v1245_v48  ;;  %v1860_v48 = vld [vmem:[%s2277_s11 + $0x1c0] sm:$0xf] }
  0xe7   : > { %1481 = vst [vmem:[%s2430_s4 + $0x28] sm:$0xff] %v2129_v52  ;;  %1999 = vmatmul.msk.bf16.gmra.mxu3 %vm900_vm1, %v1857_v60  ;;  %v2061_v52 = vld [vmem:[%s2277_s11 + $0x1c4] sm:$0xf]  ;;  %v1861_v60 = vor.u32 %v2063_v51, %v1860_v48 }
  0xe8   : > { %2130 = vtanh.f32 %v1418_v53  ;;  %v1862_v53 = vld [vmem:[%s2277_s11 + $0x1d0] sm:$0xf0] }
  0xe9   : > { %v1157_v62 = vpop.f32.mrf.mxu2  ;;  %v982_v2 = vpop.f32.mrf.mxu0 }
  0xea   : > { %v1158_v1 = vadd.f32 %v1157_v62, %v1069_v61  ;;  %v1071_v3 = vpop.f32.mrf.mxu1  ;;  %v1254_v9 = vpop.f32.mrf.mxu3  ;;  %v1865_v61 = vor.u32 %v2061_v52, %v1862_v53 }
  0xeb   : > { %v1072_v8 = vadd.f32 %v1071_v3, %v982_v2 }
  0xec   : > { %v1247_v5 = vadd.f32 %v1246_v27, %v1158_v1  ;;  %1021 = vmatmul.bf16.gmra.mxu0 %v1829_v63  ;;  %v1873_v27 = vor.u32 %v2062_v15, %v1870_v16  ;;  %v1869_v1 = vor.u32 %v2064_v56, %v1868_v55  ;;  %v2067_v15 = vld [vmem:[%s2277_s11 + $0x1ec] sm:$0xf0]  ;;  %v2065_v16 = vld [vmem:[%s2277_s11 + $0x1e4] sm:$0xf] }
  0xed   : > { %1110 = vmatmul.bf16.gmra.mxu1 %v1833_v0  ;;  %v1881_v25 = vor.u32 %v2065_v16, %v1878_v17 }
  0xee   : > { %v2131_v6 = vpop.eup %2130  ;;  %v1419_v7 = vadd.f32 %v2414_v19, %v1247_v5  ;;  %1199 = vmatmul.bf16.gmra.mxu2 %v1837_v4 }
  0xef   : > { %1482 = vst [vmem:[%s2430_s4 + $0x30] sm:$0xff] %v2131_v6 }
  0xf0   : > { %2132 = vtanh.f32 %v1419_v7 }
  0xf1   : > { %v1160_v10 = vpop.f32.mrf.mxu2  ;;  %v984_v12 = vpop.f32.mrf.mxu0 }
  0xf2   : > { %v1161_v11 = vadd.f32 %v1160_v10, %v1072_v8  ;;  %v1073_v13 = vpop.f32.mrf.mxu1  ;;  %v1256_v24 = vpop.f32.mrf.mxu3 }
  0xf3   : > { %v1074_v28 = vadd.f32 %v1073_v13, %v984_v12  ;;  %v1876_v12 = vld [vmem:[%s2277_s11 + $0x1e0] sm:$0xf] }
  0xf4   : > { %v1250_v14 = vadd.f32 %v1249_v43, %v1161_v11 }
  0xf6   : > { %v2133_v18 = vpop.eup %2132  ;;  %v1420_v20 = vadd.f32 %v2414_v19, %v1250_v14 }
  0xf7   : > { %1483 = vst [vmem:[%s2430_s4 + $0x38] sm:$0xff] %v2133_v18  ;;  %2000 = vmatmul.msk.bf16.gmra.mxu3 %vm900_vm1, %v1873_v27 }
  0xf8   : > { %2134 = vtanh.f32 %v1420_v20  ;;  %v1884_v20 = vld [vmem:[%s2277_s11 + $0x1e8] sm:$0xf] }
  0xf9   : > { %v1162_v29 = vpop.f32.mrf.mxu2  ;;  %v987_v33 = vpop.f32.mrf.mxu0 }
  0xfa   : > { %v1163_v32 = vadd.f32 %v1162_v29, %v1074_v28  ;;  %v1076_v34 = vpop.f32.mrf.mxu1  ;;  %v1259_v40 = vpop.f32.mrf.mxu3  ;;  %v1885_v29 = vor.u32 %v2068_v21, %v1884_v20 }
  0xfb   : > { %v1077_v39 = vadd.f32 %v1076_v34, %v987_v33 }
  0xfc   : > { %v1252_v36 = vadd.f32 %v1251_v57, %v1163_v32  ;;  %1026 = vmatmul.bf16.gmra.mxu0 %v1845_v30  ;;  %v1889_v57 = vor.u32 %v2066_v46, %v1886_v47 }
  0xfd   : > { %1115 = vmatmul.bf16.gmra.mxu1 %v1849_v31 }
  0xfe   : > { %v2135_v37 = vpop.eup %2134  ;;  %v1421_v38 = vadd.f32 %v2414_v19, %v1252_v36  ;;  %1204 = vmatmul.bf16.gmra.mxu2 %v1853_v35 }
  0xff   : > { %1484 = vst [vmem:[%s2430_s4 + $0x40] sm:$0xff] %v2135_v37 }
 0x100   : > { %2136 = vtanh.f32 %v1421_v38 }
 0x101   : > { %v1165_v41 = vpop.f32.mrf.mxu2  ;;  %v989_v43 = vpop.f32.mrf.mxu0 }
 0x102   : > { %v1166_v42 = vadd.f32 %v1165_v41, %v1077_v39  ;;  %v1078_v44 = vpop.f32.mrf.mxu1  ;;  %v1261_v54 = vpop.f32.mrf.mxu3 }
 0x103   : > { %v1079_v58 = vadd.f32 %v1078_v44, %v989_v43 }
 0x104   : > { %v1255_v45 = vadd.f32 %v1254_v9, %v1166_v42 }
 0x106   : > { %v2137_v49 = vpop.eup %2136  ;;  %v1422_v50 = vadd.f32 %v2414_v19, %v1255_v45 }
 0x107   : > { %1485 = vst [vmem:[%s2430_s4 + $0x48] sm:$0xff] %v2137_v49  ;;  %2001 = vmatmul.msk.bf16.gmra.mxu3 %vm900_vm1, %v1889_v57 }
 0x108   : > { %2138 = vtanh.f32 %v1422_v50 }
 0x109   : > { %v1167_v59 = vpop.f32.mrf.mxu2  ;;  %v992_v63 = vpop.f32.mrf.mxu0 }
 0x10a   : > { %v1168_v62 = vadd.f32 %v1167_v59, %v1079_v58  ;;  %v1081_v0 = vpop.f32.mrf.mxu1  ;;  %v1264_v6 = vpop.f32.mrf.mxu3 }
 0x10b   : > { %v1082_v5 = vadd.f32 %v1081_v0, %v992_v63 }
 0x10c   : > { %v1257_v2 = vadd.f32 %v1256_v24, %v1168_v62  ;;  %1031 = vmatmul.bf16.gmra.mxu0 %v1861_v60  ;;  %v1877_v24 = vor.u32 %v2067_v15, %v1876_v12 }
 0x10d   : > { %1120 = vmatmul.bf16.gmra.mxu1 %v1865_v61 }
 0x10e   : > { %v2139_v3 = vpop.eup %2138  ;;  %v1423_v4 = vadd.f32 %v2414_v19, %v1257_v2  ;;  %1209 = vmatmul.bf16.gmra.mxu2 %v1869_v1 }
 0x10f   : > { %1486 = vst [vmem:[%s2430_s4 + $0x50] sm:$0xff] %v2139_v3 }
 0x110   : > { %2140 = vtanh.f32 %v1423_v4 }
 0x111   : > { %v1170_v7 = vpop.f32.mrf.mxu2  ;;  %v994_v9 = vpop.f32.mrf.mxu0 }
 0x112   : > { %v1171_v8 = vadd.f32 %v1170_v7, %v1082_v5  ;;  %v1083_v10 = vpop.f32.mrf.mxu1  ;;  %v1266_v18 = vpop.f32.mrf.mxu3 }
 0x113   : > { %v1084_v22 = vadd.f32 %v1083_v10, %v994_v9 }
 0x114   : > { %v1260_v11 = vadd.f32 %v1259_v40, %v1171_v8 }
 0x116   : > { %v2141_v13 = vpop.eup %2140  ;;  %v1424_v14 = vadd.f32 %v2414_v19, %v1260_v11 }
 0x117   : > { %1487 = vst [vmem:[%s2430_s4 + $0x58] sm:$0xff] %v2141_v13 }
 0x118   : > { %2142 = vtanh.f32 %v1424_v14 }
 0x119   : > { %v1172_v23 = vpop.f32.mrf.mxu2  ;;  %v997_v27 = vpop.f32.mrf.mxu0 }
 0x11a   : > { %v1173_v26 = vadd.f32 %v1172_v23, %v1084_v22  ;;  %v1086_v28 = vpop.f32.mrf.mxu1  ;;  %v1269_v34 = vpop.f32.mrf.mxu3 }
 0x11b   : > { %v1087_v33 = vadd.f32 %v1086_v28, %v997_v27 }
 0x11c   : > { %v1262_v30 = vadd.f32 %v1261_v54, %v1173_v26  ;;  %1036 = vmatmul.bf16.gmra.mxu0 %v1877_v24 }
 0x11d   : > { %1125 = vmatmul.bf16.gmra.mxu1 %v1881_v25 }
 0x11e   : > { %v2143_v31 = vpop.eup %2142  ;;  %v1425_v32 = vadd.f32 %v2414_v19, %v1262_v30  ;;  %1214 = vmatmul.bf16.gmra.mxu2 %v1885_v29 }
 0x11f   : > { %1488 = vst [vmem:[%s2430_s4 + $0x60] sm:$0xff] %v2143_v31 }
 0x120   : > { %2144 = vtanh.f32 %v1425_v32 }
 0x121   : > { %v1175_v35 = vpop.f32.mrf.mxu2  ;;  %v999_v37 = vpop.f32.mrf.mxu0 }
 0x122   : > { %v1176_v36 = vadd.f32 %v1175_v35, %v1087_v33  ;;  %v1088_v38 = vpop.f32.mrf.mxu1  ;;  %v1271_v42 = vpop.f32.mrf.mxu3 }
 0x123   : > { %v1089_v43 = vadd.f32 %v1088_v38, %v999_v37 }
 0x124   : > { %v1265_v39 = vadd.f32 %v1264_v6, %v1176_v36 }
 0x126   : > { %v2145_v40 = vpop.eup %2144  ;;  %v1426_v41 = vadd.f32 %v2414_v19, %v1265_v39 }
 0x127   : > { %1489 = vst [vmem:[%s2430_s4 + $0x68] sm:$0xff] %v2145_v40 }
 0x128   : > { %2146 = vtanh.f32 %v1426_v41 }
 0x129   : > { %v1177_v44 = vpop.f32.mrf.mxu2  ;;  %v1002_v46 = vpop.f32.mrf.mxu0 }
 0x12a   : > { %v1178_v45 = vadd.f32 %v1177_v44, %v1089_v43  ;;  %v1091_v47 = vpop.f32.mrf.mxu1  ;;  %v1274_v52 = vpop.f32.mrf.mxu3 }
 0x12b   : > { %v1092_v51 = vadd.f32 %v1091_v47, %v1002_v46 }
 0x12c   : > { %v1267_v48 = vadd.f32 %v1266_v18, %v1178_v45 }
 0x12e   : > { %v2147_v49 = vpop.eup %2146  ;;  %v1427_v50 = vadd.f32 %v2414_v19, %v1267_v48 }
 0x12f   : > { %1490 = vst [vmem:[%s2430_s4 + $0x70] sm:$0xff] %v2147_v49 }
 0x130   : > { %2148 = vtanh.f32 %v1427_v50 }
 0x131   : > { %v1180_v53 = vpop.f32.mrf.mxu2  ;;  %v1004_v55 = vpop.f32.mrf.mxu0 }
 0x132   : > { %v1181_v54 = vadd.f32 %v1180_v53, %v1092_v51  ;;  %v1093_v56 = vpop.f32.mrf.mxu1  ;;  %v1276_v60 = vpop.f32.mrf.mxu3 }
 0x133   : > { %v1094_v61 = vadd.f32 %v1093_v56, %v1004_v55 }
 0x134   : > { %v1270_v57 = vadd.f32 %v1269_v34, %v1181_v54 }
 0x136   : > { %v2149_v58 = vpop.eup %2148  ;;  %v1428_v59 = vadd.f32 %v2414_v19, %v1270_v57 }
 0x137   : > { %1491 = vst [vmem:[%s2430_s4 + $0x78] sm:$0xff] %v2149_v58 }
 0x138   : > { %2150 = vtanh.f32 %v1428_v59 }
 0x139   : > { %v1182_v62 = vpop.f32.mrf.mxu2  ;;  %v1007_v0 = vpop.f32.mrf.mxu0 }
 0x13a   : > { %v1183_v63 = vadd.f32 %v1182_v62, %v1094_v61  ;;  %v1096_v1 = vpop.f32.mrf.mxu1  ;;  %v1279_v6 = vpop.f32.mrf.mxu3 }
 0x13b   : > { %v1097_v5 = vadd.f32 %v1096_v1, %v1007_v0 }
 0x13c   : > { %v1272_v2 = vadd.f32 %v1271_v42, %v1183_v63 }
 0x13e   : > { %v2151_v3 = vpop.eup %2150  ;;  %v1429_v4 = vadd.f32 %v2414_v19, %v1272_v2 }
 0x13f   : > { %1492 = vst [vmem:[%s2430_s4 + $0x80] sm:$0xff] %v2151_v3 }
 0x140   : > { %2152 = vtanh.f32 %v1429_v4 }
 0x141   : > { %v1185_v7 = vpop.f32.mrf.mxu2  ;;  %v1009_v9 = vpop.f32.mrf.mxu0 }
 0x142   : > { %v1186_v8 = vadd.f32 %v1185_v7, %v1097_v5  ;;  %v1098_v10 = vpop.f32.mrf.mxu1  ;;  %v1281_v14 = vpop.f32.mrf.mxu3 }
 0x143   : > { %v1099_v15 = vadd.f32 %v1098_v10, %v1009_v9 }
 0x144   : > { %v1275_v11 = vadd.f32 %v1274_v52, %v1186_v8 }
 0x146   : > { %v2153_v12 = vpop.eup %2152  ;;  %v1430_v13 = vadd.f32 %v2414_v19, %v1275_v11 }
 0x147   : > { %1493 = vst [vmem:[%s2430_s4 + $0x88] sm:$0xff] %v2153_v12 }
 0x148   : > { %2154 = vtanh.f32 %v1430_v13 }
 0x149   : > { %v1187_v16 = vpop.f32.mrf.mxu2  ;;  %v1012_v18 = vpop.f32.mrf.mxu0 }
 0x14a   : > { %v1188_v17 = vadd.f32 %v1187_v16, %v1099_v15  ;;  %v1101_v20 = vpop.f32.mrf.mxu1  ;;  %v1284_v26 = vpop.f32.mrf.mxu3 }
 0x14b   : > { %v1102_v24 = vadd.f32 %v1101_v20, %v1012_v18 }
 0x14c   : > { %v1277_v21 = vadd.f32 %v1276_v60, %v1188_v17 }
 0x14e   : > { %v2155_v22 = vpop.eup %2154  ;;  %v1431_v23 = vadd.f32 %v2414_v19, %v1277_v21 }
 0x14f   : > { %1494 = vst [vmem:[%s2430_s4 + $0x90] sm:$0xff] %v2155_v22 }
 0x150   : > { %2156 = vtanh.f32 %v1431_v23 }
 0x151   : > { %v1190_v25 = vpop.f32.mrf.mxu2  ;;  %v1014_v28 = vpop.f32.mrf.mxu0 }
 0x152   : > { %v1191_v27 = vadd.f32 %v1190_v25, %v1102_v24  ;;  %v1103_v29 = vpop.f32.mrf.mxu1  ;;  %v1286_v38 = vpop.f32.mrf.mxu3 }
 0x153   : > { %v1104_v33 = vadd.f32 %v1103_v29, %v1014_v28 }
 0x154   : > { %v1280_v30 = vadd.f32 %v1279_v6, %v1191_v27 }
 0x156   : > { %v2157_v31 = vpop.eup %2156  ;;  %v1432_v32 = vadd.f32 %v2414_v19, %v1280_v30 }
 0x157   : > { %1495 = vst [vmem:[%s2430_s4 + $0x98] sm:$0xff] %v2157_v31 }
 0x158   : > { %2158 = vtanh.f32 %v1432_v32 }
 0x159   : > { %v1192_v34 = vpop.f32.mrf.mxu2  ;;  %v1017_v36 = vpop.f32.mrf.mxu0 }
 0x15a   : > { %v1193_v35 = vadd.f32 %v1192_v34, %v1104_v33  ;;  %v1106_v37 = vpop.f32.mrf.mxu1  ;;  %v1289_v48 = vpop.f32.mrf.mxu3 }
 0x15b   : > { %v1107_v42 = vadd.f32 %v1106_v37, %v1017_v36 }
 0x15c   : > { %v1282_v39 = vadd.f32 %v1281_v14, %v1193_v35 }
 0x15e   : > { %v2159_v40 = vpop.eup %2158  ;;  %v1433_v41 = vadd.f32 %v2414_v19, %v1282_v39 }
 0x15f   : > { %1496 = vst [vmem:[%s2430_s4 + $0xa0] sm:$0xff] %v2159_v40 }
 0x160   : > { %2160 = vtanh.f32 %v1433_v41 }
 0x161   : > { %v1195_v43 = vpop.f32.mrf.mxu2  ;;  %v1019_v45 = vpop.f32.mrf.mxu0 }
 0x162   : > { %v1196_v44 = vadd.f32 %v1195_v43, %v1107_v42  ;;  %v1108_v46 = vpop.f32.mrf.mxu1  ;;  %v1291_v60 = vpop.f32.mrf.mxu3 }
 0x163   : > { %v1109_v51 = vadd.f32 %v1108_v46, %v1019_v45 }
 0x164   : > { %v1285_v47 = vadd.f32 %v1284_v26, %v1196_v44 }
 0x166   : > { %v2161_v49 = vpop.eup %2160  ;;  %v1434_v50 = vadd.f32 %v2414_v19, %v1285_v47 }
 0x167   : > { %1497 = vst [vmem:[%s2430_s4 + $0xa8] sm:$0xff] %v2161_v49 }
 0x168   : > { %2162 = vtanh.f32 %v1434_v50 }
 0x169   : > { %v1197_v52 = vpop.f32.mrf.mxu2  ;;  %v1022_v54 = vpop.f32.mrf.mxu0 }
 0x16a   : > { %v1198_v53 = vadd.f32 %v1197_v52, %v1109_v51  ;;  %v1111_v55 = vpop.f32.mrf.mxu1  ;;  %v1294_v6 = vpop.f32.mrf.mxu3 }
 0x16b   : > { %v1112_v59 = vadd.f32 %v1111_v55, %v1022_v54 }
 0x16c   : > { %v1287_v56 = vadd.f32 %v1286_v38, %v1198_v53 }
 0x16e   : > { %v2163_v57 = vpop.eup %2162  ;;  %v1435_v58 = vadd.f32 %v2414_v19, %v1287_v56 }
 0x16f   : > { %1498 = vst [vmem:[%s2430_s4 + $0xb0] sm:$0xff] %v2163_v57 }
 0x170   : > { %2164 = vtanh.f32 %v1435_v58 }
 0x171   : > { %v1200_v61 = vpop.f32.mrf.mxu2  ;;  %v1024_v63 = vpop.f32.mrf.mxu0 }
 0x172   : > { %v1201_v62 = vadd.f32 %v1200_v61, %v1112_v59  ;;  %v1113_v0 = vpop.f32.mrf.mxu1  ;;  %v1296_v18 = vpop.f32.mrf.mxu3 }
 0x173   : > { %v1114_v4 = vadd.f32 %v1113_v0, %v1024_v63 }
 0x174   : > { %v1290_v1 = vadd.f32 %v1289_v48, %v1201_v62 }
 0x176   : > { %v2165_v2 = vpop.eup %2164  ;;  %v1436_v3 = vadd.f32 %v2414_v19, %v1290_v1 }
 0x177   : > { %1499 = vst [vmem:[%s2430_s4 + $0xb8] sm:$0xff] %v2165_v2 }
 0x178   : > { %2166 = vtanh.f32 %v1436_v3 }
 0x179   : > { %v1202_v5 = vpop.f32.mrf.mxu2  ;;  %v1027_v8 = vpop.f32.mrf.mxu0 }
 0x17a   : > { %v1203_v7 = vadd.f32 %v1202_v5, %v1114_v4  ;;  %v1116_v9 = vpop.f32.mrf.mxu1  ;;  %v1299_v29 = vpop.f32.mrf.mxu3 }
 0x17b   : > { %v1117_v13 = vadd.f32 %v1116_v9, %v1027_v8 }
 0x17c   : > { %v1292_v10 = vadd.f32 %v1291_v60, %v1203_v7 }
 0x17e   : > { %v2167_v11 = vpop.eup %2166  ;;  %v1437_v12 = vadd.f32 %v2414_v19, %v1292_v10 }
 0x17f   : > { %1500 = vst [vmem:[%s2430_s4 + $0xc0] sm:$0xff] %v2167_v11 }
 0x180   : > { %2168 = vtanh.f32 %v1437_v12 }
 0x181   : > { %v1205_v14 = vpop.f32.mrf.mxu2  ;;  %v1029_v16 = vpop.f32.mrf.mxu0 }
 0x182   : > { %v1206_v15 = vadd.f32 %v1205_v14, %v1117_v13  ;;  %v1118_v17 = vpop.f32.mrf.mxu1  ;;  %v1301_v40 = vpop.f32.mrf.mxu3 }
 0x183   : > { %v1119_v23 = vadd.f32 %v1118_v17, %v1029_v16 }
 0x184   : > { %v1295_v20 = vadd.f32 %v1294_v6, %v1206_v15 }
 0x186   : > { %v2169_v21 = vpop.eup %2168  ;;  %v1438_v22 = vadd.f32 %v2414_v19, %v1295_v20 }
 0x187   : > { %1501 = vst [vmem:[%s2430_s4 + $0xc8] sm:$0xff] %v2169_v21 }
 0x188   : > { %2170 = vtanh.f32 %v1438_v22 }
 0x189   : > { %v1207_v24 = vpop.f32.mrf.mxu2  ;;  %v1032_v26 = vpop.f32.mrf.mxu0 }
 0x18a   : > { %v1208_v25 = vadd.f32 %v1207_v24, %v1119_v23  ;;  %v1121_v27 = vpop.f32.mrf.mxu1  ;;  %v1304_v50 = vpop.f32.mrf.mxu3 }
 0x18b   : > { %v1122_v32 = vadd.f32 %v1121_v27, %v1032_v26 }
 0x18c   : > { %v1297_v28 = vadd.f32 %v1296_v18, %v1208_v25 }
 0x18e   : > { %v2171_v30 = vpop.eup %2170  ;;  %v1439_v31 = vadd.f32 %v2414_v19, %v1297_v28 }
 0x18f   : > { %1502 = vst [vmem:[%s2430_s4 + $0xd0] sm:$0xff] %v2171_v30 }
 0x190   : > { %2172 = vtanh.f32 %v1439_v31 }
 0x191   : > { %v1210_v33 = vpop.f32.mrf.mxu2  ;;  %v1034_v35 = vpop.f32.mrf.mxu0 }
 0x192   : > { %v1211_v34 = vadd.f32 %v1210_v33, %v1122_v32  ;;  %v1123_v36 = vpop.f32.mrf.mxu1  ;;  %v1306_v61 = vpop.f32.mrf.mxu3 }
 0x193   : > { %v1124_v41 = vadd.f32 %v1123_v36, %v1034_v35 }
 0x194   : > { %v1300_v37 = vadd.f32 %v1299_v29, %v1211_v34 }
 0x196   : > { %v2173_v38 = vpop.eup %2172  ;;  %v1440_v39 = vadd.f32 %v2414_v19, %v1300_v37 }
 0x197   : > { %1503 = vst [vmem:[%s2430_s4 + $0xd8] sm:$0xff] %v2173_v38 }
 0x198   : > { %2174 = vtanh.f32 %v1440_v39 }
 0x199   : > { %v1212_v42 = vpop.f32.mrf.mxu2  ;;  %v1037_v44 = vpop.f32.mrf.mxu0 }
 0x19a   : > { %v1213_v43 = vadd.f32 %v1212_v42, %v1124_v41  ;;  %v1126_v45 = vpop.f32.mrf.mxu1 }
 0x19b   : > { %v1127_v49 = vadd.f32 %v1126_v45, %v1037_v44 }
 0x19c   : > { %v1302_v46 = vadd.f32 %v1301_v40, %v1213_v43 }
 0x19e   : > { %v2175_v47 = vpop.eup %2174  ;;  %v1441_v48 = vadd.f32 %v2414_v19, %v1302_v46 }
 0x19f   : > { %1504 = vst [vmem:[%s2430_s4 + $0xe0] sm:$0xff] %v2175_v47 }
 0x1a0   : > { %2176 = vtanh.f32 %v1441_v48 }
 0x1a1   : > { %v1215_v51 = vpop.f32.mrf.mxu2  ;;  %v1039_v54 = vpop.f32.mrf.mxu0 }
 0x1a2   : > { %v1216_v52 = vadd.f32 %v1215_v51, %v1127_v49  ;;  %v1128_v55 = vpop.f32.mrf.mxu1 }
 0x1a3   : > { %v1129_v58 = vadd.f32 %v1128_v55, %v1039_v54 }
 0x1a4   : > { %v1305_v53 = vadd.f32 %v1304_v50, %v1216_v52 }
 0x1a6   : > { %v2177_v56 = vpop.eup %2176  ;;  %v1442_v57 = vadd.f32 %v2414_v19, %v1305_v53 }
 0x1a7   : > { %1505 = vst [vmem:[%s2430_s4 + $0xe8] sm:$0xff] %v2177_v56 }
 0x1a8   : > { %2178 = vtanh.f32 %v1442_v57 }
 0x1a9   : > { %v1217_v59 = vpop.f32.mrf.mxu2 }
 0x1aa   : > { %v1218_v60 = vadd.f32 %v1217_v59, %v1129_v58 }
 0x1ac   : > { %v1307_v62 = vadd.f32 %v1306_v61, %v1218_v60 }
 0x1ae   : > { %v2179_v63 = vpop.eup %2178  ;;  %v1443_v0 = vadd.f32 %v2414_v19, %v1307_v62 }
 0x1af   : > { %1506 = vst [vmem:[%s2430_s4 + $0xf0] sm:$0xff] %v2179_v63 }
 0x1b0   : > { %2180 = vtanh.f32 %v1443_v0 }
 0x1b6   : > { %v2181_v1 = vpop.eup %2180 }
 0x1b7   : > { %1507 = vst [vmem:[%s2430_s4 + $0xf8] sm:$0xff] %v2181_v1 }
 0x1b8 PF: > { %s13_s14 = sadd.s32 1, %s2204_s14   ;;  %s2559_s12 = smov %s2200_s13 }
 0x1b9   : > { %p10_p5 = scmp.ge.s32.totalorder %s13_s14, 4   ;;  %s2560_s13 = smov %s2562_s15 }
 0x1bb   :  { %12 = sbr.rel (!%p10_p5) target bundleno = 2 (0x2), region = 76 }

</bundles_post_ra>
